<compile_context>
chip_gen: v7x
topology: tpu7x:2x2x1
jax: 0.10.0
libtpu: 0.0.40
codegen_flags: <defaults>
</compile_context>

<pallas_src>
import functools

import numpy as np

import jax
import jax.numpy as jnp
from jax.experimental import pallas as pl
from jax.experimental.pallas import tpu as pltpu


# ----------------------------------------------------------------------------
# Geometry constants (numpy, built once per shape, baked in at trace time)
# ----------------------------------------------------------------------------
def _round_up(v, m):
    return ((v + m - 1) // m) * m


def _conv_gather_stacked(B, H, W, kk, st, pd, rin_pad, mout_pad):
    """Stacked one-hot row gather: row t*mout_pad + m selects the tap-t source
    row of output position m.  Taps falling into the implicit zero padding
    stay all-zero rows (padding handled for free).  mout_pad is a multiple of
    8 so the per-tap slices of the gathered result are free (sublane-aligned)
    views inside the kernel."""
    Ho = (H + 2 * pd - kk) // st + 1
    Wo = (W + 2 * pd - kk) // st + 1
    G = np.zeros((kk * kk, mout_pad, rin_pad), np.float32)
    for i in range(kk):
        for j in range(kk):
            t = i * kk + j
            for b in range(B):
                for ho in range(Ho):
                    for wo in range(Wo):
                        hi, wi = ho * st + i - pd, wo * st + j - pd
                        if 0 <= hi < H and 0 <= wi < W:
                            G[t, (b * Ho + ho) * Wo + wo,
                              (b * H + hi) * W + wi] = 1.0
    return G.reshape(kk * kk * mout_pad, rin_pad), B * Ho * Wo


@functools.lru_cache(maxsize=None)
def _geometry(B, c1, H, W):
    assert (H, W) == (7, 7), "PereTransformer requires 7x7 spatial input"
    Hh, Wh = H // 2, W // 2                    # Conv3 output spatial (3, 3)
    N = Hh * Wh                                # attention sequence length (9)
    assert int(np.gcd(N, c1)) == 1, "permutation factorisation needs gcd(N,c1)=1"

    Rp = _round_up(B * H * W, 8)               # padded spatial row count
    Np = _round_up(B * N, 8)                   # padded sequence row count
    Hb, Wb = (H - 1) // 2 + 1, (W - 1) // 2 + 1   # 3x3 s2 p1 output spatial
    Mbr = B * Hb * Wb
    Mbr_pad = _round_up(Mbr, 8)

    gp, _ = _conv_gather_stacked(B, H, W, 3, 1, 1, Rp, Rp)        # PartialConv
    g3, _ = _conv_gather_stacked(B, H, W, 3, 2, 0, Rp, Np)        # Conv3
    gs2, mbr_chk = _conv_gather_stacked(B, H, W, 3, 2, 1, Rp, Mbr_pad)  # branches
    assert mbr_chk == Mbr

    # Raw reshape (B,N,C)->(B,C,3,3) + nearest resize to (7,7), factored as:
    #   stage 1 (per source channel cp): row gather over the B*N sequence rows
    #            + one-hot dest-channel select  ->  TBL[(b, s), ch]
    #   stage 2: broadcast TBL rows out to the 7x7 grid (nearest neighbour).
    # For output channel ch at source spatial s:  m = ch*N + s,
    #   n = m // c1  (source sequence position),  cp = m % c1 (source channel).
    idx_h = [int(i * Hh / H) for i in range(H)]
    idx_w = [int(i * Wh / W) for i in range(W)]
    gpm = np.zeros((c1, Np, Np), np.float32)
    msel = np.zeros((c1, Np, c1), np.float32)
    gex = np.zeros((Rp, Np), np.float32)
    for b in range(B):
        for s in range(N):
            row = b * N + s
            for ch in range(c1):               # ch = destination channel
                m = ch * N + s
                n, cp = m // c1, m % c1
                gpm[cp, row, b * N + n] = 1.0
                msel[cp, row, ch] = 1.0
        for ho in range(H):
            for wo in range(W):
                r = (b * H + ho) * W + wo
                s = idx_h[ho] * Wh + idx_w[wo]
                gex[r, b * N + s] = 1.0
    return (gp, g3, gs2, gpm.reshape(c1 * Np, Np), gex, msel,
            Rp, Np, Mbr, Mbr_pad, Hb, Wb, N)


# ----------------------------------------------------------------------------
# The single fused Pallas kernel
# ----------------------------------------------------------------------------
def _conv_lirt_kernel(x_ref, gp_ref, g3_ref, gs2_ref, gpm_ref, gex_ref,
                      msel_ref, w1_ref, w3_ref, wqkv_ref, wp_ref, w2_ref,
                      wbr_ref, bias_ref, o_ref, *, n_seq, c1, half):
    f32 = jnp.float32

    def mm(a, b):                      # (M,K)@(K,N) on the MXU, f32 accumulate
        return jnp.dot(a, b, preferred_element_type=f32)

    def mm_t(a, w):                    # a:(M,K) x w:(N,K) -> (M,N)  == a @ w.T
        return jax.lax.dot_general(a, w, (((1,), (1,)), ((), ())),
                                   preferred_element_type=f32)

    def conv_stacked(g_ref, w_ref, xin, ntap=9):
        # ONE stacked row-gather matmul + ONE flattened-tap weight matmul.
        mp = g_ref.shape[0] // ntap
        gathered = mm(g_ref[...].astype(f32), xin)              # (ntap*mp, cin)
        xg = jnp.concatenate(                                   # free views
            [gathered[t * mp:(t + 1) * mp, :] for t in range(ntap)], axis=-1)
        return mm_t(xg, w_ref[...])                             # (mp, cout)

    def tree_sum(terms):               # pairwise reduction -> exposes ILP
        while len(terms) > 1:
            nxt = [terms[i] + terms[i + 1] for i in range(0, len(terms) - 1, 2)]
            if len(terms) % 2:
                nxt.append(terms[-1])
            terms = nxt
        return terms[0]

    x = x_ref[...]                                              # (Rp, c1) f32
    bias = bias_ref[...]
    b3, lnw, lnb, bp = (bias[r:r + 1, :c1] for r in range(4))
    sh2 = bias[4:5, :half]
    shbr = bias[5:6, :2 * half]

    # PartialConv (split_cat): untouched-channel passthrough is folded into
    # the centre-tap weight, so no masking/concat is needed.
    t_map = conv_stacked(gp_ref, w1_ref, x)                     # (Rp, c1)

    # Conv3: 3x3 stride-2 pad-0 (+bias); rows >= B*n_seq are harmless junk.
    t3 = conv_stacked(g3_ref, w3_ref, t_map) + b3               # (Np, c1)

    # PEREAttention (single head, no q/k scaling, eval dropout = identity)
    mu = jnp.mean(t3, axis=-1, keepdims=True)
    xc = t3 - mu
    var = jnp.mean(xc * xc, axis=-1, keepdims=True)
    xn = xc * jax.lax.rsqrt(var + 1e-5) * lnw + lnb
    qkv = mm_t(xn, wqkv_ref[...])                               # fused QKV
    q, k, v = qkv[:, :c1], qkv[:, c1:2 * c1], qkv[:, 2 * c1:3 * c1]
    att = mm_t(q, k)                                            # q @ k.T

    # Block-diagonal batch mask, generated in-kernel from iota (no operand).
    rows = att.shape[0]
    ri = jax.lax.broadcasted_iota(jnp.int32, (rows, rows), 0)
    ci = jax.lax.broadcasted_iota(jnp.int32, (rows, rows), 1)
    rblk = jnp.zeros((rows, rows), jnp.int32)
    cblk = jnp.zeros((rows, rows), jnp.int32)
    for edge in range(n_seq, rows, n_seq):
        rblk = rblk + (ri >= edge).astype(jnp.int32)
        cblk = cblk + (ci >= edge).astype(jnp.int32)
    att = jnp.where(rblk == cblk, att, -1e30)

    att = att - jnp.max(att, axis=-1, keepdims=True)
    e = jnp.exp(att)
    p = e / jnp.sum(e, axis=-1, keepdims=True)                  # exact softmax
    ta = mm_t(mm(p, v), wp_ref[...]) + bp + t3                  # proj + residual

    # Raw reshape + nearest upsample:
    #   stage 1: one small stacked gather + one-hot selects -> (Np, c1) table
    #   stage 2: one broadcast matmul out to the 7x7 grid   -> (Rp, c1)
    mpt = gpm_ref.shape[0] // c1
    slabs = mm(gpm_ref[...].astype(f32), ta)                    # (c1*mpt, c1)
    tbl = tree_sum([slabs[cp * mpt:(cp + 1) * mpt, cp:cp + 1]
                    * msel_ref[cp].astype(f32) for cp in range(c1)])
    u_in = mm(gex_ref[...].astype(f32), tbl)                    # (Rp, c1)

    # Conv2: 1x1 conv (BN scale pre-folded into weight) + shift + SiLU
    u = mm_t(u_in, w2_ref[...]) + sh2
    u = u * jax.nn.sigmoid(u)                                   # (Rp, half)

    # conv1(u) and conv(x) branches merged into ONE stacked gather + ONE
    # weight matmul (outer BN folded per half); channel concat is free and the
    # result goes out in a single store.
    z = conv_stacked(gs2_ref, wbr_ref, jnp.concatenate([u, x], axis=-1)) + shbr
    o_ref[...] = z * jax.nn.sigmoid(z)                          # (Mbr_pad, c2)


# ----------------------------------------------------------------------------
# Host wrapper: layout x once, fold BN/bias into weights, bake geometry, launch
# ----------------------------------------------------------------------------
def conv_lirt_forward(x, p, c1, c2, k=3, s=2):
    assert k == 3 and s == 2, "Conv_LiRT channel-cat requires k=3, s=2 here"
    B, cin, H, W = x.shape
    assert cin == c1 and (H, W) == (7, 7)
    assert c2 % 2 == 0
    half = c2 // 2
    dc = c1 // 4
    eps = 1e-5
    f32, bf16 = jnp.float32, jnp.bfloat16

    (gp, g3, gs2, gpm, gex, msel,
     Rp, Np, Mbr, Mbr_pad, Hb, Wb, N) = _geometry(B, c1, H, W)

    # ---- fold BN / flatten taps into per-conv weight matrices (tiny) --------
    def flat_taps(w):   # (Cout, Cin, 3, 3) -> (Cout, 9*Cin), tap order t=i*3+j
        return jnp.concatenate([w[:, :, i, j]
                                for i in range(3) for j in range(3)], axis=1)

    # PartialConv weights embedded into (c1, 9*c1); identity passthrough for
    # the untouched channels folded into the centre tap (t = 4).
    w1t = jnp.zeros((9, c1, c1), f32)
    w1t = w1t.at[:, :dc, :dc].set(
        jnp.stack([p['pconv_w'][:, :, i, j]
                   for i in range(3) for j in range(3)]))
    w1t = w1t.at[4].add(jnp.diag(jnp.concatenate(
        [jnp.zeros((dc,), f32), jnp.ones((c1 - dc,), f32)])))
    w1 = jnp.concatenate([w1t[t] for t in range(9)], axis=1)       # (c1, 9c1)

    w3 = flat_taps(p['conv3_w'])                                   # (c1, 9c1)
    wqkv = jnp.concatenate([p['wq'], p['wk'], p['wv']], axis=0)    # (3c1, c1)
    wp = p['wp']

    # Conv2's own BN folded: scale into weight rows, shift kept separately.
    sc2 = p['conv2_bn_g'] * jax.lax.rsqrt(p['conv2_bn_v'] + eps)
    w2 = p['conv2_w'][:, :, 0, 0] * sc2[:, None]                   # (half, c1)
    sh2 = p['conv2_bn_b'] - p['conv2_bn_m'] * sc2

    # Outer BN(c2) folded into the merged branch weight (block structure:
    # rows [:half] read the u channels, rows [half:] read the x channels).
    sc = p['bn_g'] * jax.lax.rsqrt(p['bn_v'] + eps)
    sh = p['bn_b'] - p['bn_m'] * sc
    cb = half + c1
    wa = p['conv1_w'] * sc[:half][:, None, None, None]
    wb = p['conv_w'] * sc[half:][:, None, None, None]
    wbr = jnp.zeros((c2, 9 * cb), f32)
    for i in range(3):
        for j in range(3):
            t = i * 3 + j
            wbr = wbr.at[:half, t * cb:t * cb + half].set(wa[:, :, i, j])
            wbr = wbr.at[half:, t * cb + half:(t + 1) * cb].set(wb[:, :, i, j])
    shbr = jnp.concatenate([p['conv1_b'] * sc[:half] + sh[:half], sh[half:]])

    # All (1, c) bias/shift vectors packed into one small slab.
    cmax = max(c1, c2)
    bias = jnp.zeros((8, cmax), f32)
    bias = bias.at[0, :c1].set(p['conv3_b'])
    bias = bias.at[1, :c1].set(p['ln_w'])
    bias = bias.at[2, :c1].set(p['ln_b'])
    bias = bias.at[3, :c1].set(p['bp'])
    bias = bias.at[4, :half].set(sh2)
    bias = bias.at[5, :c2].set(shbr)

    # ---- activations: NCHW -> channel-last rows, padded to a sublane tile ---
    x_flat = x.astype(f32).transpose(0, 2, 3, 1).reshape(B * H * W, c1)
    x_pad = jnp.zeros((Rp, c1), f32).at[:B * H * W].set(x_flat)

    # 0/1 geometry constants travel as bf16 (exact) -> half the constant DMA;
    # they are upcast in-kernel so all accumulation stays f32.
    consts = [jnp.asarray(a, bf16) for a in (gp, g3, gs2, gpm, gex, msel)]
    operands = [x_pad] + consts + [w1, w3, wqkv, wp, w2, wbr, bias]

    def full(shape):
        return pl.BlockSpec(shape, lambda i, _n=len(shape): (0,) * _n)

    out = pl.pallas_call(
        functools.partial(_conv_lirt_kernel, n_seq=N, c1=c1, half=half),
        out_shape=jax.ShapeDtypeStruct((Mbr_pad, c2), f32),
        grid=(1,),
        in_specs=[full(op.shape) for op in operands],
        out_specs=full((Mbr_pad, c2)),
        compiler_params=pltpu.CompilerParams(
            dimension_semantics=("arbitrary",)),
    )(*operands)

    return out[:Mbr].reshape(B, Hb, Wb, c2).transpose(0, 3, 1, 2)   # NCHW


# ----------------------------------------------------------------------------
# Deterministic parameter init (shapes from Conv_LiRT.__init__)
# ----------------------------------------------------------------------------
def init_params(key, c1, c2):
    half = c2 // 2
    ks = jax.random.split(key, 22)
    nrm = lambda k_, sh, sc=0.1: sc * jax.random.normal(k_, sh, jnp.float32)
    p = {
        'conv_w':   nrm(ks[0], (half, c1, 3, 3)),
        'conv1_w':  nrm(ks[1], (half, half, 3, 3)),
        'conv1_b':  nrm(ks[2], (half,)),
        'bn_g':     1.0 + nrm(ks[3], (c2,)),
        'bn_b':     nrm(ks[4], (c2,)),
        'bn_m':     nrm(ks[5], (c2,)),
        'bn_v':     jnp.abs(nrm(ks[6], (c2,))) + 1.0,
        'pconv_w':  nrm(ks[7], (c1 // 4, c1 // 4, 3, 3)),
        'conv3_w':  nrm(ks[8], (c1, c1, 3, 3)),
        'conv3_b':  nrm(ks[9], (c1,)),
        'ln_w':     1.0 + nrm(ks[10], (c1,)),
        'ln_b':     nrm(ks[11], (c1,)),
        'wq':       nrm(ks[12], (c1, c1)),
        'wk':       nrm(ks[13], (c1, c1)),
        'wv':       nrm(ks[14], (c1, c1)),
        'wp':       nrm(ks[15], (c1, c1)),
        'bp':       nrm(ks[16], (c1,)),
        'conv2_w':  nrm(ks[17], (half, c1, 1, 1)),
        'conv2_bn_g': 1.0 + nrm(ks[18], (half,)),
        'conv2_bn_b': nrm(ks[19], (half,)),
        'conv2_bn_m': nrm(ks[20], (half,)),
        'conv2_bn_v': jnp.abs(nrm(ks[21], (half,))) + 1.0,
    }
    return p


if __name__ == "__main__":
    key = jax.random.PRNGKey(0)
    kx, kp = jax.random.split(key)
    # 7x7 spatial is required by PereTransformer (interpolate(7,7) + reshape);
    # k=3, s=2 makes both branches produce 4x4 so the channel-cat lines up.
    B, c1, c2, H, W = 2, 8, 16, 7, 7
    x = jax.random.normal(kx, (B, c1, H, W), jnp.float32)
    params = init_params(kp, c1, c2)

    fwd = jax.jit(functools.partial(conv_lirt_forward, c1=c1, c2=c2, k=3, s=2))
    out = jax.block_until_ready(fwd(x, params))
    assert out.shape == (B, c2, 4, 4), out.shape
    assert bool(jnp.all(jnp.isfinite(out)))
    print("KERNEL_OK")
</pallas_src>

<mosaic_0001>
module attributes {stable_mosaic.version = 11 : i64} {
  func.func @_conv_lirt_kernel(%arg0: i32, %arg1: memref<104x8xf32, #tpu.memory_space<vmem>>, %arg2: memref<936x104xbf16, #tpu.memory_space<vmem>>, %arg3: memref<216x104xbf16, #tpu.memory_space<vmem>>, %arg4: memref<288x104xbf16, #tpu.memory_space<vmem>>, %arg5: memref<192x24xbf16, #tpu.memory_space<vmem>>, %arg6: memref<104x24xbf16, #tpu.memory_space<vmem>>, %arg7: memref<8x24x8xbf16, #tpu.memory_space<vmem>>, %arg8: memref<8x72xf32, #tpu.memory_space<vmem>>, %arg9: memref<8x72xf32, #tpu.memory_space<vmem>>, %arg10: memref<24x8xf32, #tpu.memory_space<vmem>>, %arg11: memref<8x8xf32, #tpu.memory_space<vmem>>, %arg12: memref<8x8xf32, #tpu.memory_space<vmem>>, %arg13: memref<16x144xf32, #tpu.memory_space<vmem>>, %arg14: memref<8x16xf32, #tpu.memory_space<vmem>>, %arg15: memref<32x16xf32, #tpu.memory_space<vmem>>) attributes {dimension_semantics = [#tpu.dimension_semantics<arbitrary>], iteration_bounds = array<i64: 1>, scalar_prefetch = 0 : i64, scratch_operands = 0 : i64, tpu.core_type = #tpu.core_type<tc>, window_params = [{pipeline_mode = #tpu.pipeline_mode<synchronous>, transform_indices = @transform_0, window_bounds = array<i64: 104, 8>}, {pipeline_mode = #tpu.pipeline_mode<synchronous>, transform_indices = @transform_1, window_bounds = array<i64: 936, 104>}, {pipeline_mode = #tpu.pipeline_mode<synchronous>, transform_indices = @transform_2, window_bounds = array<i64: 216, 104>}, {pipeline_mode = #tpu.pipeline_mode<synchronous>, transform_indices = @transform_3, window_bounds = array<i64: 288, 104>}, {pipeline_mode = #tpu.pipeline_mode<synchronous>, transform_indices = @transform_4, window_bounds = array<i64: 192, 24>}, {pipeline_mode = #tpu.pipeline_mode<synchronous>, transform_indices = @transform_5, window_bounds = array<i64: 104, 24>}, {pipeline_mode = #tpu.pipeline_mode<synchronous>, transform_indices = @transform_6, window_bounds = array<i64: 8, 24, 8>}, {pipeline_mode = #tpu.pipeline_mode<synchronous>, transform_indices = @transform_7, window_bounds = array<i64: 8, 72>}, {pipeline_mode = #tpu.pipeline_mode<synchronous>, transform_indices = @transform_8, window_bounds = array<i64: 8, 72>}, {pipeline_mode = #tpu.pipeline_mode<synchronous>, transform_indices = @transform_9, window_bounds = array<i64: 24, 8>}, {pipeline_mode = #tpu.pipeline_mode<synchronous>, transform_indices = @transform_10, window_bounds = array<i64: 8, 8>}, {pipeline_mode = #tpu.pipeline_mode<synchronous>, transform_indices = @transform_11, window_bounds = array<i64: 8, 8>}, {pipeline_mode = #tpu.pipeline_mode<synchronous>, transform_indices = @transform_12, window_bounds = array<i64: 16, 144>}, {pipeline_mode = #tpu.pipeline_mode<synchronous>, transform_indices = @transform_13, window_bounds = array<i64: 8, 16>}, {pipeline_mode = #tpu.pipeline_mode<synchronous>, transform_indices = @transform_14, window_bounds = array<i64: 32, 16>}]} {
    %c0 = arith.constant 0 : index
    %c0_0 = arith.constant 0 : index
    %0 = vector.load %arg1[%c0, %c0_0] : memref<104x8xf32, #tpu.memory_space<vmem>>, vector<104x8xf32>
    %c0_1 = arith.constant 0 : index
    %c0_2 = arith.constant 0 : index
    %1 = vector.load %arg14[%c0_1, %c0_2] : memref<8x16xf32, #tpu.memory_space<vmem>>, vector<8x16xf32>
    %2 = vector.extract_strided_slice %1 {offsets = [0, 0], sizes = [1, 8], strides = [1, 1]} : vector<8x16xf32> to vector<1x8xf32>
    %3 = vector.extract_strided_slice %1 {offsets = [1, 0], sizes = [1, 8], strides = [1, 1]} : vector<8x16xf32> to vector<1x8xf32>
    %4 = vector.extract_strided_slice %1 {offsets = [2, 0], sizes = [1, 8], strides = [1, 1]} : vector<8x16xf32> to vector<1x8xf32>
    %5 = vector.extract_strided_slice %1 {offsets = [3, 0], sizes = [1, 8], strides = [1, 1]} : vector<8x16xf32> to vector<1x8xf32>
    %6 = vector.extract_strided_slice %1 {offsets = [4, 0], sizes = [1, 8], strides = [1, 1]} : vector<8x16xf32> to vector<1x8xf32>
    %7 = vector.extract_strided_slice %1 {offsets = [5, 0], sizes = [1, 16], strides = [1, 1]} : vector<8x16xf32> to vector<1x16xf32>
    %c0_3 = arith.constant 0 : index
    %c0_4 = arith.constant 0 : index
    %8 = vector.load %arg2[%c0_3, %c0_4] : memref<936x104xbf16, #tpu.memory_space<vmem>>, vector<936x104xbf16>
    %9 = arith.extf %8 : vector<936x104xbf16> to vector<936x104xf32>
    %cst = arith.constant dense<0.000000e+00> : vector<936x8xf32>
    %10 = tpu.matmul %9, %0, %cst {dimension_numbers = #tpu.dot_dimension_numbers<[1], [0], [0], [1], [0, 0, 1, 1], [], []>} : vector<936x104xf32>, vector<104x8xf32>, vector<936x8xf32> -> vector<936x8xf32>
    %11 = vector.extract_strided_slice %10 {offsets = [0, 0], sizes = [104, 8], strides = [1, 1]} : vector<936x8xf32> to vector<104x8xf32>
    %12 = vector.extract_strided_slice %10 {offsets = [104, 0], sizes = [104, 8], strides = [1, 1]} : vector<936x8xf32> to vector<104x8xf32>
    %13 = vector.extract_strided_slice %10 {offsets = [208, 0], sizes = [104, 8], strides = [1, 1]} : vector<936x8xf32> to vector<104x8xf32>
    %14 = vector.extract_strided_slice %10 {offsets = [312, 0], sizes = [104, 8], strides = [1, 1]} : vector<936x8xf32> to vector<104x8xf32>
    %15 = vector.extract_strided_slice %10 {offsets = [416, 0], sizes = [104, 8], strides = [1, 1]} : vector<936x8xf32> to vector<104x8xf32>
    %16 = vector.extract_strided_slice %10 {offsets = [520, 0], sizes = [104, 8], strides = [1, 1]} : vector<936x8xf32> to vector<104x8xf32>
    %17 = vector.extract_strided_slice %10 {offsets = [624, 0], sizes = [104, 8], strides = [1, 1]} : vector<936x8xf32> to vector<104x8xf32>
    %18 = vector.extract_strided_slice %10 {offsets = [728, 0], sizes = [104, 8], strides = [1, 1]} : vector<936x8xf32> to vector<104x8xf32>
    %19 = vector.extract_strided_slice %10 {offsets = [832, 0], sizes = [104, 8], strides = [1, 1]} : vector<936x8xf32> to vector<104x8xf32>
    %20 = tpu.concatenate %11, %12, %13, %14, %15, %16, %17, %18, %19 in 1 : vector<104x8xf32>, vector<104x8xf32>, vector<104x8xf32>, vector<104x8xf32>, vector<104x8xf32>, vector<104x8xf32>, vector<104x8xf32>, vector<104x8xf32>, vector<104x8xf32> -> vector<104x72xf32>
    %c0_5 = arith.constant 0 : index
    %c0_6 = arith.constant 0 : index
    %21 = vector.load %arg8[%c0_5, %c0_6] : memref<8x72xf32, #tpu.memory_space<vmem>>, vector<8x72xf32>
    %cst_7 = arith.constant dense<0.000000e+00> : vector<104x8xf32>
    %22 = tpu.matmul %20, %21, %cst_7 {dimension_numbers = #tpu.dot_dimension_numbers<[1], [1], [0], [0], [0, 0, 1, 0], [], []>} : vector<104x72xf32>, vector<8x72xf32>, vector<104x8xf32> -> vector<104x8xf32>
    %c0_8 = arith.constant 0 : index
    %c0_9 = arith.constant 0 : index
    %23 = vector.load %arg3[%c0_8, %c0_9] : memref<216x104xbf16, #tpu.memory_space<vmem>>, vector<216x104xbf16>
    %24 = arith.extf %23 : vector<216x104xbf16> to vector<216x104xf32>
    %cst_10 = arith.constant dense<0.000000e+00> : vector<216x8xf32>
    %25 = tpu.matmul %24, %22, %cst_10 {dimension_numbers = #tpu.dot_dimension_numbers<[1], [0], [0], [1], [0, 0, 1, 1], [], []>} : vector<216x104xf32>, vector<104x8xf32>, vector<216x8xf32> -> vector<216x8xf32>
    %26 = vector.extract_strided_slice %25 {offsets = [0, 0], sizes = [24, 8], strides = [1, 1]} : vector<216x8xf32> to vector<24x8xf32>
    %27 = vector.extract_strided_slice %25 {offsets = [24, 0], sizes = [24, 8], strides = [1, 1]} : vector<216x8xf32> to vector<24x8xf32>
    %28 = vector.extract_strided_slice %25 {offsets = [48, 0], sizes = [24, 8], strides = [1, 1]} : vector<216x8xf32> to vector<24x8xf32>
    %29 = vector.extract_strided_slice %25 {offsets = [72, 0], sizes = [24, 8], strides = [1, 1]} : vector<216x8xf32> to vector<24x8xf32>
    %30 = vector.extract_strided_slice %25 {offsets = [96, 0], sizes = [24, 8], strides = [1, 1]} : vector<216x8xf32> to vector<24x8xf32>
    %31 = vector.extract_strided_slice %25 {offsets = [120, 0], sizes = [24, 8], strides = [1, 1]} : vector<216x8xf32> to vector<24x8xf32>
    %32 = vector.extract_strided_slice %25 {offsets = [144, 0], sizes = [24, 8], strides = [1, 1]} : vector<216x8xf32> to vector<24x8xf32>
    %33 = vector.extract_strided_slice %25 {offsets = [168, 0], sizes = [24, 8], strides = [1, 1]} : vector<216x8xf32> to vector<24x8xf32>
    %34 = vector.extract_strided_slice %25 {offsets = [192, 0], sizes = [24, 8], strides = [1, 1]} : vector<216x8xf32> to vector<24x8xf32>
    %35 = tpu.concatenate %26, %27, %28, %29, %30, %31, %32, %33, %34 in 1 : vector<24x8xf32>, vector<24x8xf32>, vector<24x8xf32>, vector<24x8xf32>, vector<24x8xf32>, vector<24x8xf32>, vector<24x8xf32>, vector<24x8xf32>, vector<24x8xf32> -> vector<24x72xf32>
    %c0_11 = arith.constant 0 : index
    %c0_12 = arith.constant 0 : index
    %36 = vector.load %arg9[%c0_11, %c0_12] : memref<8x72xf32, #tpu.memory_space<vmem>>, vector<8x72xf32>
    %cst_13 = arith.constant dense<0.000000e+00> : vector<24x8xf32>
    %37 = tpu.matmul %35, %36, %cst_13 {dimension_numbers = #tpu.dot_dimension_numbers<[1], [1], [0], [0], [0, 0, 1, 0], [], []>} : vector<24x72xf32>, vector<8x72xf32>, vector<24x8xf32> -> vector<24x8xf32>
    %38 = vector.broadcast %2 : vector<1x8xf32> to vector<24x8xf32>
    %39 = arith.addf %37, %38 : vector<24x8xf32>
    %cst_14 = arith.constant dense<0.000000e+00> : vector<24xf32>
    %40 = vector.multi_reduction <add>, %39, %cst_14 [1] : vector<24x8xf32> to vector<24xf32>
    %41 = vector.shape_cast %40 : vector<24xf32> to vector<24x1xf32>
    %cst_15 = arith.constant 8.000000e+00 : f32
    %42 = vector.broadcast %cst_15 : f32 to vector<24x1xf32>
    %43 = arith.divf %41, %42 : vector<24x1xf32>
    %44 = vector.broadcast %43 : vector<24x1xf32> to vector<24x8xf32>
    %45 = arith.subf %39, %44 : vector<24x8xf32>
    %46 = arith.mulf %45, %45 : vector<24x8xf32>
    %cst_16 = arith.constant dense<0.000000e+00> : vector<24xf32>
    %47 = vector.multi_reduction <add>, %46, %cst_16 [1] : vector<24x8xf32> to vector<24xf32>
    %48 = vector.shape_cast %47 : vector<24xf32> to vector<24x1xf32>
    %cst_17 = arith.constant 8.000000e+00 : f32
    %49 = vector.broadcast %cst_17 : f32 to vector<24x1xf32>
    %50 = arith.divf %48, %49 : vector<24x1xf32>
    %cst_18 = arith.constant 9.99999974E-6 : f32
    %51 = vector.broadcast %cst_18 : f32 to vector<24x1xf32>
    %52 = arith.addf %50, %51 : vector<24x1xf32>
    %53 = math.rsqrt %52 : vector<24x1xf32>
    %54 = vector.broadcast %53 : vector<24x1xf32> to vector<24x8xf32>
    %55 = arith.mulf %45, %54 : vector<24x8xf32>
    %56 = vector.broadcast %3 : vector<1x8xf32> to vector<24x8xf32>
    %57 = arith.mulf %55, %56 : vector<24x8xf32>
    %58 = vector.broadcast %4 : vector<1x8xf32> to vector<24x8xf32>
    %59 = arith.addf %57, %58 : vector<24x8xf32>
    %c0_19 = arith.constant 0 : index
    %c0_20 = arith.constant 0 : index
    %60 = vector.load %arg10[%c0_19, %c0_20] : memref<24x8xf32, #tpu.memory_space<vmem>>, vector<24x8xf32>
    %cst_21 = arith.constant dense<0.000000e+00> : vector<24x24xf32>
    %61 = tpu.matmul %59, %60, %cst_21 {dimension_numbers = #tpu.dot_dimension_numbers<[1], [1], [0], [0], [0, 0, 1, 0], [], []>} : vector<24x8xf32>, vector<24x8xf32>, vector<24x24xf32> -> vector<24x24xf32>
    %62 = vector.extract_strided_slice %61 {offsets = [0, 0], sizes = [24, 8], strides = [1, 1]} : vector<24x24xf32> to vector<24x8xf32>
    %63 = vector.extract_strided_slice %61 {offsets = [0, 8], sizes = [24, 8], strides = [1, 1]} : vector<24x24xf32> to vector<24x8xf32>
    %64 = vector.extract_strided_slice %61 {offsets = [0, 16], sizes = [24, 8], strides = [1, 1]} : vector<24x24xf32> to vector<24x8xf32>
    %cst_22 = arith.constant dense<0.000000e+00> : vector<24x24xf32>
    %65 = tpu.matmul %62, %63, %cst_22 {dimension_numbers = #tpu.dot_dimension_numbers<[1], [1], [0], [0], [0, 0, 1, 0], [], []>} : vector<24x8xf32>, vector<24x8xf32>, vector<24x24xf32> -> vector<24x24xf32>
    %66 = tpu.iota {dimensions = array<i32: 0>} : vector<24x24xi32>
    %67 = tpu.iota {dimensions = array<i32: 1>} : vector<24x24xi32>
    %c0_i32 = arith.constant 0 : i32
    %68 = vector.broadcast %c0_i32 : i32 to vector<24x24xi32>
    %c0_i32_23 = arith.constant 0 : i32
    %69 = vector.broadcast %c0_i32_23 : i32 to vector<24x24xi32>
    %c9_i32 = arith.constant 9 : i32
    %70 = vector.broadcast %c9_i32 : i32 to vector<24x24xi32>
    %71 = arith.cmpi sge, %66, %70 : vector<24x24xi32>
    %72 = arith.extui %71 : vector<24x24xi1> to vector<24x24xi32>
    %73 = arith.addi %68, %72 : vector<24x24xi32>
    %c9_i32_24 = arith.constant 9 : i32
    %74 = vector.broadcast %c9_i32_24 : i32 to vector<24x24xi32>
    %75 = arith.cmpi sge, %67, %74 : vector<24x24xi32>
    %76 = arith.extui %75 : vector<24x24xi1> to vector<24x24xi32>
    %77 = arith.addi %69, %76 : vector<24x24xi32>
    %c18_i32 = arith.constant 18 : i32
    %78 = vector.broadcast %c18_i32 : i32 to vector<24x24xi32>
    %79 = arith.cmpi sge, %66, %78 : vector<24x24xi32>
    %80 = arith.extui %79 : vector<24x24xi1> to vector<24x24xi32>
    %81 = arith.addi %73, %80 : vector<24x24xi32>
    %c18_i32_25 = arith.constant 18 : i32
    %82 = vector.broadcast %c18_i32_25 : i32 to vector<24x24xi32>
    %83 = arith.cmpi sge, %67, %82 : vector<24x24xi32>
    %84 = arith.extui %83 : vector<24x24xi1> to vector<24x24xi32>
    %85 = arith.addi %77, %84 : vector<24x24xi32>
    %86 = arith.cmpi eq, %81, %85 : vector<24x24xi32>
    %cst_26 = arith.constant -1.000000e+30 : f32
    %87 = vector.broadcast %cst_26 : f32 to vector<24x24xf32>
    %88 = arith.select %86, %65, %87 : vector<24x24xi1>, vector<24x24xf32>
    %cst_27 = arith.constant dense<0xFF800000> : vector<24xf32>
    %89 = vector.multi_reduction <maximumf>, %88, %cst_27 [1] : vector<24x24xf32> to vector<24xf32>
    %90 = vector.shape_cast %89 : vector<24xf32> to vector<24x1xf32>
    %91 = vector.broadcast %90 : vector<24x1xf32> to vector<24x24xf32>
    %92 = arith.subf %88, %91 : vector<24x24xf32>
    %93 = math.exp %92 : vector<24x24xf32>
    %cst_28 = arith.constant dense<0.000000e+00> : vector<24xf32>
    %94 = vector.multi_reduction <add>, %93, %cst_28 [1] : vector<24x24xf32> to vector<24xf32>
    %95 = vector.shape_cast %94 : vector<24xf32> to vector<24x1xf32>
    %96 = vector.broadcast %95 : vector<24x1xf32> to vector<24x24xf32>
    %97 = arith.divf %93, %96 : vector<24x24xf32>
    %cst_29 = arith.constant dense<0.000000e+00> : vector<24x8xf32>
    %98 = tpu.matmul %97, %64, %cst_29 {dimension_numbers = #tpu.dot_dimension_numbers<[1], [0], [0], [1], [0, 0, 1, 1], [], []>} : vector<24x24xf32>, vector<24x8xf32>, vector<24x8xf32> -> vector<24x8xf32>
    %c0_30 = arith.constant 0 : index
    %c0_31 = arith.constant 0 : index
    %99 = vector.load %arg11[%c0_30, %c0_31] : memref<8x8xf32, #tpu.memory_space<vmem>>, vector<8x8xf32>
    %cst_32 = arith.constant dense<0.000000e+00> : vector<24x8xf32>
    %100 = tpu.matmul %98, %99, %cst_32 {dimension_numbers = #tpu.dot_dimension_numbers<[1], [1], [0], [0], [0, 0, 1, 0], [], []>} : vector<24x8xf32>, vector<8x8xf32>, vector<24x8xf32> -> vector<24x8xf32>
    %101 = vector.broadcast %5 : vector<1x8xf32> to vector<24x8xf32>
    %102 = arith.addf %100, %101 : vector<24x8xf32>
    %103 = arith.addf %102, %39 : vector<24x8xf32>
    %c0_33 = arith.constant 0 : index
    %c0_34 = arith.constant 0 : index
    %104 = vector.load %arg5[%c0_33, %c0_34] : memref<192x24xbf16, #tpu.memory_space<vmem>>, vector<192x24xbf16>
    %105 = arith.extf %104 : vector<192x24xbf16> to vector<192x24xf32>
    %cst_35 = arith.constant dense<0.000000e+00> : vector<192x8xf32>
    %106 = tpu.matmul %105, %103, %cst_35 {dimension_numbers = #tpu.dot_dimension_numbers<[1], [0], [0], [1], [0, 0, 1, 1], [], []>} : vector<192x24xf32>, vector<24x8xf32>, vector<192x8xf32> -> vector<192x8xf32>
    %107 = vector.extract_strided_slice %106 {offsets = [0, 0], sizes = [24, 1], strides = [1, 1]} : vector<192x8xf32> to vector<24x1xf32>
    %c0_36 = arith.constant 0 : index
    %c0_37 = arith.constant 0 : index
    %c0_38 = arith.constant 0 : index
    %108 = vector.load %arg7[%c0_36, %c0_37, %c0_38] : memref<8x24x8xbf16, #tpu.memory_space<vmem>>, vector<1x24x8xbf16>
    %109 = vector.shape_cast %108 : vector<1x24x8xbf16> to vector<24x8xbf16>
    %110 = arith.extf %109 : vector<24x8xbf16> to vector<24x8xf32>
    %111 = vector.broadcast %107 : vector<24x1xf32> to vector<24x8xf32>
    %112 = arith.mulf %111, %110 : vector<24x8xf32>
    %113 = vector.extract_strided_slice %106 {offsets = [24, 1], sizes = [24, 1], strides = [1, 1]} : vector<192x8xf32> to vector<24x1xf32>
    %c1 = arith.constant 1 : index
    %c0_39 = arith.constant 0 : index
    %c0_40 = arith.constant 0 : index
    %114 = vector.load %arg7[%c1, %c0_39, %c0_40] : memref<8x24x8xbf16, #tpu.memory_space<vmem>>, vector<1x24x8xbf16>
    %115 = vector.shape_cast %114 : vector<1x24x8xbf16> to vector<24x8xbf16>
    %116 = arith.extf %115 : vector<24x8xbf16> to vector<24x8xf32>
    %117 = vector.broadcast %113 : vector<24x1xf32> to vector<24x8xf32>
    %118 = arith.mulf %117, %116 : vector<24x8xf32>
    %119 = vector.extract_strided_slice %106 {offsets = [48, 2], sizes = [24, 1], strides = [1, 1]} : vector<192x8xf32> to vector<24x1xf32>
    %c2 = arith.constant 2 : index
    %c0_41 = arith.constant 0 : index
    %c0_42 = arith.constant 0 : index
    %120 = vector.load %arg7[%c2, %c0_41, %c0_42] : memref<8x24x8xbf16, #tpu.memory_space<vmem>>, vector<1x24x8xbf16>
    %121 = vector.shape_cast %120 : vector<1x24x8xbf16> to vector<24x8xbf16>
    %122 = arith.extf %121 : vector<24x8xbf16> to vector<24x8xf32>
    %123 = vector.broadcast %119 : vector<24x1xf32> to vector<24x8xf32>
    %124 = arith.mulf %123, %122 : vector<24x8xf32>
    %125 = vector.extract_strided_slice %106 {offsets = [72, 3], sizes = [24, 1], strides = [1, 1]} : vector<192x8xf32> to vector<24x1xf32>
    %c3 = arith.constant 3 : index
    %c0_43 = arith.constant 0 : index
    %c0_44 = arith.constant 0 : index
    %126 = vector.load %arg7[%c3, %c0_43, %c0_44] : memref<8x24x8xbf16, #tpu.memory_space<vmem>>, vector<1x24x8xbf16>
    %127 = vector.shape_cast %126 : vector<1x24x8xbf16> to vector<24x8xbf16>
    %128 = arith.extf %127 : vector<24x8xbf16> to vector<24x8xf32>
    %129 = vector.broadcast %125 : vector<24x1xf32> to vector<24x8xf32>
    %130 = arith.mulf %129, %128 : vector<24x8xf32>
    %131 = vector.extract_strided_slice %106 {offsets = [96, 4], sizes = [24, 1], strides = [1, 1]} : vector<192x8xf32> to vector<24x1xf32>
    %c4 = arith.constant 4 : index
    %c0_45 = arith.constant 0 : index
    %c0_46 = arith.constant 0 : index
    %132 = vector.load %arg7[%c4, %c0_45, %c0_46] : memref<8x24x8xbf16, #tpu.memory_space<vmem>>, vector<1x24x8xbf16>
    %133 = vector.shape_cast %132 : vector<1x24x8xbf16> to vector<24x8xbf16>
    %134 = arith.extf %133 : vector<24x8xbf16> to vector<24x8xf32>
    %135 = vector.broadcast %131 : vector<24x1xf32> to vector<24x8xf32>
    %136 = arith.mulf %135, %134 : vector<24x8xf32>
    %137 = vector.extract_strided_slice %106 {offsets = [120, 5], sizes = [24, 1], strides = [1, 1]} : vector<192x8xf32> to vector<24x1xf32>
    %c5 = arith.constant 5 : index
    %c0_47 = arith.constant 0 : index
    %c0_48 = arith.constant 0 : index
    %138 = vector.load %arg7[%c5, %c0_47, %c0_48] : memref<8x24x8xbf16, #tpu.memory_space<vmem>>, vector<1x24x8xbf16>
    %139 = vector.shape_cast %138 : vector<1x24x8xbf16> to vector<24x8xbf16>
    %140 = arith.extf %139 : vector<24x8xbf16> to vector<24x8xf32>
    %141 = vector.broadcast %137 : vector<24x1xf32> to vector<24x8xf32>
    %142 = arith.mulf %141, %140 : vector<24x8xf32>
    %143 = vector.extract_strided_slice %106 {offsets = [144, 6], sizes = [24, 1], strides = [1, 1]} : vector<192x8xf32> to vector<24x1xf32>
    %c6 = arith.constant 6 : index
    %c0_49 = arith.constant 0 : index
    %c0_50 = arith.constant 0 : index
    %144 = vector.load %arg7[%c6, %c0_49, %c0_50] : memref<8x24x8xbf16, #tpu.memory_space<vmem>>, vector<1x24x8xbf16>
    %145 = vector.shape_cast %144 : vector<1x24x8xbf16> to vector<24x8xbf16>
    %146 = arith.extf %145 : vector<24x8xbf16> to vector<24x8xf32>
    %147 = vector.broadcast %143 : vector<24x1xf32> to vector<24x8xf32>
    %148 = arith.mulf %147, %146 : vector<24x8xf32>
    %149 = vector.extract_strided_slice %106 {offsets = [168, 7], sizes = [24, 1], strides = [1, 1]} : vector<192x8xf32> to vector<24x1xf32>
    %c7 = arith.constant 7 : index
    %c0_51 = arith.constant 0 : index
    %c0_52 = arith.constant 0 : index
    %150 = vector.load %arg7[%c7, %c0_51, %c0_52] : memref<8x24x8xbf16, #tpu.memory_space<vmem>>, vector<1x24x8xbf16>
    %151 = vector.shape_cast %150 : vector<1x24x8xbf16> to vector<24x8xbf16>
    %152 = arith.extf %151 : vector<24x8xbf16> to vector<24x8xf32>
    %153 = vector.broadcast %149 : vector<24x1xf32> to vector<24x8xf32>
    %154 = arith.mulf %153, %152 : vector<24x8xf32>
    %155 = arith.addf %112, %118 : vector<24x8xf32>
    %156 = arith.addf %124, %130 : vector<24x8xf32>
    %157 = arith.addf %136, %142 : vector<24x8xf32>
    %158 = arith.addf %148, %154 : vector<24x8xf32>
    %159 = arith.addf %155, %156 : vector<24x8xf32>
    %160 = arith.addf %157, %158 : vector<24x8xf32>
    %161 = arith.addf %159, %160 : vector<24x8xf32>
    %c0_53 = arith.constant 0 : index
    %c0_54 = arith.constant 0 : index
    %162 = vector.load %arg6[%c0_53, %c0_54] : memref<104x24xbf16, #tpu.memory_space<vmem>>, vector<104x24xbf16>
    %163 = arith.extf %162 : vector<104x24xbf16> to vector<104x24xf32>
    %cst_55 = arith.constant dense<0.000000e+00> : vector<104x8xf32>
    %164 = tpu.matmul %163, %161, %cst_55 {dimension_numbers = #tpu.dot_dimension_numbers<[1], [0], [0], [1], [0, 0, 1, 1], [], []>} : vector<104x24xf32>, vector<24x8xf32>, vector<104x8xf32> -> vector<104x8xf32>
    %c0_56 = arith.constant 0 : index
    %c0_57 = arith.constant 0 : index
    %165 = vector.load %arg12[%c0_56, %c0_57] : memref<8x8xf32, #tpu.memory_space<vmem>>, vector<8x8xf32>
    %cst_58 = arith.constant dense<0.000000e+00> : vector<104x8xf32>
    %166 = tpu.matmul %164, %165, %cst_58 {dimension_numbers = #tpu.dot_dimension_numbers<[1], [1], [0], [0], [0, 0, 1, 0], [], []>} : vector<104x8xf32>, vector<8x8xf32>, vector<104x8xf32> -> vector<104x8xf32>
    %167 = vector.broadcast %6 : vector<1x8xf32> to vector<104x8xf32>
    %168 = arith.addf %166, %167 : vector<104x8xf32>
    %169 = arith.negf %168 : vector<104x8xf32>
    %170 = math.exp %169 : vector<104x8xf32>
    %cst_59 = arith.constant 1.000000e+00 : f32
    %171 = vector.broadcast %cst_59 : f32 to vector<104x8xf32>
    %172 = arith.addf %171, %170 : vector<104x8xf32>
    %173 = arith.divf %171, %172 : vector<104x8xf32>
    %174 = arith.mulf %168, %173 : vector<104x8xf32>
    %175 = tpu.concatenate %174, %0 in 1 : vector<104x8xf32>, vector<104x8xf32> -> vector<104x16xf32>
    %c0_60 = arith.constant 0 : index
    %c0_61 = arith.constant 0 : index
    %176 = vector.load %arg4[%c0_60, %c0_61] : memref<288x104xbf16, #tpu.memory_space<vmem>>, vector<288x104xbf16>
    %177 = arith.extf %176 : vector<288x104xbf16> to vector<288x104xf32>
    %cst_62 = arith.constant dense<0.000000e+00> : vector<288x16xf32>
    %178 = tpu.matmul %177, %175, %cst_62 {dimension_numbers = #tpu.dot_dimension_numbers<[1], [0], [0], [1], [0, 0, 1, 1], [], []>} : vector<288x104xf32>, vector<104x16xf32>, vector<288x16xf32> -> vector<288x16xf32>
    %179 = vector.extract_strided_slice %178 {offsets = [0, 0], sizes = [32, 16], strides = [1, 1]} : vector<288x16xf32> to vector<32x16xf32>
    %180 = vector.extract_strided_slice %178 {offsets = [32, 0], sizes = [32, 16], strides = [1, 1]} : vector<288x16xf32> to vector<32x16xf32>
    %181 = vector.extract_strided_slice %178 {offsets = [64, 0], sizes = [32, 16], strides = [1, 1]} : vector<288x16xf32> to vector<32x16xf32>
    %182 = vector.extract_strided_slice %178 {offsets = [96, 0], sizes = [32, 16], strides = [1, 1]} : vector<288x16xf32> to vector<32x16xf32>
    %183 = vector.extract_strided_slice %178 {offsets = [128, 0], sizes = [32, 16], strides = [1, 1]} : vector<288x16xf32> to vector<32x16xf32>
    %184 = vector.extract_strided_slice %178 {offsets = [160, 0], sizes = [32, 16], strides = [1, 1]} : vector<288x16xf32> to vector<32x16xf32>
    %185 = vector.extract_strided_slice %178 {offsets = [192, 0], sizes = [32, 16], strides = [1, 1]} : vector<288x16xf32> to vector<32x16xf32>
    %186 = vector.extract_strided_slice %178 {offsets = [224, 0], sizes = [32, 16], strides = [1, 1]} : vector<288x16xf32> to vector<32x16xf32>
    %187 = vector.extract_strided_slice %178 {offsets = [256, 0], sizes = [32, 16], strides = [1, 1]} : vector<288x16xf32> to vector<32x16xf32>
    %188 = tpu.concatenate %179, %180, %181, %182, %183, %184, %185, %186, %187 in 1 : vector<32x16xf32>, vector<32x16xf32>, vector<32x16xf32>, vector<32x16xf32>, vector<32x16xf32>, vector<32x16xf32>, vector<32x16xf32>, vector<32x16xf32>, vector<32x16xf32> -> vector<32x144xf32>
    %c0_63 = arith.constant 0 : index
    %c0_64 = arith.constant 0 : index
    %189 = vector.load %arg13[%c0_63, %c0_64] : memref<16x144xf32, #tpu.memory_space<vmem>>, vector<16x144xf32>
    %cst_65 = arith.constant dense<0.000000e+00> : vector<32x16xf32>
    %190 = tpu.matmul %188, %189, %cst_65 {dimension_numbers = #tpu.dot_dimension_numbers<[1], [1], [0], [0], [0, 0, 1, 0], [], []>} : vector<32x144xf32>, vector<16x144xf32>, vector<32x16xf32> -> vector<32x16xf32>
    %191 = vector.broadcast %7 : vector<1x16xf32> to vector<32x16xf32>
    %192 = arith.addf %190, %191 : vector<32x16xf32>
    %193 = arith.negf %192 : vector<32x16xf32>
    %194 = math.exp %193 : vector<32x16xf32>
    %cst_66 = arith.constant 1.000000e+00 : f32
    %195 = vector.broadcast %cst_66 : f32 to vector<32x16xf32>
    %196 = arith.addf %195, %194 : vector<32x16xf32>
    %197 = arith.divf %195, %196 : vector<32x16xf32>
    %198 = arith.mulf %192, %197 : vector<32x16xf32>
    %c0_67 = arith.constant 0 : index
    %c0_68 = arith.constant 0 : index
    %199 = vector.load %arg15[%c0_67, %c0_68] : memref<32x16xf32, #tpu.memory_space<vmem>>, vector<32x16xf32>
    tpu.vector_store %arg15[%c0_67, %c0_68], %198 {strides = array<i32>} : memref<32x16xf32, #tpu.memory_space<vmem>>, vector<32x16xf32>,
    return
  }
  func.func @transform_0(%arg0: i32) -> (i32, i32) {
    %c0_i32 = arith.constant 0 : i32
    %c0_i32_0 = arith.constant 0 : i32
    %c0_i32_1 = arith.constant 0 : i32
    return %c0_i32, %c0_i32_0 : i32, i32
  }
  func.func @transform_1(%arg0: i32) -> (i32, i32) {
    %c0_i32 = arith.constant 0 : i32
    %c0_i32_0 = arith.constant 0 : i32
    %c0_i32_1 = arith.constant 0 : i32
    return %c0_i32, %c0_i32_0 : i32, i32
  }
  func.func @transform_2(%arg0: i32) -> (i32, i32) {
    %c0_i32 = arith.constant 0 : i32
    %c0_i32_0 = arith.constant 0 : i32
    %c0_i32_1 = arith.constant 0 : i32
    return %c0_i32, %c0_i32_0 : i32, i32
  }
  func.func @transform_3(%arg0: i32) -> (i32, i32) {
    %c0_i32 = arith.constant 0 : i32
    %c0_i32_0 = arith.constant 0 : i32
    %c0_i32_1 = arith.constant 0 : i32
    return %c0_i32, %c0_i32_0 : i32, i32
  }
  func.func @transform_4(%arg0: i32) -> (i32, i32) {
    %c0_i32 = arith.constant 0 : i32
    %c0_i32_0 = arith.constant 0 : i32
    %c0_i32_1 = arith.constant 0 : i32
    return %c0_i32, %c0_i32_0 : i32, i32
  }
  func.func @transform_5(%arg0: i32) -> (i32, i32) {
    %c0_i32 = arith.constant 0 : i32
    %c0_i32_0 = arith.constant 0 : i32
    %c0_i32_1 = arith.constant 0 : i32
    return %c0_i32, %c0_i32_0 : i32, i32
  }
  func.func @transform_6(%arg0: i32) -> (i32, i32, i32) {
    %c0_i32 = arith.constant 0 : i32
    %c0_i32_0 = arith.constant 0 : i32
    %c0_i32_1 = arith.constant 0 : i32
    %c0_i32_2 = arith.constant 0 : i32
    return %c0_i32, %c0_i32_0, %c0_i32_1 : i32, i32, i32
  }
  func.func @transform_7(%arg0: i32) -> (i32, i32) {
    %c0_i32 = arith.constant 0 : i32
    %c0_i32_0 = arith.constant 0 : i32
    %c0_i32_1 = arith.constant 0 : i32
    return %c0_i32, %c0_i32_0 : i32, i32
  }
  func.func @transform_8(%arg0: i32) -> (i32, i32) {
    %c0_i32 = arith.constant 0 : i32
    %c0_i32_0 = arith.constant 0 : i32
    %c0_i32_1 = arith.constant 0 : i32
    return %c0_i32, %c0_i32_0 : i32, i32
  }
  func.func @transform_9(%arg0: i32) -> (i32, i32) {
    %c0_i32 = arith.constant 0 : i32
    %c0_i32_0 = arith.constant 0 : i32
    %c0_i32_1 = arith.constant 0 : i32
    return %c0_i32, %c0_i32_0 : i32, i32
  }
  func.func @transform_10(%arg0: i32) -> (i32, i32) {
    %c0_i32 = arith.constant 0 : i32
    %c0_i32_0 = arith.constant 0 : i32
    %c0_i32_1 = arith.constant 0 : i32
    return %c0_i32, %c0_i32_0 : i32, i32
  }
  func.func @transform_11(%arg0: i32) -> (i32, i32) {
    %c0_i32 = arith.constant 0 : i32
    %c0_i32_0 = arith.constant 0 : i32
    %c0_i32_1 = arith.constant 0 : i32
    return %c0_i32, %c0_i32_0 : i32, i32
  }
  func.func @transform_12(%arg0: i32) -> (i32, i32) {
    %c0_i32 = arith.constant 0 : i32
    %c0_i32_0 = arith.constant 0 : i32
    %c0_i32_1 = arith.constant 0 : i32
    return %c0_i32, %c0_i32_0 : i32, i32
  }
  func.func @transform_13(%arg0: i32) -> (i32, i32) {
    %c0_i32 = arith.constant 0 : i32
    %c0_i32_0 = arith.constant 0 : i32
    %c0_i32_1 = arith.constant 0 : i32
    return %c0_i32, %c0_i32_0 : i32, i32
  }
  func.func @transform_14(%arg0: i32) -> (i32, i32) {
    %c0_i32 = arith.constant 0 : i32
    %c0_i32_0 = arith.constant 0 : i32
    %c0_i32_1 = arith.constant 0 : i32
    return %c0_i32, %c0_i32_0 : i32, i32
  }
}

</mosaic_0001>

<bundles_post_ra>
// kernel: conv_lirt_forward.1
= control target key start
LH: loop header
LB: loop body
LE: loop exit
PB: predicated region body
PF: predicated region fallthrough
CT: control target
= control target key end

     0   :  { %v9322_v3 = vmov 0.0|0.0   ;;  %vm7198_vm0 = vmmov 0   ;;  %v9316_v9 = vmov 0.0   ;;  %s9301_s0 = inlined_call_operand.vmem [shape: f32[104,8], index: 0, kind: input, shape index: {}]   ;;  %s9302_s1 = inlined_call_operand.vmem [shape: bf16[936,104], index: 1, kind: input, shape index: {}]   ;;  %s9303_s2 = inlined_call_operand.vmem [shape: bf16[216,104], index: 2, kind: input, shape index: {}]   ;;  %s9304_s3 = inlined_call_operand.vmem [shape: bf16[288,104], index: 3, kind: input, shape index: {}]   ;;  %s9305_s4 = inlined_call_operand.vmem [shape: bf16[192,24], index: 4, kind: input, shape index: {}]   ;;  %s9306_s5 = inlined_call_operand.vmem [shape: bf16[104,24], index: 5, kind: input, shape index: {}]   ;;  %s9307_s6 = inlined_call_operand.vmem [shape: bf16[8,24,8], index: 6, kind: input, shape index: {}]   ;;  %s9308_s7 = inlined_call_operand.vmem [shape: f32[8,72], index: 7, kind: input, shape index: {}]   ;;  %s9309_s8 = inlined_call_operand.vmem [shape: f32[8,72], index: 8, kind: input, shape index: {}]   ;;  %s9310_s9 = inlined_call_operand.vmem [shape: f32[24,8], index: 9, kind: input, shape index: {}]   ;;  %s9311_s10 = inlined_call_operand.vmem [shape: f32[8,8], index: 10, kind: input, shape index: {}]   ;;  %s9312_s11 = inlined_call_operand.vmem [shape: f32[8,8], index: 11, kind: input, shape index: {}]   ;;  %s9313_s12 = inlined_call_operand.vmem [shape: f32[16,144], index: 12, kind: input, shape index: {}]   ;;  %s9314_s13 = inlined_call_operand.vmem [shape: f32[8,16], index: 13, kind: input, shape index: {}]   ;;  %s9315_s14 = inlined_call_operand.hbm [shape: f32[32,16], index: 14, kind: output, shape index: {}]  }
   0x1   :  { %v7300_v0 = vld [vmem:[%s9301_s0] sm:$0xff]  ;;  %v7305_v1 = vld [vmem:[%s9301_s0 + $0x8] sm:$0xff]  ;;  %v7310_v2 = vld [vmem:[%s9301_s0 + $0x10] sm:$0xff]  ;;  %6849 = vmatprep.subr.bf16.mxu0 %v9322_v3  ;;  %6075 = vmatprep.mubr.msk.f32.mxu0 %vm7198_vm0, %v9316_v9 }
   0x2   :  { %9332 = vst [vmem:[#allocation5_spill] sm:$0xff] %v7300_v0  ;;  %9333 = vst [vmem:[#allocation6_spill] sm:$0xff] %v7305_v1  ;;  %v6850_v5 = vpack.c.bf16 %v7305_v1, %v7300_v0  ;;  %v7320_v6 = vld [vmem:[%s9301_s0 + $0x18] sm:$0xff]  ;;  %v7325_v7 = vld [vmem:[%s9301_s0 + $0x20] sm:$0xff]  ;;  %6932 = vmatprep.subr.bf16.mxu1 %v9322_v3  ;;  %6423 = vmatprep.mubr.msk.f32.mxu1 %vm7198_vm0, %v9316_v9 }
   0x3   :  { %9334 = vst [vmem:[#allocation7_spill] sm:$0xff] %v7310_v2  ;;  %9335 = vst [vmem:[#allocation8_spill] sm:$0xff] %v7320_v6  ;;  %v7330_v8 = vld [vmem:[%s9301_s0 + $0x28] sm:$0xff]  ;;  %v7341_v12 = vld [vmem:[%s9301_s0 + $0x30] sm:$0xff]  ;;  %v6853_v15 = vpack.c.bf16 %v7320_v6, %v7310_v2 }
   0x4   :  { %9336 = vst [vmem:[#allocation9_spill] sm:$0xff] %v7325_v7  ;;  %9337 = vst [vmem:[#allocation10_spill] sm:$0xff] %v7330_v8  ;;  %v7346_v13 = vld [vmem:[%s9301_s0 + $0x38] sm:$0xff]  ;;  %v7351_v14 = vld [vmem:[%s9301_s0 + $0x40] sm:$0xff]  ;;  %6851 = vmatpush3.bf16.msra.mxu0 %v6850_v5  ;;  %6939 = vmatpush3.bf16.msra.mxu1 %v6850_v5  ;;  %v6856_v22 = vpack.c.bf16 %v7330_v8, %v7325_v7 }
   0x5   :  { %9338 = vst [vmem:[#allocation11_spill] sm:$0xff] %v7341_v12  ;;  %9339 = vst [vmem:[#allocation12_spill] sm:$0xff] %v7346_v13  ;;  %v7361_v17 = vld [vmem:[%s9301_s0 + $0x48] sm:$0xff]  ;;  %v7366_v18 = vld [vmem:[%s9301_s0 + $0x50] sm:$0xff]  ;;  %6852 = vmatprep.subr.bf16.mxu0 %v9322_v3  ;;  %6933 = vmatprep.subr.bf16.mxu1 %v9322_v3 }
   0x6   :  { %9340 = vst [vmem:[#allocation13_spill] sm:$0xff] %v7351_v14  ;;  %9341 = vst [vmem:[#allocation14_spill] sm:$0xff] %v7361_v17  ;;  %v7371_v19 = vld [vmem:[%s9301_s0 + $0x58] sm:$0xff] }
   0x7   :  { %9342 = vst [vmem:[#allocation15_spill] sm:$0xff] %v7366_v18  ;;  %9343 = vst [vmem:[#allocation16_spill] sm:$0xff] %v7371_v19 }
   0x8   :  { %6854 = vmatpush3.bf16.msra.mxu0 %v6853_v15  ;;  %6940 = vmatpush3.bf16.msra.mxu1 %v6853_v15 }
   0x9   :  { %6855 = vmatprep.subr.bf16.mxu0 %v9322_v3  ;;  %6934 = vmatprep.subr.bf16.mxu1 %v9322_v3 }
   0xa   :  { %19 = vsyncpa [#allocation3], 0  ;;  %v6859_v23 = vpack.c.bf16 %v7346_v13, %v7341_v12  ;;  %v6862_v24 = vpack.c.bf16 %v7361_v17, %v7351_v14  ;;  %v6865_v25 = vpack.c.bf16 %v7371_v19, %v7366_v18  ;;  %v5165_v26 = vld [vmem:[%s9302_s1] sm:$0xff]   ;;  %vm296_vm1 = vcmask 850944   ;;  %v5624_v30 = vld [vmem:[%s9302_s1 + $0x8] sm:$0xff]   ;;  %s7200_s27 = smov 8  }
   0xb   :  { %v60_v27 = vld [vmem:[%s9301_s0 + $0x60] sm:$0xff]  ;;  %v5166_v28 = vunpack.c.l.bf16 %v5165_v26  ;;  %v5167_v29 = vunpack.c.h.bf16 %v5165_v26  ;;  %v5170_v31 = vunpack.c.l.bf16 %v5624_v30  ;;  %v5171_v32 = vunpack.c.h.bf16 %v5624_v30  ;;  %v5625_v33 = vld [vmem:[%s9302_s1 + $0x10] sm:$0xff]   ;;  %v5626_v36 = vld [vmem:[%s9302_s1 + $0x18] sm:$0xff]   ;;  %s7201_s26 = smov 16   ;;  %s7202_s28 = smov 24  }
   0xc   :  { %6857 = vmatpush3.bf16.msra.mxu0 %v6856_v22  ;;  %6941 = vmatpush3.bf16.msra.mxu1 %v6856_v22  ;;  %v5174_v34 = vunpack.c.l.bf16 %v5625_v33  ;;  %v5175_v35 = vunpack.c.h.bf16 %v5625_v33  ;;  %v5178_v37 = vunpack.c.l.bf16 %v5626_v36  ;;  %v5179_v38 = vunpack.c.h.bf16 %v5626_v36  ;;  %v5627_v39 = vld [vmem:[%s9302_s1 + $0x20] sm:$0xff]   ;;  %v5628_v42 = vld [vmem:[%s9302_s1 + $0x28] sm:$0xff]   ;;  %v5629_v45 = vld [vmem:[%s9302_s1 + $0x30] sm:$0xff]   ;;  %s7203_s30 = smov 32   ;;  %s7205_s23 = smov 48  }
   0xd   :  { %6858 = vmatprep.subr.bf16.mxu0 %v9322_v3  ;;  %6935 = vmatprep.subr.bf16.mxu1 %v9322_v3  ;;  %v5182_v40 = vunpack.c.l.bf16 %v5627_v39  ;;  %v5183_v41 = vunpack.c.h.bf16 %v5627_v39  ;;  %v5186_v43 = vunpack.c.l.bf16 %v5628_v42  ;;  %v5187_v44 = vunpack.c.h.bf16 %v5628_v42  ;;  %v5630_v48 = vld [vmem:[%s9302_s1 + $0x38] sm:$0xff]   ;;  %v5631_v51 = vld [vmem:[%s9302_s1 + $0x40] sm:$0xff]   ;;  %v5632_v54 = vld [vmem:[%s9302_s1 + $0x48] sm:$0xff]   ;;  %s7206_s24 = smov 56   ;;  %s7210_s18 = smov 112  }
   0xe   :  { %v5190_v46 = vunpack.c.l.bf16 %v5629_v45  ;;  %v5191_v47 = vunpack.c.h.bf16 %v5629_v45  ;;  %v5194_v49 = vunpack.c.l.bf16 %v5630_v48  ;;  %v5195_v50 = vunpack.c.h.bf16 %v5630_v48  ;;  %v5633_v57 = vld [vmem:[%s9302_s1 + $0x50] sm:$0xff]   ;;  %v5634_v60 = vld [vmem:[%s9302_s1 + $0x58] sm:$0xff]   ;;  %v5635_v63 = vld [vmem:[%s9302_s1 + $0x60] sm:$0xff]  }
   0xf   :  { %v5198_v52 = vunpack.c.l.bf16 %v5631_v51  ;;  %v5199_v53 = vunpack.c.h.bf16 %v5631_v51  ;;  %v5202_v55 = vunpack.c.l.bf16 %v5632_v54  ;;  %v5203_v56 = vunpack.c.h.bf16 %v5632_v54  ;;  %v5636_v22 = vld [vmem:[%s9302_s1 + $0x68] sm:$0xff]  }
  0x10   :  { %6860 = vmatpush3.bf16.msra.mxu0 %v6859_v23  ;;  %6942 = vmatpush3.bf16.msra.mxu1 %v6859_v23  ;;  %v5206_v58 = vunpack.c.l.bf16 %v5633_v57  ;;  %v5207_v59 = vunpack.c.h.bf16 %v5633_v57  ;;  %v5210_v61 = vunpack.c.l.bf16 %v5634_v60  ;;  %v5211_v62 = vunpack.c.h.bf16 %v5634_v60 }
  0x11   :  { %6861 = vmatprep.subr.bf16.mxu0 %v9322_v3  ;;  %6936 = vmatprep.subr.bf16.mxu1 %v9322_v3  ;;  %v5214_v5 = vunpack.c.l.bf16 %v5635_v63  ;;  %v5215_v15 = vunpack.c.h.bf16 %v5635_v63  ;;  %v5218_v23 = vunpack.c.l.bf16 %v5636_v22  ;;  %vm1827_vm2 = vcmask 588800  }
  0x12   :  { %vm1714_vm3 = vcmask 64512   ;;  %vm1728_vm4 = vcmask 130048   ;;  %vm1742_vm5 = vcmask 195584   ;;  %vm1756_vm6 = vcmask 261120  }
  0x13   :  { %vm1770_vm7 = vcmask 326656   ;;  %vm1784_vm8 = vcmask 392192   ;;  %vm1798_vm9 = vcmask 457728   ;;  %vm1812_vm10 = vcmask 523264   ;;  %vm8682_vm11 = vmpackc.low %vm1714_vm3, %vm1714_vm3 }
  0x14   :  { %6863 = vmatpush3.bf16.msra.mxu0 %v6862_v24  ;;  %6943 = vmatpush3.bf16.msra.mxu1 %v6862_v24  ;;  %v5219_v24 = vunpack.c.h.bf16 %v5636_v22 }
  0x15   :  { %6864 = vmatprep.subr.bf16.mxu0 %v9322_v3  ;;  %6937 = vmatprep.subr.bf16.mxu1 %v9322_v3 }
  0x18   :  { %6866 = vmatpush3.bf16.msra.mxu0 %v6865_v25  ;;  %6944 = vmatpush3.bf16.msra.mxu1 %v6865_v25  ;;  %v5637_v25 = vld [vmem:[%s9302_s1 + $0x70] sm:$0xff]  }
  0x19   :  { %6073 = vmatprep.subr.mxu0 %v9316_v9  ;;  %6938 = vmatprep.subr.mxu1 %v9316_v9  ;;  %v5222_v26 = vunpack.c.l.bf16 %v5637_v25 }
  0x1c   :  { %6074 = vmatpush3.msra.mxu0 %v60_v27  ;;  %6945 = vmatpush3.msra.mxu1 %v60_v27  ;;  %v5223_v27 = vunpack.c.h.bf16 %v5637_v25 }
  0x1d   :  { %6076 = vmatmul.mubr.msk.f32.vlgmr.msra.gmra.mrb[0].mxu0 %vm296_vm1, %v5166_v28  ;;  %6426 = vmatprep.subr.mxu1 %v9316_v9  ;;  %v5638_v28 = vld [vmem:[%s9302_s1 + $0x78] sm:$0xff]  }
  0x1e   :  { %6078 = vmatprep.mubr.msk.f32.mxu0 %vm7198_vm0, %v9316_v9  ;;  %v5227_v30 = vunpack.c.h.bf16 %v5638_v28 }
  0x21   :  { %6079 = vmatmul.mubr.msk.f32.gmra.mrb[2].mxu0 %vm296_vm1, %v5167_v29  ;;  %v5226_v29 = vunpack.c.l.bf16 %v5638_v28 }
  0x22   :  { %6081 = vmatprep.mubr.msk.f32.mxu0 %vm7198_vm0, %v9316_v9 }
  0x25   :  { %6082 = vmatmul.mubr.msk.f32.gmra.mrb[4].mxu0 %vm296_vm1, %v5170_v31  ;;  %v5639_v31 = vld [vmem:[%s9302_s1 + $0x80] sm:$0xff]  }
  0x26   :  { %6084 = vmatprep.mubr.msk.f32.mxu0 %vm7198_vm0, %v9316_v9  ;;  %v5231_v33 = vunpack.c.h.bf16 %v5639_v31 }
  0x29   :  { %6085 = vmatmul.mubr.msk.f32.gmra.mrb[6].mxu0 %vm296_vm1, %v5171_v32  ;;  %v5230_v32 = vunpack.c.l.bf16 %v5639_v31 }
  0x2a   :  { %6087 = vmatprep.mubr.msk.f32.mxu0 %vm7198_vm0, %v9316_v9 }
  0x2d   :  { %6088 = vmatmul.mubr.msk.f32.gmra.mrb[8].mxu0 %vm296_vm1, %v5174_v34  ;;  %v5640_v34 = vld [vmem:[%s9302_s1 + $0x88] sm:$0xff]  }
  0x2e   :  { %6090 = vmatprep.mubr.msk.f32.mxu0 %vm7198_vm0, %v9316_v9  ;;  %v5235_v36 = vunpack.c.h.bf16 %v5640_v34 }
  0x31   :  { %6091 = vmatmul.mubr.msk.f32.gmra.mrb[10].mxu0 %vm296_vm1, %v5175_v35  ;;  %v5234_v35 = vunpack.c.l.bf16 %v5640_v34  ;;  %v5652_v34 = vld [vmem:[%s9302_s1 + $0xe8] sm:$0xff]  }
  0x32   :  { %6093 = vmatprep.mubr.msk.f32.mxu0 %vm7198_vm0, %v9316_v9 }
  0x35   :  { %6094 = vmatmul.mubr.msk.f32.gmra.mrb[12].mxu0 %vm296_vm1, %v5178_v37  ;;  %v5641_v37 = vld [vmem:[%s9302_s1 + $0x90] sm:$0xff]  }
  0x36   :  { %6096 = vmatprep.mubr.msk.f32.mxu0 %vm7198_vm0, %v9316_v9  ;;  %v5239_v39 = vunpack.c.h.bf16 %v5641_v37 }
  0x39   :  { %6097 = vmatmul.mubr.msk.f32.gmra.mrb[14].mxu0 %vm296_vm1, %v5179_v38  ;;  %v5238_v38 = vunpack.c.l.bf16 %v5641_v37  ;;  %v5282_v37 = vunpack.c.l.bf16 %v5652_v34 }
  0x3a   :  { %6099 = vmatprep.mubr.msk.f32.mxu0 %vm7198_vm0, %v9316_v9 }
  0x3d   :  { %6100 = vmatmul.mubr.msk.f32.gmra.mrb[16].mxu0 %vm296_vm1, %v5182_v40  ;;  %v5642_v40 = vld [vmem:[%s9302_s1 + $0x98] sm:$0xff]  }
  0x3e   :  { %6102 = vmatprep.mubr.msk.f32.mxu0 %vm7198_vm0, %v9316_v9  ;;  %v5243_v42 = vunpack.c.h.bf16 %v5642_v40 }
  0x41   :  { %6103 = vmatmul.mubr.msk.f32.gmra.mrb[18].mxu0 %vm296_vm1, %v5183_v41  ;;  %v5242_v41 = vunpack.c.l.bf16 %v5642_v40  ;;  %v5283_v40 = vunpack.c.h.bf16 %v5652_v34 }
  0x42   :  { %6105 = vmatprep.mubr.msk.f32.mxu0 %vm7198_vm0, %v9316_v9 }
  0x45   :  { %6106 = vmatmul.mubr.msk.f32.gmra.mrb[20].mxu0 %vm296_vm1, %v5186_v43  ;;  %v5643_v43 = vld [vmem:[%s9302_s1 + $0xa0] sm:$0xff]  }
  0x46   :  { %6108 = vmatprep.mubr.msk.f32.mxu0 %vm7198_vm0, %v9316_v9  ;;  %v5247_v45 = vunpack.c.h.bf16 %v5643_v43 }
  0x49   :  { %6109 = vmatmul.mubr.msk.f32.gmra.mrb[22].mxu0 %vm296_vm1, %v5187_v44  ;;  %v5246_v44 = vunpack.c.l.bf16 %v5643_v43 }
  0x4a   :  { %6111 = vmatprep.mubr.msk.f32.mxu0 %vm7198_vm0, %v9316_v9 }
  0x4d   :  { %6112 = vmatmul.mubr.msk.f32.gmra.mrb[24].mxu0 %vm296_vm1, %v5190_v46  ;;  %v5644_v46 = vld [vmem:[%s9302_s1 + $0xa8] sm:$0xff]  }
  0x4e   :  { %6114 = vmatprep.mubr.msk.f32.mxu0 %vm7198_vm0, %v9316_v9  ;;  %v5251_v48 = vunpack.c.h.bf16 %v5644_v46 }
  0x51   :  { %6115 = vmatmul.mubr.msk.f32.gmra.mrb[26].mxu0 %vm296_vm1, %v5191_v47  ;;  %v5250_v47 = vunpack.c.l.bf16 %v5644_v46 }
  0x52   :  { %6117 = vmatprep.mubr.msk.f32.mxu0 %vm7198_vm0, %v9316_v9 }
  0x55   :  { %6118 = vmatmul.mubr.msk.f32.gmra.mrb[28].mxu0 %vm296_vm1, %v5194_v49  ;;  %v5645_v49 = vld [vmem:[%s9302_s1 + $0xb0] sm:$0xff]  }
  0x56   :  { %6120 = vmatprep.mubr.msk.f32.mxu0 %vm7198_vm0, %v9316_v9  ;;  %v5255_v51 = vunpack.c.h.bf16 %v5645_v49 }
  0x59   :  { %6121 = vmatmul.mubr.msk.f32.gmra.mrb[30].mxu0 %vm296_vm1, %v5195_v50  ;;  %v5254_v50 = vunpack.c.l.bf16 %v5645_v49 }
  0x5a   :  { %6123 = vmatprep.mubr.msk.f32.mxu0 %vm7198_vm0, %v9316_v9 }
  0x5d   :  { %6124 = vmatmul.mubr.msk.f32.gmra.mrb[32].mxu0 %vm296_vm1, %v5198_v52  ;;  %v5646_v52 = vld [vmem:[%s9302_s1 + $0xb8] sm:$0xff]  }
  0x5e   :  { %6126 = vmatprep.mubr.msk.f32.mxu0 %vm7198_vm0, %v9316_v9  ;;  %v5259_v54 = vunpack.c.h.bf16 %v5646_v52 }
  0x61   :  { %6127 = vmatmul.mubr.msk.f32.gmra.mrb[34].mxu0 %vm296_vm1, %v5199_v53  ;;  %v5258_v53 = vunpack.c.l.bf16 %v5646_v52 }
  0x62   :  { %6129 = vmatprep.mubr.msk.f32.mxu0 %vm7198_vm0, %v9316_v9 }
  0x65   :  { %6130 = vmatmul.mubr.msk.f32.gmra.mrb[36].mxu0 %vm296_vm1, %v5202_v55  ;;  %v5647_v55 = vld [vmem:[%s9302_s1 + $0xc0] sm:$0xff]  }
  0x66   :  { %6132 = vmatprep.mubr.msk.f32.mxu0 %vm7198_vm0, %v9316_v9  ;;  %v5263_v57 = vunpack.c.h.bf16 %v5647_v55 }
  0x69   :  { %6133 = vmatmul.mubr.msk.f32.gmra.mrb[38].mxu0 %vm296_vm1, %v5203_v56  ;;  %v5262_v56 = vunpack.c.l.bf16 %v5647_v55  ;;  %v5655_v55 = vld [vmem:[%s9302_s1 + $0x100] sm:$0xff]  }
  0x6a   :  { %6135 = vmatprep.mubr.msk.f32.mxu0 %vm7198_vm0, %v9316_v9 }
  0x6d   :  { %6136 = vmatmul.mubr.msk.f32.gmra.mrb[40].mxu0 %vm296_vm1, %v5206_v58  ;;  %v5648_v58 = vld [vmem:[%s9302_s1 + $0xc8] sm:$0xff]  }
  0x6e   :  { %6138 = vmatprep.mubr.msk.f32.mxu0 %vm7198_vm0, %v9316_v9  ;;  %v5267_v60 = vunpack.c.h.bf16 %v5648_v58 }
  0x71   :  { %6139 = vmatmul.mubr.msk.f32.gmra.mrb[42].mxu0 %vm296_vm1, %v5207_v59  ;;  %v5266_v59 = vunpack.c.l.bf16 %v5648_v58  ;;  %v5294_v58 = vunpack.c.l.bf16 %v5655_v55 }
  0x72   :  { %6141 = vmatprep.mubr.msk.f32.mxu0 %vm7198_vm0, %v9316_v9 }
  0x75   :  { %6142 = vmatmul.mubr.msk.f32.gmra.mrb[44].mxu0 %vm296_vm1, %v5210_v61  ;;  %v5649_v61 = vld [vmem:[%s9302_s1 + $0xd0] sm:$0xff]  }
  0x76   :  { %6144 = vmatprep.mubr.msk.f32.mxu0 %vm7198_vm0, %v9316_v9  ;;  %v5271_v63 = vunpack.c.h.bf16 %v5649_v61 }
  0x79   :  { %6145 = vmatmul.mubr.msk.f32.gmra.mrb[46].mxu0 %vm296_vm1, %v5211_v62  ;;  %v5270_v62 = vunpack.c.l.bf16 %v5649_v61  ;;  %v5295_v61 = vunpack.c.h.bf16 %v5655_v55 }
  0x7a   :  { %6147 = vmatprep.mubr.msk.f32.mxu0 %vm7198_vm0, %v9316_v9 }
  0x7d   :  { %6148 = vmatmul.mubr.msk.f32.gmra.mrb[48].mxu0 %vm296_vm1, %v5214_v5  ;;  %v5650_v5 = vld [vmem:[%s9302_s1 + $0xd8] sm:$0xff]  }
  0x7e   :  { %6150 = vmatprep.mubr.msk.f32.mxu0 %vm7198_vm0, %v9316_v9 }
  0x81   :  { %6151 = vmatmul.mubr.msk.f32.gmra.mrb[50].mxu0 %vm296_vm1, %v5215_v15 }
  0x82   :  { %6153 = vmatprep.mubr.msk.f32.mxu0 %vm7198_vm0, %v9316_v9 }
  0x85   :  { %6154 = vmatmul.mubr.msk.f32.gmra.mrb[52].mxu0 %vm296_vm1, %v5218_v23  ;;  %v5274_v23 = vunpack.c.l.bf16 %v5650_v5 }
  0x86   :  { %6156 = vmatprep.mubr.msk.f32.mxu0 %vm7198_vm0, %v9316_v9 }
  0x89   :  { %6157 = vmatmul.mubr.msk.f32.gmra.mrb[54].mxu0 %vm296_vm1, %v5219_v24 }
  0x8a   :  { %6159 = vmatprep.mubr.msk.f32.mxu0 %vm7198_vm0, %v9316_v9 }
  0x8d   :  { %6160 = vmatmul.mubr.msk.f32.gmra.mrb[56].mxu0 %vm296_vm1, %v5222_v26  ;;  %v5275_v26 = vunpack.c.h.bf16 %v5650_v5 }
  0x8e   :  { %6162 = vmatprep.mubr.msk.f32.mxu0 %vm7198_vm0, %v9316_v9 }
  0x91   :  { %6163 = vmatmul.mubr.msk.f32.gmra.mrb[58].mxu0 %vm296_vm1, %v5223_v27  ;;  %v5651_v27 = vld [vmem:[%s9302_s1 + $0xe0] sm:$0xff]  }
  0x92   :  { %6165 = vmatprep.mubr.msk.f32.mxu0 %vm7198_vm0, %v9316_v9 }
  0x95   :  { %6166 = vmatmul.mubr.msk.f32.gmra.mrb[60].mxu0 %vm296_vm1, %v5226_v29 }
  0x96   :  { %6168 = vmatprep.mubr.msk.f32.mxu0 %vm7198_vm0, %v9316_v9 }
  0x99   :  { %6169 = vmatmul.mubr.msk.f32.gmra.mrb[62].mxu0 %vm296_vm1, %v5227_v30  ;;  %v5278_v30 = vunpack.c.l.bf16 %v5651_v27 }
  0x9a   :  { %6171 = vmatprep.mubr.msk.f32.mxu0 %vm7198_vm0, %v9316_v9 }
  0x9d   :  { %6172 = vmatmul.mubr.msk.f32.gmra.mrb[64].mxu0 %vm296_vm1, %v5230_v32 }
  0x9e   :  { %6174 = vmatprep.mubr.msk.f32.mxu0 %vm7198_vm0, %v9316_v9 }
  0xa1   :  { %6175 = vmatmul.mubr.msk.f32.gmra.mrb[66].mxu0 %vm296_vm1, %v5231_v33  ;;  %v5279_v33 = vunpack.c.h.bf16 %v5651_v27  ;;  %v5657_v27 = vld [vmem:[%s9302_s1 + $0x110] sm:$0xff]  }
  0xa2   :  { %6177 = vmatprep.mubr.msk.f32.mxu0 %vm7198_vm0, %v9316_v9 }
  0xa5   :  { %6178 = vmatmul.mubr.msk.f32.gmra.mrb[68].mxu0 %vm296_vm1, %v5234_v35 }
  0xa6   :  { %6180 = vmatprep.mubr.msk.f32.mxu0 %vm7198_vm0, %v9316_v9 }
  0xa9   :  { %6181 = vmatmul.mubr.msk.f32.gmra.mrb[70].mxu0 %vm296_vm1, %v5235_v36 }
  0xaa   :  { %6183 = vmatprep.mubr.msk.f32.mxu0 %vm7198_vm0, %v9316_v9 }
  0xad   :  { %6184 = vmatmul.mubr.msk.f32.gmra.mrb[72].mxu0 %vm296_vm1, %v5238_v38 }
  0xae   :  { %6186 = vmatprep.mubr.msk.f32.mxu0 %vm7198_vm0, %v9316_v9 }
  0xb1   :  { %6187 = vmatmul.mubr.msk.f32.gmra.mrb[74].mxu0 %vm296_vm1, %v5239_v39 }
  0xb2   :  { %6189 = vmatprep.mubr.msk.f32.mxu0 %vm7198_vm0, %v9316_v9 }
  0xb5   :  { %6190 = vmatmul.mubr.msk.f32.gmra.mrb[76].mxu0 %vm296_vm1, %v5242_v41  ;;  %v5653_v41 = vld [vmem:[%s9302_s1 + $0xf0] sm:$0xff]  }
  0xb6   :  { %6192 = vmatprep.mubr.msk.f32.mxu0 %vm7198_vm0, %v9316_v9 }
  0xb9   :  { %6193 = vmatmul.mubr.msk.f32.gmra.mrb[78].mxu0 %vm296_vm1, %v5243_v42 }
  0xba   :  { %6195 = vmatprep.mubr.msk.f32.mxu0 %vm7198_vm0, %v9316_v9 }
  0xbd   :  { %6196 = vmatmul.mubr.msk.f32.gmra.mrb[80].mxu0 %vm296_vm1, %v5246_v44  ;;  %v5286_v44 = vunpack.c.l.bf16 %v5653_v41 }
  0xbe   :  { %6198 = vmatprep.mubr.msk.f32.mxu0 %vm7198_vm0, %v9316_v9 }
  0xc1   :  { %6199 = vmatmul.mubr.msk.f32.gmra.mrb[82].mxu0 %vm296_vm1, %v5247_v45 }
  0xc2   :  { %6201 = vmatprep.mubr.msk.f32.mxu0 %vm7198_vm0, %v9316_v9 }
  0xc5   :  { %6202 = vmatmul.mubr.msk.f32.gmra.mrb[84].mxu0 %vm296_vm1, %v5250_v47  ;;  %v5287_v47 = vunpack.c.h.bf16 %v5653_v41 }
  0xc6   :  { %6204 = vmatprep.mubr.msk.f32.mxu0 %vm7198_vm0, %v9316_v9 }
  0xc9   :  { %6205 = vmatmul.mubr.msk.f32.gmra.mrb[86].mxu0 %vm296_vm1, %v5251_v48  ;;  %v5654_v48 = vld [vmem:[%s9302_s1 + $0xf8] sm:$0xff]  }
  0xca   :  { %6207 = vmatprep.mubr.msk.f32.mxu0 %vm7198_vm0, %v9316_v9 }
  0xcd   :  { %6208 = vmatmul.mubr.msk.f32.gmra.mrb[88].mxu0 %vm296_vm1, %v5254_v50 }
  0xce   :  { %6210 = vmatprep.mubr.msk.f32.mxu0 %vm7198_vm0, %v9316_v9 }
  0xd1   :  { %6211 = vmatmul.mubr.msk.f32.gmra.mrb[90].mxu0 %vm296_vm1, %v5255_v51  ;;  %v5290_v51 = vunpack.c.l.bf16 %v5654_v48 }
  0xd2   :  { %6213 = vmatprep.mubr.msk.f32.mxu0 %vm7198_vm0, %v9316_v9 }
  0xd5   :  { %6214 = vmatmul.mubr.msk.f32.gmra.mrb[92].mxu0 %vm296_vm1, %v5258_v53 }
  0xd6   :  { %6216 = vmatprep.mubr.msk.f32.mxu0 %vm7198_vm0, %v9316_v9 }
  0xd9   :  { %6217 = vmatmul.mubr.msk.f32.gmra.mrb[94].mxu0 %vm296_vm1, %v5259_v54  ;;  %v5291_v54 = vunpack.c.h.bf16 %v5654_v48 }
  0xda   :  { %6219 = vmatprep.mubr.msk.f32.mxu0 %vm7198_vm0, %v9316_v9 }
  0xdd   :  { %6220 = vmatmul.mubr.msk.f32.gmra.mrb[96].mxu0 %vm296_vm1, %v5262_v56 }
  0xde   :  { %6222 = vmatprep.mubr.msk.f32.mxu0 %vm7198_vm0, %v9316_v9 }
  0xe1   :  { %6223 = vmatmul.mubr.msk.f32.gmra.mrb[98].mxu0 %vm296_vm1, %v5263_v57 }
  0xe2   :  { %6225 = vmatprep.mubr.msk.f32.mxu0 %vm7198_vm0, %v9316_v9 }
  0xe5   :  { %6226 = vmatmul.mubr.msk.f32.gmra.mrb[100].mxu0 %vm296_vm1, %v5266_v59 }
  0xe6   :  { %6228 = vmatprep.mubr.msk.f32.mxu0 %vm7198_vm0, %v9316_v9 }
  0xe9   :  { %6229 = vmatmul.mubr.msk.f32.gmra.mrb[102].mxu0 %vm296_vm1, %v5267_v60 }
  0xea   :  { %6231 = vmatprep.mubr.msk.f32.mxu0 %vm7198_vm0, %v9316_v9 }
  0xed   :  { %6232 = vmatmul.mubr.msk.f32.gmra.mrb[104].mxu0 %vm296_vm1, %v5270_v62  ;;  %v5656_v62 = vld [vmem:[%s9302_s1 + $0x108] sm:$0xff]  }
  0xee   :  { %6234 = vmatprep.mubr.msk.f32.mxu0 %vm7198_vm0, %v9316_v9 }
  0xf0   :  { %v7646_v15 = vpop.f32.mrb[0].mxu0 }
  0xf1   :  { %v6077_v22 = vpop.f32.mrb[1].mxu0  ;;  %6235 = vmatmul.mubr.msk.f32.gmra.mrb[106].mxu0 %vm296_vm1, %v5271_v63 }
  0xf2   :  { %6237 = vmatprep.mubr.msk.f32.mxu0 %vm7198_vm0, %v9316_v9  ;;  %v5298_v22 = vunpack.c.l.bf16 %v5656_v62 }
  0xf4   :  { %v7651_v24 = vpop.f32.mrb[2].mxu0 }
  0xf5   :  { %v6080_v25 = vpop.f32.mrb[3].mxu0  ;;  %6238 = vmatmul.mubr.msk.f32.gmra.mrb[108].mxu0 %vm296_vm1, %v5274_v23 }
  0xf6   :  { %6240 = vmatprep.mubr.msk.f32.mxu0 %vm7198_vm0, %v9316_v9 }
  0xf8   :  { %v7659_v28 = vpop.f32.mrb[4].mxu0 }
  0xf9   :  { %v6083_v29 = vpop.f32.mrb[5].mxu0  ;;  %6241 = vmatmul.mubr.msk.f32.gmra.mrb[110].mxu0 %vm296_vm1, %v5275_v26  ;;  %v5299_v26 = vunpack.c.h.bf16 %v5656_v62 }
  0xfa   :  { %6243 = vmatprep.mubr.msk.f32.mxu0 %vm7198_vm0, %v9316_v9 }
  0xfc   :  { %v7664_v31 = vpop.f32.mrb[6].mxu0 }
  0xfd   :  { %v6086_v32 = vpop.f32.mrb[7].mxu0  ;;  %6244 = vmatmul.mubr.msk.f32.gmra.mrb[112].mxu0 %vm296_vm1, %v5278_v30 }
  0xfe   :  { %6246 = vmatprep.mubr.msk.f32.mxu0 %vm7198_vm0, %v9316_v9  ;;  %v5302_v32 = vunpack.c.l.bf16 %v5657_v27 }
 0x100   :  { %v7672_v35 = vpop.f32.mrb[8].mxu0 }
 0x101   :  { %v6089_v36 = vpop.f32.mrb[9].mxu0  ;;  %6247 = vmatmul.mubr.msk.f32.gmra.mrb[114].mxu0 %vm296_vm1, %v5279_v33 }
 0x102   :  { %6249 = vmatprep.mubr.msk.f32.mxu0 %vm7198_vm0, %v9316_v9  ;;  %v5303_v36 = vunpack.c.h.bf16 %v5657_v27 }
 0x104   :  { %v7677_v38 = vpop.f32.mrb[10].mxu0 }
 0x105   :  { %v6092_v39 = vpop.f32.mrb[11].mxu0  ;;  %6250 = vmatmul.mubr.msk.f32.gmra.mrb[116].mxu0 %vm296_vm1, %v5282_v37  ;;  %v5658_v37 = vld [vmem:[%s9302_s1 + $0x118] sm:$0xff]  }
 0x106   :  { %6252 = vmatprep.mubr.msk.f32.mxu0 %vm7198_vm0, %v9316_v9  ;;  %v5306_v41 = vunpack.c.l.bf16 %v5658_v37 }
 0x108   :  { %v7685_v42 = vpop.f32.mrb[12].mxu0 }
 0x109   :  { %v6095_v43 = vpop.f32.mrb[13].mxu0  ;;  %6253 = vmatmul.mubr.msk.f32.gmra.mrb[118].mxu0 %vm296_vm1, %v5283_v40 }
 0x10a   :  { %6255 = vmatprep.mubr.msk.f32.mxu0 %vm7198_vm0, %v9316_v9 }
 0x10c   :  { %v7690_v45 = vpop.f32.mrb[14].mxu0 }
 0x10d   :  { %v6098_v46 = vpop.f32.mrb[15].mxu0  ;;  %6256 = vmatmul.mubr.msk.f32.gmra.mrb[120].mxu0 %vm296_vm1, %v5286_v44 }
 0x10e   :  { %6258 = vmatprep.mubr.msk.f32.mxu0 %vm7198_vm0, %v9316_v9  ;;  %v5307_v46 = vunpack.c.h.bf16 %v5658_v37 }
 0x110   :  { %v7698_v49 = vpop.f32.mrb[16].mxu0 }
 0x111   :  { %9344 = vst [vmem:[#allocation17_spill] sm:$0xff] %v7698_v49  ;;  %v6101_v50 = vpop.f32.mrb[17].mxu0  ;;  %6259 = vmatmul.mubr.msk.f32.gmra.mrb[122].mxu0 %vm296_vm1, %v5287_v47  ;;  %v5659_v47 = vld [vmem:[%s9302_s1 + $0x120] sm:$0xff]  }
 0x112   :  { %6261 = vmatprep.mubr.msk.f32.mxu0 %vm7198_vm0, %v9316_v9  ;;  %v5311_v55 = vunpack.c.h.bf16 %v5659_v47 }
 0x114   :  { %v7703_v52 = vpop.f32.mrb[18].mxu0 }
 0x115   :  { %9345 = vst [vmem:[#allocation18_spill] sm:$0xff] %v7703_v52  ;;  %v6104_v53 = vpop.f32.mrb[19].mxu0  ;;  %6262 = vmatmul.mubr.msk.f32.gmra.mrb[124].mxu0 %vm296_vm1, %v5290_v51  ;;  %v5310_v51 = vunpack.c.l.bf16 %v5659_v47 }
 0x116   :  { %6264 = vmatprep.mubr.msk.f32.mxu0 %vm7198_vm0, %v9316_v9 }
 0x118   :  { %v7711_v56 = vpop.f32.mrb[20].mxu0 }
 0x119   :  { %9346 = vst [vmem:[#allocation19_spill] sm:$0xff] %v7711_v56  ;;  %v6107_v57 = vpop.f32.mrb[21].mxu0  ;;  %6265 = vmatmul.mubr.msk.f32.gmra.mrb[126].mxu0 %vm296_vm1, %v5291_v54 }
 0x11a   :  { %6267 = vmatprep.mubr.msk.f32.mxu0 %vm7198_vm0, %v9316_v9  ;;  %v5660_v57 = vld [vmem:[%s9302_s1 + $0x128] sm:$0xff]  }
 0x11c   :  { %v7716_v59 = vpop.f32.mrb[22].mxu0 }
 0x11d   :  { %9347 = vst [vmem:[#allocation20_spill] sm:$0xff] %v7716_v59  ;;  %v6110_v60 = vpop.f32.mrb[23].mxu0  ;;  %6268 = vmatmul.mubr.msk.f32.gmra.mrb[128].mxu0 %vm296_vm1, %v5294_v58 }
 0x11e   :  { %6270 = vmatprep.mubr.msk.f32.mxu0 %vm7198_vm0, %v9316_v9 }
 0x120   :  { %v7724_v63 = vpop.f32.mrb[24].mxu0 }
 0x121   :  { %9348 = vst [vmem:[#allocation21_spill] sm:$0xff] %v7724_v63  ;;  %v6113_v5 = vpop.f32.mrb[25].mxu0  ;;  %6271 = vmatmul.mubr.msk.f32.gmra.mrb[130].mxu0 %vm296_vm1, %v5295_v61  ;;  %v5314_v61 = vunpack.c.l.bf16 %v5660_v57 }
 0x122   :  { %6273 = vmatprep.mubr.msk.f32.mxu0 %vm7198_vm0, %v9316_v9 }
 0x124   :  { %v779_v23 = vpop.f32.mrb[26].mxu0 }
 0x125   :  { %6274 = vmatmul.mubr.msk.f32.gmra.mrb[132].mxu0 %vm296_vm1, %v5298_v22  ;;  %1311 = vrot.lane.b32.xlu0 %v779_v23, %s7200_s27  ;;  %v6116_v25 = vpop.f32.mrb[27].mxu0  ;;  %v5315_v22 = vunpack.c.h.bf16 %v5660_v57  ;;  %v5661_v23 = vld [vmem:[%s9302_s1 + $0x130] sm:$0xff]  }
 0x126   :  { %6276 = vmatprep.mubr.msk.f32.mxu0 %vm7198_vm0, %v9316_v9  ;;  %v5318_v27 = vunpack.c.l.bf16 %v5661_v23 }
 0x128   :  { %v784_v29 = vpop.f32.mrb[28].mxu0 }
 0x129   :  { %6277 = vmatmul.mubr.msk.f32.gmra.mrb[134].mxu0 %vm296_vm1, %v5299_v26  ;;  %1313 = vrot.lane.b32.xlu0 %v784_v29, %s7200_s27  ;;  %v6119_v30 = vpop.f32.mrb[29].mxu0 }
 0x12a   :  { %6279 = vmatprep.mubr.msk.f32.mxu0 %vm7198_vm0, %v9316_v9 }
 0x12c   :  { %v789_v33 = vpop.f32.mrb[30].mxu0 }
 0x12d   :  { %6280 = vmatmul.mubr.msk.f32.gmra.mrb[136].mxu0 %vm296_vm1, %v5302_v32  ;;  %1315 = vrot.lane.b32.xlu0 %v789_v33, %s7200_s27  ;;  %v6122_v34 = vpop.f32.mrb[31].mxu0  ;;  %v5319_v32 = vunpack.c.h.bf16 %v5661_v23  ;;  %v5662_v33 = vld [vmem:[%s9302_s1 + $0x138] sm:$0xff]  }
 0x12e   :  { %6282 = vmatprep.mubr.msk.f32.mxu0 %vm7198_vm0, %v9316_v9  ;;  %v5322_v37 = vunpack.c.l.bf16 %v5662_v33 }
 0x130   :  { %v794_v39 = vpop.f32.mrb[32].mxu0 }
 0x131   :  { %6283 = vmatmul.mubr.msk.f32.gmra.mrb[138].mxu0 %vm296_vm1, %v5303_v36  ;;  %1317 = vrot.lane.b32.xlu0 %v794_v39, %s7200_s27  ;;  %v6125_v40 = vpop.f32.mrb[33].mxu0 }
 0x132   :  { %6285 = vmatprep.mubr.msk.f32.mxu0 %vm7198_vm0, %v9316_v9 }
 0x134   :  { %v799_v43 = vpop.f32.mrb[34].mxu0 }
 0x135   :  { %6286 = vmatmul.mubr.msk.f32.gmra.mrb[140].mxu0 %vm296_vm1, %v5306_v41  ;;  %1319 = vrot.lane.b32.xlu0 %v799_v43, %s7200_s27  ;;  %v6128_v44 = vpop.f32.mrb[35].mxu0  ;;  %v5323_v41 = vunpack.c.h.bf16 %v5662_v33  ;;  %v5663_v43 = vld [vmem:[%s9302_s1 + $0x140] sm:$0xff]  }
 0x136   :  { %6288 = vmatprep.mubr.msk.f32.mxu0 %vm7198_vm0, %v9316_v9  ;;  %v5326_v47 = vunpack.c.l.bf16 %v5663_v43 }
 0x138   :  { %v804_v48 = vpop.f32.mrb[36].mxu0 }
 0x139   :  { %6289 = vmatmul.mubr.msk.f32.gmra.mrb[142].mxu0 %vm296_vm1, %v5307_v46  ;;  %1321 = vrot.lane.b32.xlu0 %v804_v48, %s7200_s27  ;;  %v6131_v50 = vpop.f32.mrb[37].mxu0 }
 0x13a   :  { %6291 = vmatprep.mubr.msk.f32.mxu0 %vm7198_vm0, %v9316_v9 }
 0x13c   :  { %v809_v53 = vpop.f32.mrb[38].mxu0 }
 0x13d   :  { %6292 = vmatmul.mubr.msk.f32.gmra.mrb[144].mxu0 %vm296_vm1, %v5310_v51  ;;  %1323 = vrot.lane.b32.xlu0 %v809_v53, %s7200_s27  ;;  %v6134_v54 = vpop.f32.mrb[39].mxu0  ;;  %v5327_v51 = vunpack.c.h.bf16 %v5663_v43  ;;  %v5664_v53 = vld [vmem:[%s9302_s1 + $0x148] sm:$0xff]  }
 0x13e   :  { %6294 = vmatprep.mubr.msk.f32.mxu0 %vm7198_vm0, %v9316_v9  ;;  %v5330_v57 = vunpack.c.l.bf16 %v5664_v53 }
 0x140   :  { %v814_v58 = vpop.f32.mrb[40].mxu0 }
 0x141   :  { %6295 = vmatmul.mubr.msk.f32.gmra.mrb[146].mxu0 %vm296_vm1, %v5311_v55  ;;  %1325 = vrot.lane.b32.xlu0 %v814_v58, %s7200_s27  ;;  %v6137_v60 = vpop.f32.mrb[41].mxu0 }
 0x142   :  { %6297 = vmatprep.mubr.msk.f32.mxu0 %vm7198_vm0, %v9316_v9 }
 0x144   :  { %v819_v62 = vpop.f32.mrb[42].mxu0 }
 0x145   :  { %6298 = vmatmul.mubr.msk.f32.gmra.mrb[148].mxu0 %vm296_vm1, %v5314_v61  ;;  %1327 = vrot.lane.b32.xlu0 %v819_v62, %s7200_s27  ;;  %v6140_v5 = vpop.f32.mrb[43].mxu0  ;;  %v5331_v61 = vunpack.c.h.bf16 %v5664_v53  ;;  %v5665_v62 = vld [vmem:[%s9302_s1 + $0x150] sm:$0xff]  }
 0x146   :  { %6300 = vmatprep.mubr.msk.f32.mxu0 %vm7198_vm0, %v9316_v9  ;;  %v5334_v23 = vunpack.c.l.bf16 %v5665_v62 }
 0x148   :  { %v824_v25 = vpop.f32.mrb[44].mxu0 }
 0x149   :  { %6301 = vmatmul.mubr.msk.f32.gmra.mrb[150].mxu0 %vm296_vm1, %v5315_v22  ;;  %1329 = vrot.lane.b32.xlu0 %v824_v25, %s7200_s27  ;;  %v6143_v26 = vpop.f32.mrb[45].mxu0 }
 0x14a   :  { %6303 = vmatprep.mubr.msk.f32.mxu0 %vm7198_vm0, %v9316_v9 }
 0x14c   :  { %v829_v29 = vpop.f32.mrb[46].mxu0 }
 0x14d   :  { %6304 = vmatmul.mubr.msk.f32.gmra.mrb[152].mxu0 %vm296_vm1, %v5318_v27  ;;  %1331 = vrot.lane.b32.xlu0 %v829_v29, %s7200_s27  ;;  %v6146_v30 = vpop.f32.mrb[47].mxu0  ;;  %v5335_v27 = vunpack.c.h.bf16 %v5665_v62  ;;  %v178_v29 = vld [vmem:[%s9302_s1 + $0x1d0] sm:$0xf] }
 0x14e   :  { %6306 = vmatprep.mubr.msk.f32.mxu0 %vm7198_vm0, %v9316_v9  ;;  %v5666_v30 = vld [vmem:[%s9302_s1 + $0x158] sm:$0xff]  }
 0x150   :  { %v834_v34 = vpop.f32.mrb[48].mxu0 }
 0x151   :  { %6307 = vmatmul.mubr.msk.f32.gmra.mrb[154].mxu0 %vm296_vm1, %v5319_v32  ;;  %1333 = vrot.lane.b32.xlu0 %v834_v34, %s7200_s27  ;;  %v6149_v36 = vpop.f32.mrb[49].mxu0  ;;  %v295_v32 = vunpack.c.l.bf16 %v178_v29 }
 0x152   :  { %6309 = vmatprep.mubr.msk.f32.mxu0 %vm7198_vm0, %v9316_v9  ;;  %v5338_v36 = vunpack.c.l.bf16 %v5666_v30 }
 0x153   :  { %6424 = vmatmul.mubr.msk.f32.vlgmr.msra.gmra.mrb[0].mxu1 %vm296_vm1, %v295_v32 }
 0x154   :  { %v839_v39 = vpop.f32.mrb[50].mxu0  ;;  %6428 = vmatprep.mubr.msk.f32.mxu1 %vm7198_vm0, %v9316_v9 }
 0x155   :  { %6310 = vmatmul.mubr.msk.f32.gmra.mrb[156].mxu0 %vm296_vm1, %v5322_v37  ;;  %1335 = vrot.lane.b32.xlu0 %v839_v39, %s7200_s27  ;;  %v6152_v40 = vpop.f32.mrb[51].mxu0 }
 0x156   :  { %6312 = vmatprep.mubr.msk.f32.mxu0 %vm7198_vm0, %v9316_v9  ;;  %v5339_v40 = vunpack.c.h.bf16 %v5666_v30 }
 0x158   :  { %v844_v44 = vpop.f32.mrb[52].mxu0 }
 0x159   :  { %6313 = vmatmul.mubr.msk.f32.gmra.mrb[158].mxu0 %vm296_vm1, %v5323_v41  ;;  %1363 = vrot.lane.b32.xlu0 %v844_v44, %s7201_s26  ;;  %v6155_v46 = vpop.f32.mrb[53].mxu0  ;;  %v5667_v41 = vld [vmem:[%s9302_s1 + $0x160] sm:$0xff]  }
 0x15a   :  { %6315 = vmatprep.mubr.msk.f32.mxu0 %vm7198_vm0, %v9316_v9  ;;  %v5342_v46 = vunpack.c.l.bf16 %v5667_v41 }
 0x15c   :  { %v849_v48 = vpop.f32.mrb[54].mxu0 }
 0x15d   :  { %6316 = vmatmul.mubr.msk.f32.gmra.mrb[160].mxu0 %vm296_vm1, %v5326_v47  ;;  %1365 = vrot.lane.b32.xlu0 %v849_v48, %s7201_s26  ;;  %v6158_v50 = vpop.f32.mrb[55].mxu0 }
 0x15e   :  { %6318 = vmatprep.mubr.msk.f32.mxu0 %vm7198_vm0, %v9316_v9  ;;  %v5343_v50 = vunpack.c.h.bf16 %v5667_v41 }
 0x160   :  { %v854_v54 = vpop.f32.mrb[56].mxu0 }
 0x161   :  { %6319 = vmatmul.mubr.msk.f32.gmra.mrb[162].mxu0 %vm296_vm1, %v5327_v51  ;;  %1367 = vrot.lane.b32.xlu0 %v854_v54, %s7201_s26  ;;  %v6161_v55 = vpop.f32.mrb[57].mxu0  ;;  %v5668_v51 = vld [vmem:[%s9302_s1 + $0x168] sm:$0xff]  }
 0x162   :  { %6321 = vmatprep.mubr.msk.f32.mxu0 %vm7198_vm0, %v9316_v9  ;;  %v5346_v55 = vunpack.c.l.bf16 %v5668_v51 }
 0x164   :  { %v859_v58 = vpop.f32.mrb[58].mxu0 }
 0x165   :  { %6322 = vmatmul.mubr.msk.f32.gmra.mrb[164].mxu0 %vm296_vm1, %v5330_v57  ;;  %1369 = vrot.lane.b32.xlu0 %v859_v58, %s7201_s26  ;;  %v6164_v60 = vpop.f32.mrb[59].mxu0 }
 0x166   :  { %6324 = vmatprep.mubr.msk.f32.mxu0 %vm7198_vm0, %v9316_v9  ;;  %v5347_v60 = vunpack.c.h.bf16 %v5668_v51 }
 0x168   :  { %v864_v5 = vpop.f32.mrb[60].mxu0 }
 0x169   :  { %6325 = vmatmul.mubr.msk.f32.gmra.mrb[166].mxu0 %vm296_vm1, %v5331_v61  ;;  %1371 = vrot.lane.b32.xlu0 %v864_v5, %s7201_s26  ;;  %v6167_v22 = vpop.f32.mrb[61].mxu0  ;;  %v5669_v61 = vld [vmem:[%s9302_s1 + $0x170] sm:$0xff]  }
 0x16a   :  { %6327 = vmatprep.mubr.msk.f32.mxu0 %vm7198_vm0, %v9316_v9  ;;  %v5350_v22 = vunpack.c.l.bf16 %v5669_v61 }
 0x16c   :  { %v869_v25 = vpop.f32.mrb[62].mxu0 }
 0x16d   :  { %6328 = vmatmul.mubr.msk.f32.gmra.mrb[168].mxu0 %vm296_vm1, %v5334_v23  ;;  %1373 = vrot.lane.b32.xlu0 %v869_v25, %s7201_s26  ;;  %v6170_v26 = vpop.f32.mrb[63].mxu0 }
 0x16e   :  { %6330 = vmatprep.mubr.msk.f32.mxu0 %vm7198_vm0, %v9316_v9  ;;  %v5351_v26 = vunpack.c.h.bf16 %v5669_v61 }
 0x170   :  { %v874_v33 = vpop.f32.mrb[64].mxu0 }
 0x171   :  { %6331 = vmatmul.mubr.msk.f32.gmra.mrb[170].mxu0 %vm296_vm1, %v5335_v27  ;;  %1375 = vrot.lane.b32.xlu0 %v874_v33, %s7201_s26  ;;  %v6173_v34 = vpop.f32.mrb[65].mxu0  ;;  %v5670_v27 = vld [vmem:[%s9302_s1 + $0x178] sm:$0xff]  }
 0x172   :  { %6333 = vmatprep.mubr.msk.f32.mxu0 %vm7198_vm0, %v9316_v9  ;;  %v5354_v32 = vunpack.c.l.bf16 %v5670_v27 }
 0x174   :  { %v879_v37 = vpop.f32.mrb[66].mxu0 }
 0x175   :  { %6334 = vmatmul.mubr.msk.f32.gmra.mrb[172].mxu0 %vm296_vm1, %v5338_v36  ;;  %1377 = vrot.lane.b32.xlu0 %v879_v37, %s7201_s26  ;;  %v6176_v39 = vpop.f32.mrb[67].mxu0  ;;  %v5355_v36 = vunpack.c.h.bf16 %v5670_v27  ;;  %v5671_v37 = vld [vmem:[%s9302_s1 + $0x180] sm:$0xff]  }
 0x176   :  { %6336 = vmatprep.mubr.msk.f32.mxu0 %vm7198_vm0, %v9316_v9  ;;  %v5358_v41 = vunpack.c.l.bf16 %v5671_v37 }
 0x178   :  { %v884_v43 = vpop.f32.mrb[68].mxu0 }
 0x179   :  { %6337 = vmatmul.mubr.msk.f32.gmra.mrb[174].mxu0 %vm296_vm1, %v5339_v40  ;;  %1379 = vrot.lane.b32.xlu0 %v884_v43, %s7201_s26  ;;  %v6179_v44 = vpop.f32.mrb[69].mxu0 }
 0x17a   :  { %6339 = vmatprep.mubr.msk.f32.mxu0 %vm7198_vm0, %v9316_v9 }
 0x17c   :  { %v889_v47 = vpop.f32.mrb[70].mxu0 }
 0x17d   :  { %6340 = vmatmul.mubr.msk.f32.gmra.mrb[176].mxu0 %vm296_vm1, %v5342_v46  ;;  %1381 = vrot.lane.b32.xlu0 %v889_v47, %s7201_s26  ;;  %v6182_v48 = vpop.f32.mrb[71].mxu0  ;;  %v5359_v46 = vunpack.c.h.bf16 %v5671_v37  ;;  %v5672_v47 = vld [vmem:[%s9302_s1 + $0x188] sm:$0xff]  }
 0x17e   :  { %6342 = vmatprep.mubr.msk.f32.mxu0 %vm7198_vm0, %v9316_v9  ;;  %v5362_v51 = vunpack.c.l.bf16 %v5672_v47 }
 0x180   :  { %v894_v53 = vpop.f32.mrb[72].mxu0 }
 0x181   :  { %6343 = vmatmul.mubr.msk.f32.gmra.mrb[178].mxu0 %vm296_vm1, %v5343_v50  ;;  %1383 = vrot.lane.b32.xlu0 %v894_v53, %s7201_s26  ;;  %v6185_v54 = vpop.f32.mrb[73].mxu0 }
 0x182   :  { %6345 = vmatprep.mubr.msk.f32.mxu0 %vm7198_vm0, %v9316_v9 }
 0x184   :  { %v899_v57 = vpop.f32.mrb[74].mxu0 }
 0x185   :  { %6346 = vmatmul.mubr.msk.f32.gmra.mrb[180].mxu0 %vm296_vm1, %v5346_v55  ;;  %1385 = vrot.lane.b32.xlu0 %v899_v57, %s7201_s26  ;;  %v6188_v58 = vpop.f32.mrb[75].mxu0  ;;  %v5363_v55 = vunpack.c.h.bf16 %v5672_v47  ;;  %v5673_v57 = vld [vmem:[%s9302_s1 + $0x190] sm:$0xff]  }
 0x186   :  { %6348 = vmatprep.mubr.msk.f32.mxu0 %vm7198_vm0, %v9316_v9  ;;  %v5366_v61 = vunpack.c.l.bf16 %v5673_v57 }
 0x188   :  { %v904_v62 = vpop.f32.mrb[76].mxu0 }
 0x189   :  { %6349 = vmatmul.mubr.msk.f32.gmra.mrb[182].mxu0 %vm296_vm1, %v5347_v60  ;;  %1387 = vrot.lane.b32.xlu0 %v904_v62, %s7201_s26  ;;  %v6191_v5 = vpop.f32.mrb[77].mxu0 }
 0x18a   :  { %6351 = vmatprep.mubr.msk.f32.mxu0 %vm7198_vm0, %v9316_v9 }
 0x18c   :  { %v909_v23 = vpop.f32.mrb[78].mxu0 }
 0x18d   :  { %6352 = vmatmul.mubr.msk.f32.gmra.mrb[184].mxu0 %vm296_vm1, %v5350_v22  ;;  %1415 = vrot.lane.b32.xlu1 %v909_v23, %s7202_s28  ;;  %v6194_v25 = vpop.f32.mrb[79].mxu0  ;;  %v5367_v22 = vunpack.c.h.bf16 %v5673_v57  ;;  %v5674_v23 = vld [vmem:[%s9302_s1 + $0x198] sm:$0xff]  }
 0x18e   :  { %6354 = vmatprep.mubr.msk.f32.mxu0 %vm7198_vm0, %v9316_v9  ;;  %v5370_v27 = vunpack.c.l.bf16 %v5674_v23 }
 0x190   :  { %v914_v29 = vpop.f32.mrb[80].mxu0 }
 0x191   :  { %6355 = vmatmul.mubr.msk.f32.gmra.mrb[186].mxu0 %vm296_vm1, %v5351_v26  ;;  %1417 = vrot.lane.b32.xlu0 %v914_v29, %s7202_s28  ;;  %v6197_v30 = vpop.f32.mrb[81].mxu0 }
 0x192   :  { %6357 = vmatprep.mubr.msk.f32.mxu0 %vm7198_vm0, %v9316_v9 }
 0x194   :  { %v919_v33 = vpop.f32.mrb[82].mxu0 }
 0x195   :  { %6358 = vmatmul.mubr.msk.f32.gmra.mrb[188].mxu0 %vm296_vm1, %v5354_v32  ;;  %1419 = vrot.lane.b32.xlu0 %v919_v33, %s7202_s28  ;;  %v6200_v34 = vpop.f32.mrb[83].mxu0  ;;  %v5371_v32 = vunpack.c.h.bf16 %v5674_v23  ;;  %v5675_v33 = vld [vmem:[%s9302_s1 + $0x1a0] sm:$0xff]  }
 0x196   :  { %6360 = vmatprep.mubr.msk.f32.mxu0 %vm7198_vm0, %v9316_v9  ;;  %v5374_v37 = vunpack.c.l.bf16 %v5675_v33 }
 0x198   :  { %v924_v39 = vpop.f32.mrb[84].mxu0 }
 0x199   :  { %6361 = vmatmul.mubr.msk.f32.gmra.mrb[190].mxu0 %vm296_vm1, %v5355_v36  ;;  %1421 = vrot.lane.b32.xlu0 %v924_v39, %s7202_s28  ;;  %v6203_v40 = vpop.f32.mrb[85].mxu0 }
 0x19a   :  { %6363 = vmatprep.mubr.msk.f32.mxu0 %vm7198_vm0, %v9316_v9 }
 0x19c   :  { %v929_v43 = vpop.f32.mrb[86].mxu0 }
 0x19d   :  { %6364 = vmatmul.mubr.msk.f32.gmra.mrb[192].mxu0 %vm296_vm1, %v5358_v41  ;;  %1423 = vrot.lane.b32.xlu0 %v929_v43, %s7202_s28  ;;  %v6206_v44 = vpop.f32.mrb[87].mxu0  ;;  %v5375_v41 = vunpack.c.h.bf16 %v5675_v33  ;;  %v5676_v43 = vld [vmem:[%s9302_s1 + $0x1a8] sm:$0xff]  }
 0x19e   :  { %6366 = vmatprep.mubr.msk.f32.mxu0 %vm7198_vm0, %v9316_v9  ;;  %v5378_v47 = vunpack.c.l.bf16 %v5676_v43 }
 0x1a0   :  { %v934_v48 = vpop.f32.mrb[88].mxu0 }
 0x1a1   :  { %6367 = vmatmul.mubr.msk.f32.gmra.mrb[194].mxu0 %vm296_vm1, %v5359_v46  ;;  %1425 = vrot.lane.b32.xlu0 %v934_v48, %s7202_s28  ;;  %v6209_v50 = vpop.f32.mrb[89].mxu0 }
 0x1a2   :  { %6369 = vmatprep.mubr.msk.f32.mxu0 %vm7198_vm0, %v9316_v9 }
 0x1a4   :  { %v939_v53 = vpop.f32.mrb[90].mxu0 }
 0x1a5   :  { %6370 = vmatmul.mubr.msk.f32.gmra.mrb[196].mxu0 %vm296_vm1, %v5362_v51  ;;  %1427 = vrot.lane.b32.xlu0 %v939_v53, %s7202_s28  ;;  %v6212_v54 = vpop.f32.mrb[91].mxu0  ;;  %v5379_v51 = vunpack.c.h.bf16 %v5676_v43  ;;  %v5677_v53 = vld [vmem:[%s9302_s1 + $0x1b0] sm:$0xff]  }
 0x1a6   :  { %6372 = vmatprep.mubr.msk.f32.mxu0 %vm7198_vm0, %v9316_v9  ;;  %v5382_v57 = vunpack.c.l.bf16 %v5677_v53 }
 0x1a8   :  { %v944_v58 = vpop.f32.mrb[92].mxu0 }
 0x1a9   :  { %6373 = vmatmul.mubr.msk.f32.gmra.mrb[198].mxu0 %vm296_vm1, %v5363_v55  ;;  %1429 = vrot.lane.b32.xlu0 %v944_v58, %s7202_s28  ;;  %v6215_v60 = vpop.f32.mrb[93].mxu0 }
 0x1aa   :  { %6375 = vmatprep.mubr.msk.f32.mxu0 %vm7198_vm0, %v9316_v9 }
 0x1ac   :  { %v949_v62 = vpop.f32.mrb[94].mxu0 }
 0x1ad   :  { %6376 = vmatmul.mubr.msk.f32.gmra.mrb[200].mxu0 %vm296_vm1, %v5366_v61  ;;  %1431 = vrot.lane.b32.xlu0 %v949_v62, %s7202_s28  ;;  %v6218_v5 = vpop.f32.mrb[95].mxu0  ;;  %v5383_v61 = vunpack.c.h.bf16 %v5677_v53  ;;  %v5678_v62 = vld [vmem:[%s9302_s1 + $0x1b8] sm:$0xff]  }
 0x1ae   :  { %6378 = vmatprep.mubr.msk.f32.mxu0 %vm7198_vm0, %v9316_v9  ;;  %v5386_v23 = vunpack.c.l.bf16 %v5678_v62 }
 0x1b0   :  { %v954_v25 = vpop.f32.mrb[96].mxu0 }
 0x1b1   :  { %6379 = vmatmul.mubr.msk.f32.gmra.mrb[202].mxu0 %vm296_vm1, %v5367_v22  ;;  %1433 = vrot.lane.b32.xlu0 %v954_v25, %s7202_s28  ;;  %v6221_v26 = vpop.f32.mrb[97].mxu0 }
 0x1b2   :  { %6381 = vmatprep.mubr.msk.f32.mxu0 %vm7198_vm0, %v9316_v9 }
 0x1b4   :  { %v959_v29 = vpop.f32.mrb[98].mxu0 }
 0x1b5   :  { %6382 = vmatmul.mubr.msk.f32.gmra.mrb[204].mxu0 %vm296_vm1, %v5370_v27  ;;  %1435 = vrot.lane.b32.xlu0 %v959_v29, %s7202_s28  ;;  %v6224_v30 = vpop.f32.mrb[99].mxu0  ;;  %v5387_v27 = vunpack.c.h.bf16 %v5678_v62  ;;  %v5679_v29 = vld [vmem:[%s9302_s1 + $0x1c0] sm:$0xff]  }
 0x1b6   :  { %6384 = vmatprep.mubr.msk.f32.mxu0 %vm7198_vm0, %v9316_v9  ;;  %v5390_v33 = vunpack.c.l.bf16 %v5679_v29 }
 0x1b8   :  { %v964_v34 = vpop.f32.mrb[100].mxu0 }
 0x1b9   :  { %6385 = vmatmul.mubr.msk.f32.gmra.mrb[206].mxu0 %vm296_vm1, %v5371_v32  ;;  %1437 = vrot.lane.b32.xlu0 %v964_v34, %s7202_s28  ;;  %v6227_v36 = vpop.f32.mrb[101].mxu0 }
 0x1ba   :  { %6387 = vmatprep.mubr.msk.f32.mxu0 %vm7198_vm0, %v9316_v9 }
 0x1bc   :  { %v969_v39 = vpop.f32.mrb[102].mxu0 }
 0x1bd   :  { %6388 = vmatmul.mubr.msk.f32.gmra.mrb[208].mxu0 %vm296_vm1, %v5374_v37  ;;  %1439 = vrot.lane.b32.xlu0 %v969_v39, %s7202_s28  ;;  %v6230_v40 = vpop.f32.mrb[103].mxu0  ;;  %v5391_v37 = vunpack.c.h.bf16 %v5679_v29  ;;  %v5680_v39 = vld [vmem:[%s9302_s1 + $0x1c8] sm:$0xff]   ;;  %s7204_s1 = smov 40  }
 0x1be   :  { %6390 = vmatprep.mubr.msk.f32.mxu0 %vm7198_vm0, %v9316_v9  ;;  %v5394_v43 = vunpack.c.l.bf16 %v5680_v39 }
 0x1c0   :  { %v974_v44 = vpop.f32.mrb[104].mxu0 }
 0x1c1   :  { %6391 = vmatmul.mubr.msk.f32.gmra.mrb[210].mxu0 %vm296_vm1, %v5375_v41  ;;  %1467 = vrot.lane.b32.xlu1 %v974_v44, %s7203_s30  ;;  %v6233_v46 = vpop.f32.mrb[105].mxu0 }
 0x1c2   :  { %6393 = vmatprep.mubr.msk.f32.mxu0 %vm7198_vm0, %v9316_v9 }
 0x1c4   :  { %v979_v48 = vpop.f32.mrb[106].mxu0 }
 0x1c5   :  { %6394 = vmatmul.mubr.msk.f32.gmra.mrb[212].mxu0 %vm296_vm1, %v5378_v47  ;;  %1469 = vrot.lane.b32.xlu0 %v979_v48, %s7203_s30  ;;  %v6236_v50 = vpop.f32.mrb[107].mxu0  ;;  %v5395_v47 = vunpack.c.h.bf16 %v5680_v39 }
 0x1c6   :  { %6396 = vmatprep.mubr.msk.f32.mxu0 %vm7198_vm0, %v9316_v9 }
 0x1c8   :  { %v984_v54 = vpop.f32.mrb[108].mxu0 }
 0x1c9   :  { %6397 = vmatmul.mubr.msk.f32.gmra.mrb[214].mxu0 %vm296_vm1, %v5379_v51  ;;  %1471 = vrot.lane.b32.xlu0 %v984_v54, %s7203_s30  ;;  %v6239_v55 = vpop.f32.mrb[109].mxu0 }
 0x1ca   :  { %6399 = vmatprep.mubr.msk.f32.mxu0 %vm7198_vm0, %v9316_v9 }
 0x1cc   :  { %v989_v58 = vpop.f32.mrb[110].mxu0 }
 0x1cd   :  { %6400 = vmatmul.mubr.msk.f32.gmra.mrb[216].mxu0 %vm296_vm1, %v5382_v57  ;;  %1473 = vrot.lane.b32.xlu0 %v989_v58, %s7203_s30  ;;  %v6242_v60 = vpop.f32.mrb[111].mxu0 }
 0x1ce   :  { %6402 = vmatprep.mubr.msk.f32.mxu0 %vm7198_vm0, %v9316_v9 }
 0x1d0   :  { %v994_v5 = vpop.f32.mrb[112].mxu0 }
 0x1d1   :  { %6403 = vmatmul.mubr.msk.f32.gmra.mrb[218].mxu0 %vm296_vm1, %v5383_v61  ;;  %1475 = vrot.lane.b32.xlu0 %v994_v5, %s7203_s30  ;;  %v6245_v22 = vpop.f32.mrb[113].mxu0 }
 0x1d2   :  { %6405 = vmatprep.mubr.msk.f32.mxu0 %vm7198_vm0, %v9316_v9 }
 0x1d4   :  { %v999_v25 = vpop.f32.mrb[114].mxu0 }
 0x1d5   :  { %6406 = vmatmul.mubr.msk.f32.gmra.mrb[220].mxu0 %vm296_vm1, %v5386_v23  ;;  %1477 = vrot.lane.b32.xlu0 %v999_v25, %s7203_s30  ;;  %v6248_v26 = vpop.f32.mrb[115].mxu0 }
 0x1d6   :  { %6408 = vmatprep.mubr.msk.f32.mxu0 %vm7198_vm0, %v9316_v9 }
 0x1d8   :  { %v1004_v30 = vpop.f32.mrb[116].mxu0 }
 0x1d9   :  { %6409 = vmatmul.mubr.msk.f32.gmra.mrb[222].mxu0 %vm296_vm1, %v5387_v27  ;;  %1479 = vrot.lane.b32.xlu0 %v1004_v30, %s7203_s30  ;;  %v6251_v32 = vpop.f32.mrb[117].mxu0  ;;  %v8013_v30 = vpop.permute.xlu0 %1311 }
 0x1da   :  { %6411 = vmatprep.mubr.msk.f32.mxu0 %vm7198_vm0, %v9316_v9 }
 0x1dc   :  { %v1009_v34 = vpop.f32.mrb[118].mxu0 }
 0x1dd   :  { %6412 = vmatmul.mubr.msk.f32.gmra.mrb[224].mxu0 %vm296_vm1, %v5390_v33  ;;  %1481 = vrot.lane.b32.xlu0 %v1009_v34, %s7203_s30  ;;  %v6254_v36 = vpop.f32.mrb[119].mxu0  ;;  %v8016_v34 = vpop.permute.xlu0 %1313 }
 0x1de   :  { %6414 = vmatprep.mubr.msk.f32.mxu0 %vm7198_vm0, %v9316_v9 }
 0x1e0   :  { %v1014_v40 = vpop.f32.mrb[120].mxu0 }
 0x1e1   :  { %6415 = vmatmul.mubr.msk.f32.gmra.mrb[226].mxu0 %vm296_vm1, %v5391_v37  ;;  %1483 = vrot.lane.b32.xlu0 %v1014_v40, %s7203_s30  ;;  %v6257_v41 = vpop.f32.mrb[121].mxu0 }
 0x1e2   :  { %6417 = vmatprep.mubr.msk.f32.mxu0 %vm7198_vm0, %v9316_v9  ;;  %v8020_v41 = vpop.permute.xlu0 %1315 }
 0x1e4   :  { %v1019_v44 = vpop.f32.mrb[122].mxu0 }
 0x1e5   :  { %6418 = vmatmul.mubr.msk.f32.gmra.mrb[228].mxu0 %vm296_vm1, %v5394_v43  ;;  %1485 = vrot.lane.b32.xlu0 %v1019_v44, %s7203_s30  ;;  %v6260_v46 = vpop.f32.mrb[123].mxu0 }
 0x1e6   :  { %6420 = vmatprep.mubr.msk.f32.mxu0 %vm7198_vm0, %v9316_v9  ;;  %v8023_v46 = vpop.permute.xlu0 %1317 }
 0x1e8   :  { %v1024_v48 = vpop.f32.mrb[124].mxu0 }
 0x1e9   :  { %6421 = vmatmul.mubr.msk.f32.gmra.mrb[230].mxu0 %vm296_vm1, %v5395_v47  ;;  %1487 = vrot.lane.b32.xlu0 %v1024_v48, %s7203_s30  ;;  %v6263_v50 = vpop.f32.mrb[125].mxu0 }
 0x1ec   :  { %v1029_v51 = vpop.f32.mrb[126].mxu0 }
 0x1ed   :  { %1489 = vrot.lane.b32.xlu0 %v1029_v51, %s7203_s30  ;;  %v6266_v53 = vpop.f32.mrb[127].mxu0 }
 0x1ee   :  { %v8027_v53 = vpop.permute.xlu0 %1319 }
 0x1f0   :  { %v1034_v54 = vpop.f32.mrb[128].mxu0 }
 0x1f1   :  { %1491 = vrot.lane.b32.xlu1 %v1034_v54, %s7203_s30  ;;  %v6269_v55 = vpop.f32.mrb[129].mxu0 }
 0x1f4   :  { %v1039_v57 = vpop.f32.mrb[130].mxu0 }
 0x1f5   :  { %1519 = vrot.lane.b32.xlu1 %v1039_v57, %s7204_s1  ;;  %v6272_v58 = vpop.f32.mrb[131].mxu0  ;;  %v8030_v57 = vpop.permute.xlu0 %1321 }
 0x1f8   :  { %v1044_v60 = vpop.f32.mrb[132].mxu0 }
 0x1f9   :  { %1521 = vrot.lane.b32.xlu1 %v1044_v60, %s7204_s1  ;;  %v6275_v61 = vpop.f32.mrb[133].mxu0 }
 0x1fc   :  { %v1049_v62 = vpop.f32.mrb[134].mxu0 }
 0x1fd   :  { %1523 = vrot.lane.b32.xlu1 %v1049_v62, %s7204_s1  ;;  %v6278_v5 = vpop.f32.mrb[135].mxu0 }
 0x1fe   :  { %v8034_v5 = vpop.permute.xlu0 %1323 }
 0x200   :  { %v1054_v22 = vpop.f32.mrb[136].mxu0 }
 0x201   :  { %1525 = vrot.lane.b32.xlu1 %v1054_v22, %s7204_s1  ;;  %v6281_v23 = vpop.f32.mrb[137].mxu0 }
 0x204   :  { %v1059_v25 = vpop.f32.mrb[138].mxu0 }
 0x205   :  { %1527 = vrot.lane.b32.xlu1 %v1059_v25, %s7204_s1  ;;  %v6284_v26 = vpop.f32.mrb[139].mxu0  ;;  %v8037_v25 = vpop.permute.xlu0 %1325 }
 0x208   :  { %v1064_v27 = vpop.f32.mrb[140].mxu0 }
 0x209   :  { %1529 = vrot.lane.b32.xlu1 %v1064_v27, %s7204_s1  ;;  %v6287_v29 = vpop.f32.mrb[141].mxu0 }
 0x20c   :  { %v1069_v32 = vpop.f32.mrb[142].mxu0 }
 0x20d   :  { %1531 = vrot.lane.b32.xlu1 %v1069_v32, %s7204_s1  ;;  %v6290_v33 = vpop.f32.mrb[143].mxu0 }
 0x20e   :  { %v8041_v33 = vpop.permute.xlu0 %1327 }
 0x20f   :  { %9349 = vst [vmem:[#allocation22_spill] sm:$0xff] %v8041_v33  ;;  %v1716_v33 = vsel %vm1714_vm3, %v7651_v24, %v8016_v34 }
 0x210   :  { %v1074_v36 = vpop.f32.mrb[144].mxu0 }
 0x211   :  { %1533 = vrot.lane.b32.xlu1 %v1074_v36, %s7204_s1  ;;  %v6293_v37 = vpop.f32.mrb[145].mxu0 }
 0x214   :  { %v1079_v39 = vpop.f32.mrb[146].mxu0 }
 0x215   :  { %1535 = vrot.lane.b32.xlu1 %v1079_v39, %s7204_s1  ;;  %v6296_v40 = vpop.f32.mrb[147].mxu0  ;;  %v8044_v39 = vpop.permute.xlu0 %1329 }
 0x216   :  { %9350 = vst [vmem:[#allocation23_spill] sm:$0xff] %v8044_v39 }
 0x218   :  { %v1084_v43 = vpop.f32.mrb[148].mxu0 }
 0x219   :  { %1537 = vrot.lane.b32.xlu1 %v1084_v43, %s7204_s1  ;;  %v6299_v44 = vpop.f32.mrb[149].mxu0 }
 0x21c   :  { %v1089_v47 = vpop.f32.mrb[150].mxu0 }
 0x21d   :  { %1539 = vrot.lane.b32.xlu1 %v1089_v47, %s7204_s1  ;;  %v6302_v48 = vpop.f32.mrb[151].mxu0 }
 0x220   :  { %v1094_v50 = vpop.f32.mrb[152].mxu0 }
 0x221   :  { %1541 = vrot.lane.b32.xlu0 %v1094_v50, %s7204_s1  ;;  %v6305_v51 = vpop.f32.mrb[153].mxu0 }
 0x222   :  { %v8050_v51 = vpop.permute.xlu0 %1331 }
 0x223   :  { %9351 = vst [vmem:[#allocation24_spill] sm:$0xff] %v8050_v51 }
 0x224   :  { %v1099_v54 = vpop.f32.mrb[154].mxu0 }
 0x225   :  { %1543 = vrot.lane.b32.xlu0 %v1099_v54, %s7204_s1  ;;  %v6308_v55 = vpop.f32.mrb[155].mxu0 }
 0x226   :  { %v8047_v44 = vpop.f32.mrb[0].mxu1 }
 0x227   :  { %v6425_v48 = vpop.f32.mrb[1].mxu1 }
 0x228   :  { %v1104_v58 = vpop.f32.mrb[156].mxu0 }
 0x229   :  { %1571 = vrot.lane.b32.xlu1 %v1104_v58, %s7205_s23  ;;  %v6311_v60 = vpop.f32.mrb[157].mxu0  ;;  %v8053_v58 = vpop.permute.xlu0 %1333 }
 0x22a   :  { %9352 = vst [vmem:[#allocation25_spill] sm:$0xff] %v8053_v58 }
 0x22c   :  { %v1109_v61 = vpop.f32.mrb[158].mxu0 }
 0x22d   :  { %1573 = vrot.lane.b32.xlu1 %v1109_v61, %s7205_s23  ;;  %v6314_v62 = vpop.f32.mrb[159].mxu0 }
 0x230   :  { %v1114_v22 = vpop.f32.mrb[160].mxu0 }
 0x231   :  { %1575 = vrot.lane.b32.xlu1 %v1114_v22, %s7205_s23  ;;  %v6317_v23 = vpop.f32.mrb[161].mxu0 }
 0x232   :  { %v8057_v23 = vpop.permute.xlu0 %1335 }
 0x233   :  { %9353 = vst [vmem:[#allocation26_spill] sm:$0xff] %v8057_v23 }
 0x234   :  { %v1119_v26 = vpop.f32.mrb[162].mxu0 }
 0x235   :  { %1577 = vrot.lane.b32.xlu1 %v1119_v26, %s7205_s23  ;;  %v6320_v27 = vpop.f32.mrb[163].mxu0 }
 0x238   :  { %v1124_v29 = vpop.f32.mrb[164].mxu0 }
 0x239   :  { %1579 = vrot.lane.b32.xlu1 %v1124_v29, %s7205_s23  ;;  %v6323_v32 = vpop.f32.mrb[165].mxu0  ;;  %v8060_v29 = vpop.permute.xlu0 %1363 }
 0x23c   :  { %v1129_v36 = vpop.f32.mrb[166].mxu0 }
 0x23d   :  { %1581 = vrot.lane.b32.xlu1 %v1129_v36, %s7205_s23  ;;  %v6326_v37 = vpop.f32.mrb[167].mxu0 }
 0x23e   :  { %v8064_v37 = vpop.permute.xlu1 %1415 }
 0x240   :  { %v1134_v40 = vpop.f32.mrb[168].mxu0 }
 0x241   :  { %1583 = vrot.lane.b32.xlu1 %v1134_v40, %s7205_s23  ;;  %v6329_v43 = vpop.f32.mrb[169].mxu0 }
 0x242   :  { %v8069_v48 = vpop.permute.xlu1 %1467 }
 0x244   :  { %v1139_v47 = vpop.f32.mrb[170].mxu0 }
 0x245   :  { %1585 = vrot.lane.b32.xlu1 %v1139_v47, %s7205_s23  ;;  %v6332_v50 = vpop.f32.mrb[171].mxu0  ;;  %v8067_v47 = vpop.permute.xlu0 %1365 }
 0x248   :  { %v1144_v54 = vpop.f32.mrb[172].mxu0 }
 0x249   :  { %1587 = vrot.lane.b32.xlu1 %v1144_v54, %s7205_s23  ;;  %v6335_v55 = vpop.f32.mrb[173].mxu0 }
 0x24c   :  { %v1149_v60 = vpop.f32.mrb[174].mxu0 }
 0x24d   :  { %1589 = vrot.lane.b32.xlu1 %v1149_v60, %s7205_s23  ;;  %v6338_v61 = vpop.f32.mrb[175].mxu0  ;;  %v8074_v60 = vpop.permute.xlu0 %1367 }
 0x250   :  { %v1154_v62 = vpop.f32.mrb[176].mxu0 }
 0x251   :  { %1591 = vrot.lane.b32.xlu1 %v1154_v62, %s7205_s23  ;;  %v6341_v22 = vpop.f32.mrb[177].mxu0 }
 0x254   :  { %v1159_v26 = vpop.f32.mrb[178].mxu0 }
 0x255   :  { %1593 = vrot.lane.b32.xlu1 %v1159_v26, %s7205_s23  ;;  %v6344_v27 = vpop.f32.mrb[179].mxu0 }
 0x258   :  { %v8062_v32 = vpop.f32.mrb[180].mxu0 }
 0x259   :  { %v6347_v36 = vpop.f32.mrb[181].mxu0 }
 0x25a   :  { %v8080_v36 = vpop.permute.xlu0 %1369 }
 0x25c   :  { %v1169_v40 = vpop.f32.mrb[182].mxu0 }
 0x25d   :  { %1623 = vrot.lane.b32.xlu1 %v1169_v40, %s7206_s24  ;;  %v6350_v43 = vpop.f32.mrb[183].mxu0 }
 0x25e   :  { %v8087_v21 = vpop.permute.xlu0 %1371 }
 0x260   :  { %v1174_v50 = vpop.f32.mrb[184].mxu0 }
 0x261   :  { %1625 = vrot.lane.b32.xlu1 %v1174_v50, %s7206_s24  ;;  %v6353_v54 = vpop.f32.mrb[185].mxu0 }
 0x262   :  { %v8093_v10 = vpop.permute.xlu0 %1373 }
 0x263   :  { %v8072_v55 = vpop.permute.xlu1 %1491 }
 0x264   :  { %9354 = vst [vmem:[#allocation27_spill] sm:$0xff] %v8072_v55  ;;  %v1179_v61 = vpop.f32.mrb[186].mxu0 }
 0x265   :  { %1627 = vrot.lane.b32.xlu1 %v1179_v61, %s7206_s24  ;;  %v6356_v62 = vpop.f32.mrb[187].mxu0 }
 0x266   :  { %v8100_v11 = vpop.permute.xlu0 %1375 }
 0x267   :  { %v8077_v22 = vpop.permute.xlu1 %1519 }
 0x268   :  { %v1184_v26 = vpop.f32.mrb[188].mxu0 }
 0x269   :  { %1629 = vrot.lane.b32.xlu1 %v1184_v26, %s7206_s24  ;;  %v6359_v27 = vpop.f32.mrb[189].mxu0 }
 0x26b   :  { %v8082_v40 = vpop.permute.xlu1 %1521 }
 0x26c   :  { %v1189_v43 = vpop.f32.mrb[190].mxu0 }
 0x26d   :  { %1631 = vrot.lane.b32.xlu1 %v1189_v43, %s7206_s24  ;;  %v6362_v50 = vpop.f32.mrb[191].mxu0 }
 0x26f   :  { %v8085_v54 = vpop.permute.xlu1 %1523 }
 0x270   :  { %v1194_v61 = vpop.f32.mrb[192].mxu0 }
 0x271   :  { %1633 = vrot.lane.b32.xlu1 %v1194_v61, %s7206_s24  ;;  %v6365_v62 = vpop.f32.mrb[193].mxu0 }
 0x273   :  { %v8090_v16 = vpop.permute.xlu1 %1525 }
 0x274   :  { %v1199_v26 = vpop.f32.mrb[194].mxu0 }
 0x275   :  { %1635 = vrot.lane.b32.xlu1 %v1199_v26, %s7206_s24  ;;  %v6368_v27 = vpop.f32.mrb[195].mxu0  ;;  %v1826_v26 = vld [vmem:[%s9308_s7] sm:$0xff]  ;;  %s7207_s7 = smov 64  }
 0x276   :  { %6427 = vmatpush3.xpose.msk.msra.mxu1 %vm1827_vm2, %v1826_v26 }
 0x277   :  { %v8095_v4 = vpop.permute.xlu1 %1527  ;;  %6867 = vmatprep.subr.bf16.mxu1 %v9322_v3 }
 0x278   :  { %v1204_v43 = vpop.f32.mrb[196].mxu0 }
 0x279   :  { %1637 = vrot.lane.b32.xlu1 %v1204_v43, %s7206_s24  ;;  %v6371_v50 = vpop.f32.mrb[197].mxu0 }
 0x27a   :  { %v8111_v50 = vpop.permute.xlu0 %1377 }
 0x27b   :  { %v8098_v20 = vpop.permute.xlu1 %1529 }
 0x27c   :  { %v1209_v61 = vpop.f32.mrb[198].mxu0 }
 0x27d   :  { %1639 = vrot.lane.b32.xlu1 %v1209_v61, %s7206_s24  ;;  %v6374_v62 = vpop.f32.mrb[199].mxu0 }
 0x27e   :  { %v8116_v19 = vpop.permute.xlu0 %1379 }
 0x27f   :  { %v8103_v9 = vpop.permute.xlu1 %1531  ;;  %9356 = vst [vmem:[#allocation29_spill] sm:$0xff] %v8116_v19 }
 0x280   :  { %v1214_v27 = vpop.f32.mrb[200].mxu0 }
 0x281   :  { %1641 = vrot.lane.b32.xlu1 %v1214_v27, %s7206_s24  ;;  %v6377_v43 = vpop.f32.mrb[201].mxu0 }
 0x282   :  { %v8122_v3 = vpop.permute.xlu0 %1381 }
 0x283   :  { %v8113_v61 = vpop.permute.xlu1 %1533  ;;  %9358 = vst [vmem:[#allocation31_spill] sm:$0xff] %v8122_v3 }
 0x284   :  { %v1219_v18 = vpop.f32.mrb[202].mxu0  ;;  %9355 = vst [vmem:[#allocation28_spill] sm:$0xff] %v8113_v61 }
 0x285   :  { %1643 = vrot.lane.b32.xlu1 %v1219_v18, %s7206_s24  ;;  %v6380_v62 = vpop.f32.mrb[203].mxu0 }
 0x286   :  { %v8127_v62 = vpop.permute.xlu0 %1383 }
 0x287   :  { %v8119_v26 = vpop.permute.xlu1 %1535  ;;  %9360 = vst [vmem:[#allocation33_spill] sm:$0xff] %v8127_v62 }
 0x288   :  { %v1224_v12 = vpop.f32.mrb[204].mxu0  ;;  %9357 = vst [vmem:[#allocation30_spill] sm:$0xff] %v8119_v26 }
 0x289   :  { %1645 = vrot.lane.b32.xlu1 %v1224_v12, %s7206_s24  ;;  %v6383_v13 = vpop.f32.mrb[205].mxu0 }
 0x28b   :  { %v8124_v6 = vpop.permute.xlu1 %1537 }
 0x28c   :  { %v1229_v27 = vpop.f32.mrb[206].mxu0  ;;  %9359 = vst [vmem:[#allocation32_spill] sm:$0xff] %v8124_v6 }
 0x28d   :  { %1647 = vrot.lane.b32.xlu0 %v1229_v27, %s7206_s24  ;;  %v6386_v43 = vpop.f32.mrb[207].mxu0 }
 0x28e   :  { %v8133_v43 = vpop.permute.xlu0 %1385 }
 0x28f   :  { %v8130_v13 = vpop.permute.xlu1 %1539  ;;  %9362 = vst [vmem:[#allocation35_spill] sm:$0xff] %v8133_v43 }
 0x290   :  { %v1234_v2 = vpop.f32.mrb[208].mxu0  ;;  %9361 = vst [vmem:[#allocation34_spill] sm:$0xff] %v8130_v13 }
 0x291   :  { %1675 = vrot.lane.b32.xlu1 %v1234_v2, %s7207_s7  ;;  %v6389_v18 = vpop.f32.mrb[209].mxu0 }
 0x292   :  { %v8140_v7 = vpop.permute.xlu0 %1387 }
 0x293   :  { %9363 = vst [vmem:[#allocation36_spill] sm:$0xff] %v8140_v7 }
 0x294   :  { %v1239_v0 = vpop.f32.mrb[210].mxu0 }
 0x295   :  { %1677 = vrot.lane.b32.xlu1 %v1239_v0, %s7207_s7  ;;  %v6392_v12 = vpop.f32.mrb[211].mxu0 }
 0x298   :  { %v1244_v1 = vpop.f32.mrb[212].mxu0 }
 0x299   :  { %1679 = vrot.lane.b32.xlu1 %v1244_v1, %s7207_s7  ;;  %v6395_v27 = vpop.f32.mrb[213].mxu0  ;;  %v8145_v1 = vpop.permute.xlu0 %1417 }
 0x29b   :  { %v8135_v14 = vpop.permute.xlu1 %1571 }
 0x29c   :  { %v1249_v17 = vpop.f32.mrb[214].mxu0 }
 0x29d   :  { %1681 = vrot.lane.b32.xlu1 %v1249_v17, %s7207_s7  ;;  %v6398_v2 = vpop.f32.mrb[215].mxu0  ;;  %v8151_v23 = vpop.permute.xlu0 %1419 }
 0x29f   :  { %v8138_v18 = vpop.permute.xlu1 %1573 }
 0x2a0   :  { %v1254_v0 = vpop.f32.mrb[216].mxu0 }
 0x2a1   :  { %1683 = vrot.lane.b32.xlu1 %v1254_v0, %s7207_s7  ;;  %v6401_v12 = vpop.f32.mrb[217].mxu0  ;;  %v8158_v13 = vpop.permute.xlu0 %1421 }
 0x2a3   :  { %v8143_v8 = vpop.permute.xlu1 %1575 }
 0x2a4   :  { %v1259_v27 = vpop.f32.mrb[218].mxu0 }
 0x2a5   :  { %1685 = vrot.lane.b32.xlu1 %v1259_v27, %s7207_s7  ;;  %v6404_v55 = vpop.f32.mrb[219].mxu0  ;;  %v8164_v58 = vpop.permute.xlu0 %1423 }
 0x2a7   :  { %v8148_v63 = vpop.permute.xlu1 %1577 }
 0x2a8   :  { %v1264_v17 = vpop.f32.mrb[220].mxu0 }
 0x2a9   :  { %1687 = vrot.lane.b32.xlu1 %v1264_v17, %s7207_s7  ;;  %v6407_v2 = vpop.f32.mrb[221].mxu0  ;;  %v8171_v56 = vpop.permute.xlu0 %1425 }
 0x2ab   :  { %v8153_v7 = vpop.permute.xlu1 %1579 }
 0x2ac   :  { %v1269_v0 = vpop.f32.mrb[222].mxu0 }
 0x2ad   :  { %1689 = vrot.lane.b32.xlu1 %v1269_v0, %s7207_s7  ;;  %v6410_v12 = vpop.f32.mrb[223].mxu0 }
 0x2af   :  { %v8156_v43 = vpop.permute.xlu1 %1581 }
 0x2b0   :  { %v1274_v27 = vpop.f32.mrb[224].mxu0 }
 0x2b1   :  { %1691 = vrot.lane.b32.xlu1 %v1274_v27, %s7207_s7  ;;  %v6413_v55 = vpop.f32.mrb[225].mxu0 }
 0x2b3   :  { %v8161_v59 = vpop.permute.xlu1 %1583 }
 0x2b4   :  { %v1279_v17 = vpop.f32.mrb[226].mxu0 }
 0x2b5   :  { %1693 = vrot.lane.b32.xlu1 %v1279_v17, %s7207_s7  ;;  %v6416_v2 = vpop.f32.mrb[227].mxu0  ;;  %v8178_v17 = vpop.permute.xlu0 %1427 }
 0x2b7   :  { %v8166_v62 = vpop.permute.xlu1 %1585 }
 0x2b8   :  { %9364 = vst [vmem:[#allocation37_spill] sm:$0xff] %v8166_v62  ;;  %v1284_v0 = vpop.f32.mrb[228].mxu0 }
 0x2b9   :  { %1695 = vrot.lane.b32.xlu1 %v1284_v0, %s7207_s7  ;;  %v6419_v12 = vpop.f32.mrb[229].mxu0  ;;  %v8184_v0 = vpop.permute.xlu0 %1429 }
 0x2bb   :  { %v8169_v6 = vpop.permute.xlu1 %1587 }
 0x2bc   :  { %9365 = vst [vmem:[#allocation38_spill] sm:$0xff] %v8169_v6  ;;  %v1289_v27 = vpop.f32.mrb[230].mxu0 }
 0x2bd   :  { %1697 = vrot.lane.b32.xlu1 %v1289_v27, %s7207_s7  ;;  %v6422_v55 = vpop.f32.mrb[231].mxu0  ;;  %v8188_v6 = vpop.permute.xlu0 %1431 }
 0x2be   :  { %9369 = vst [vmem:[#allocation42_spill] sm:$0xff] %v8188_v6 }
 0x2bf   :  { %v8174_v51 = vpop.permute.xlu1 %1589 }
 0x2c0   :  { %9366 = vst [vmem:[#allocation39_spill] sm:$0xff] %v8174_v51 }
 0x2c1   :  { %1595 = vrot.lane.b32.xlu1 %v8062_v32, %s7205_s23  ;;  %v8190_v3 = vpop.permute.xlu0 %1433 }
 0x2c2   :  { %9370 = vst [vmem:[#allocation43_spill] sm:$0xff] %v8190_v3 }
 0x2c3   :  { %v8180_v2 = vpop.permute.xlu1 %1591 }
 0x2c4   :  { %9367 = vst [vmem:[#allocation40_spill] sm:$0xff] %v8180_v2 }
 0x2c5   :  { %1699 = vrot.lane.b32.xlu1 %v8047_v44, %s7207_s7  ;;  %v8192_v26 = vpop.permute.xlu0 %1435 }
 0x2c6   :  { %9371 = vst [vmem:[#allocation44_spill] sm:$0xff] %v8192_v26 }
 0x2c7   :  { %v8186_v12 = vpop.permute.xlu1 %1593 }
 0x2c8   :  { %9368 = vst [vmem:[#allocation41_spill] sm:$0xff] %v8186_v12 }
 0x2c9   :  { %v8198_v2 = vpop.permute.xlu0 %1437 }
 0x2ca   :  { %9372 = vst [vmem:[#allocation45_spill] sm:$0xff] %v8198_v2 }
 0x2cd   :  { %v8202_v39 = vpop.permute.xlu0 %1439 }
 0x2ce   :  { %9373 = vst [vmem:[#allocation46_spill] sm:$0xff] %v8202_v39  ;;  %v1715_v39 = vsel %vm1714_vm3, %v7646_v15, %v8013_v30  ;;  %v1730_v30 = vsel %vm1728_vm4, %v1716_v33, %v8067_v47  ;;  %v9378_v47 = vmov 0.0  }
 0x2cf   :  { %v1624_v27 = vpop.permute.xlu1 %1623 }
 0x2d1   :  { %v1470_v6 = vpop.permute.xlu0 %1469 }
 0x2d3   :  { %v1626_v55 = vpop.permute.xlu1 %1625 }
 0x2d5   :  { %v1472_v3 = vpop.permute.xlu0 %1471 }
 0x2d7   :  { %v1628_v51 = vpop.permute.xlu1 %1627 }
 0x2d9   :  { %v1474_v26 = vpop.permute.xlu0 %1473 }
 0x2db   :  { %v8194_v32 = vpop.permute.xlu1 %1629 }
 0x2dd   :  { %v1476_v2 = vpop.permute.xlu0 %1475 }
 0x2df   :  { %v8196_v52 = vpop.permute.xlu1 %1631 }
 0x2e3   :  { %v8200_v44 = vpop.permute.xlu1 %1633 }
 0x2e7   :  { %v8204_v12 = vpop.permute.xlu1 %1635 }
 0x2eb   :  { %v8206_v62 = vpop.permute.xlu1 %1637 }
 0x2ec   :  { %9374 = vst [vmem:[#allocation47_spill] sm:$0xff] %v8206_v62  ;;  %v1729_v62 = vsel %vm1728_vm4, %v1715_v39, %v8060_v29  ;;  %v1478_v39 = vpop.permute.xlu0 %1477 }
 0x2ef   :  { %v8208_v19 = vpop.permute.xlu1 %1639 }
 0x2f0   :  { %9375 = vst [vmem:[#allocation48_spill] sm:$0xff] %v8208_v19  ;;  %v1743_v19 = vsel %vm1742_vm5, %v1729_v62, %v8064_v37  ;;  %v1744_v37 = vsel %vm1742_vm5, %v1730_v30, %v8145_v1 }
 0x2f1   :  { %v1758_v62 = vsel %vm1756_vm6, %v1744_v37, %v1470_v6 }
 0x2f2   :  { %v1772_v34 = vsel %vm1770_vm7, %v1758_v62, %v8082_v40  ;;  %v1480_v40 = vpop.permute.xlu0 %1479 }
 0x2f3   :  { %v8210_v61 = vpop.permute.xlu1 %1641  ;;  %v1786_v33 = vsel %vm1784_vm8, %v1772_v34, %v8138_v18 }
 0x2f4   :  { %9376 = vst [vmem:[#allocation49_spill] sm:$0xff] %v8210_v61 }
 0x2f7   :  { %v8212_v49 = vpop.permute.xlu1 %1643 }
 0x2f8   :  { %9377 = vst [vmem:[#allocation50_spill] sm:$0xff] %v8212_v49  ;;  %v1757_v49 = vsel %vm1756_vm6, %v1743_v19, %v8069_v48 }
 0x2f9   :  { %v1771_v15 = vsel %vm1770_vm7, %v1757_v49, %v8077_v22  ;;  %v1717_v49 = vsel %vm1714_vm3, %v7659_v28, %v8020_v41  ;;  %v1800_v22 = vsel %vm1798_vm9, %v1786_v33, %v1626_v55  ;;  %v9382_v33 = vld [vmem:[#allocation29_spill] sm:$0xff] }
 0x2fa   :  { %v1785_v29 = vsel %vm1784_vm8, %v1771_v15, %v8135_v14  ;;  %v1731_v14 = vsel %vm1728_vm4, %v1717_v49, %v8074_v60  ;;  %v1718_v60 = vsel %vm1714_vm3, %v7664_v31, %v8023_v46  ;;  %v9379_v49 = vld [vmem:[#allocation22_spill] sm:$0xff] }
 0x2fb   :  { %v8221_v61 = vpop.permute.xlu1 %1645  ;;  %v1799_v19 = vsel %vm1798_vm9, %v1785_v29, %v1624_v27  ;;  %v1745_v6 = vsel %vm1742_vm5, %v1731_v14, %v8151_v23  ;;  %v1732_v23 = vsel %vm1728_vm4, %v1718_v60, %v8080_v36  ;;  %v1719_v36 = vsel %vm1714_vm3, %v7672_v35, %v8027_v53  ;;  %v9381_v14 = vld [vmem:[#allocation28_spill] sm:$0xff] }
 0x2fc   :  { %v1759_v41 = vsel %vm1756_vm6, %v1745_v6, %v1472_v3  ;;  %v1746_v3 = vsel %vm1742_vm5, %v1732_v23, %v8158_v13  ;;  %v1733_v15 = vsel %vm1728_vm4, %v1719_v36, %v8087_v21  ;;  %v1482_v13 = vpop.permute.xlu0 %1481  ;;  %v1720_v21 = vsel %vm1714_vm3, %v7677_v38, %v8030_v57  ;;  %v9383_v6 = vld [vmem:[#allocation37_spill] sm:$0xff] }
 0x2fd   :  { %v1773_v18 = vsel %vm1770_vm7, %v1759_v41, %v8085_v54  ;;  %v1760_v46 = vsel %vm1756_vm6, %v1746_v3, %v1474_v26  ;;  %v1747_v26 = vsel %vm1742_vm5, %v1733_v15, %v8164_v58  ;;  %v1734_v58 = vsel %vm1728_vm4, %v1720_v21, %v8093_v10  ;;  %v9385_v41 = vld [vmem:[#allocation47_spill] sm:$0xff]  ;;  %v9387_v3 = vld [vmem:[#allocation18_spill] sm:$0xff]  ;;  %v9393_v21 = vld [vmem:[#allocation24_spill] sm:$0xff] }
 0x2fe   :  { %v1787_v27 = vsel %vm1784_vm8, %v1773_v18, %v8143_v8  ;;  %v1774_v8 = vsel %vm1770_vm7, %v1760_v46, %v8090_v16  ;;  %v1761_v16 = vsel %vm1756_vm6, %v1747_v26, %v1476_v2  ;;  %v1748_v2 = vsel %vm1742_vm5, %v1734_v58, %v8171_v56  ;;  %v9392_v26 = vld [vmem:[#allocation48_spill] sm:$0xff] }
 0x2ff   :  { %v1801_v55 = vsel %vm1798_vm9, %v1787_v27, %v1628_v51  ;;  %v1788_v51 = vsel %vm1784_vm8, %v1774_v8, %v8148_v63  ;;  %v1775_v63 = vsel %vm1770_vm7, %v1761_v16, %v8095_v4  ;;  %v1762_v4 = vsel %vm1756_vm6, %v1748_v2, %v1478_v39  ;;  %v9386_v27 = vld [vmem:[#allocation23_spill] sm:$0xff]  ;;  %v9390_v8 = vld [vmem:[#allocation38_spill] sm:$0xff] }
 0x300   :  { %v1802_v35 = vsel %vm1798_vm9, %v1788_v51, %v8194_v32  ;;  %v1789_v32 = vsel %vm1784_vm8, %v1775_v63, %v8153_v7  ;;  %v1484_v29 = vpop.permute.xlu0 %1483  ;;  %v1721_v10 = vsel %vm1714_vm3, %v7685_v42, %v8034_v5  ;;  %v1776_v7 = vsel %vm1770_vm7, %v1762_v4, %v8098_v20  ;;  %v9394_v63 = vld [vmem:[#allocation19_spill] sm:$0xff] }
 0x301   :  { %v1803_v38 = vsel %vm1798_vm9, %v1789_v32, %v8196_v52  ;;  %v1735_v56 = vsel %vm1728_vm4, %v1721_v10, %v8100_v11  ;;  %v1790_v52 = vsel %vm1784_vm8, %v1776_v7, %v8156_v43  ;;  %v1722_v11 = vsel %vm1714_vm3, %v7690_v45, %v8037_v25  ;;  %v9395_v32 = vld [vmem:[#allocation32_spill] sm:$0xff] }
 0x302   :  { %v1749_v39 = vsel %vm1742_vm5, %v1735_v56, %v8178_v17  ;;  %v1804_v42 = vsel %vm1798_vm9, %v1790_v52, %v8200_v44  ;;  %v1736_v17 = vsel %vm1728_vm4, %v1722_v11, %v8111_v50  ;;  %v9380_v50 = vld [vmem:[#allocation17_spill] sm:$0xff]  ;;  %v1725_v58 = vsel %vm1714_vm3, %v9394_v63, %v9393_v21  ;;  %v9398_v10 = vld [vmem:[#allocation44_spill] sm:$0xff] }
 0x303   :  { %v1676_v48 = vpop.permute.xlu1 %1675  ;;  %v1763_v20 = vsel %vm1756_vm6, %v1749_v39, %v1480_v40  ;;  %v1750_v62 = vsel %vm1742_vm5, %v1736_v17, %v8184_v0  ;;  %v1723_v34 = vsel %vm1714_vm3, %v9380_v50, %v9379_v49  ;;  %v9399_v56 = vld [vmem:[#allocation49_spill] sm:$0xff]  ;;  %v9406_v49 = vld [vmem:[#allocation50_spill] sm:$0xff]  ;;  %v9413_v21 = vmov 0.0|0.0  }
 0x304   :  { %v1813_v24 = vsel %vm1812_vm10, %v1799_v19, %v1676_v48  ;;  %v1777_v43 = vsel %vm1770_vm7, %v1763_v20, %v8103_v9  ;;  %v1486_v48 = vpop.permute.xlu0 %1485  ;;  %v1764_v9 = vsel %vm1756_vm6, %v1750_v62, %v1482_v13  ;;  %v1737_v0 = vsel %vm1728_vm4, %v1723_v34, %v9382_v33  ;;  %v9391_v13 = vld [vmem:[#allocation43_spill] sm:$0xff]  ;;  %v9400_v20 = vld [vmem:[#allocation25_spill] sm:$0xff] }
 0x305   :  { %6429 = vmatmul.mubr.msk.f32.vlgmr.msra.gmra.mrb[2].mxu1 %vm1827_vm2, %v1813_v24  ;;  %v1791_v44 = vsel %vm1784_vm8, %v1777_v43, %v8161_v59  ;;  %v1778_v59 = vsel %vm1770_vm7, %v1764_v9, %v9381_v14  ;;  %v9402_v43 = vld [vmem:[#allocation34_spill] sm:$0xff]  ;;  %v9405_v9 = vld [vmem:[#allocation45_spill] sm:$0xff] }
 0x306   :  { %6431 = vmatprep.mubr.msk.f32.mxu1 %vm7198_vm0, %v9378_v47  ;;  %v1805_v45 = vsel %vm1798_vm9, %v1791_v44, %v8204_v12  ;;  %v1792_v12 = vsel %vm1784_vm8, %v1778_v59, %v9383_v6 }
 0x307   :  { %v1678_v28 = vpop.permute.xlu1 %1677  ;;  %v1806_v40 = vsel %vm1798_vm9, %v1792_v12, %v9385_v41  ;;  %v9408_v12 = vld [vmem:[#allocation26_spill] sm:$0xff] }
 0x308   :  { %v1814_v1 = vsel %vm1812_vm10, %v1800_v22, %v1678_v28  ;;  %v9384_v22 = vld [vmem:[#allocation42_spill] sm:$0xff]  ;;  %v1488_v18 = vpop.permute.xlu0 %1487 }
 0x309   :  { %6432 = vmatmul.mubr.msk.f32.gmra.mrb[4].mxu1 %vm1827_vm2, %v1814_v1  ;;  %v1751_v28 = vsel %vm1742_vm5, %v1737_v0, %v9384_v22  ;;  %v9407_v0 = vld [vmem:[#allocation41_spill] sm:$0xff] }
 0x30a   :  { %6434 = vmatprep.mubr.msk.f32.mxu1 %vm7198_vm0, %v9378_v47  ;;  %v1765_v60 = vsel %vm1756_vm6, %v1751_v28, %v1484_v29  ;;  %v9397_v29 = vld [vmem:[#allocation39_spill] sm:$0xff]  ;;  %v9409_v22 = vld [vmem:[#allocation21_spill] sm:$0xff] }
 0x30b   :  { %v1680_v31 = vpop.permute.xlu1 %1679  ;;  %v1727_v28 = vsel %vm1714_vm3, %v9409_v22, %v9408_v12 }
 0x30c   :  { %v1815_v54 = vsel %vm1812_vm10, %v1801_v55, %v1680_v31  ;;  %v1724_v55 = vsel %vm1714_vm3, %v9387_v3, %v9386_v27  ;;  %v9388_v31 = vld [vmem:[#allocation30_spill] sm:$0xff]  ;;  %v1490_v4 = vpop.permute.xlu0 %1489 }
 0x30d   :  { %6435 = vmatmul.mubr.msk.f32.gmra.mrb[6].mxu1 %vm1827_vm2, %v1815_v54  ;;  %v1779_v46 = vsel %vm1770_vm7, %v1765_v60, %v9388_v31  ;;  %v9389_v54 = vld [vmem:[#allocation31_spill] sm:$0xff]  ;;  %v9411_v27 = vld [vmem:[#allocation46_spill] sm:$0xff] }
 0x30e   :  { %6437 = vmatprep.mubr.msk.f32.mxu1 %vm7198_vm0, %v9378_v47  ;;  %v1738_v36 = vsel %vm1728_vm4, %v1724_v55, %v9389_v54  ;;  %v1793_v15 = vsel %vm1784_vm8, %v1779_v46, %v9390_v8  ;;  %v9412_v55 = vld [vmem:[#allocation27_spill] sm:$0xff] }
 0x30f   :  { %v1682_v53 = vpop.permute.xlu1 %1681  ;;  %v1752_v51 = vsel %vm1742_vm5, %v1738_v36, %v9391_v13 }
 0x310   :  { %v1816_v30 = vsel %vm1812_vm10, %v1802_v35, %v1682_v53  ;;  %v1807_v35 = vsel %vm1798_vm9, %v1793_v15, %v9392_v26  ;;  %v1766_v16 = vsel %vm1756_vm6, %v1752_v51, %v1486_v48  ;;  %v9403_v48 = vld [vmem:[#allocation35_spill] sm:$0xff]  ;;  %v1542_v62 = vpop.permute.xlu0 %1541 }
 0x311   :  { %6438 = vmatmul.mubr.msk.f32.gmra.mrb[8].mxu1 %vm1827_vm2, %v1816_v30  ;;  %v1780_v2 = vsel %vm1770_vm7, %v1766_v16, %v9395_v32 }
 0x312   :  { %6440 = vmatprep.mubr.msk.f32.mxu1 %vm7198_vm0, %v9378_v47 }
 0x313   :  { %v1684_v57 = vpop.permute.xlu1 %1683 }
 0x314   :  { %v1817_v37 = vsel %vm1812_vm10, %v1803_v38, %v1684_v57  ;;  %v9396_v38 = vld [vmem:[#allocation33_spill] sm:$0xff] }
 0x315   :  { %6441 = vmatmul.mubr.msk.f32.gmra.mrb[10].mxu1 %vm1827_vm2, %v1817_v37  ;;  %v1739_v57 = vsel %vm1728_vm4, %v1725_v58, %v9396_v38  ;;  %v1794_v37 = vsel %vm1784_vm8, %v1780_v2, %v9397_v29 }
 0x316   :  { %6443 = vmatprep.mubr.msk.f32.mxu1 %vm7198_vm0, %v9378_v47  ;;  %v1753_v7 = vsel %vm1742_vm5, %v1739_v57, %v9398_v10  ;;  %v1808_v52 = vsel %vm1798_vm9, %v1794_v37, %v9399_v56 }
 0x317   :  { %v1686_v5 = vpop.permute.xlu1 %1685 }
 0x318   :  { %v1818_v19 = vsel %vm1812_vm10, %v1804_v42, %v1686_v5  ;;  %v1767_v42 = vsel %vm1756_vm6, %v1753_v7, %v1488_v18  ;;  %v1544_v18 = vpop.permute.xlu0 %1543 }
 0x319   :  { %6444 = vmatmul.mubr.msk.f32.gmra.mrb[12].mxu1 %vm1827_vm2, %v1818_v19  ;;  %v9401_v19 = vld [vmem:[#allocation20_spill] sm:$0xff]  ;;  %v1781_v17 = vsel %vm1770_vm7, %v1767_v42, %v9402_v43 }
 0x31a   :  { %6446 = vmatprep.mubr.msk.f32.mxu1 %vm7198_vm0, %v9378_v47  ;;  %v1726_v11 = vsel %vm1714_vm3, %v9401_v19, %v9400_v20 }
 0x31b   :  { %v1688_v25 = vpop.permute.xlu1 %1687  ;;  %v1740_v44 = vsel %vm1728_vm4, %v1726_v11, %v9403_v48 }
 0x31c   :  { %v1819_v24 = vsel %vm1812_vm10, %v1805_v45, %v1688_v25  ;;  %v9404_v45 = vld [vmem:[#allocation40_spill] sm:$0xff]  ;;  %v1648_v36 = vpop.permute.xlu0 %1647 }
 0x31d   :  { %6447 = vmatmul.mubr.msk.f32.gmra.mrb[14].mxu1 %vm1827_vm2, %v1819_v24  ;;  %v1795_v25 = vsel %vm1784_vm8, %v1781_v17, %v9404_v45  ;;  %v1754_v24 = vsel %vm1742_vm5, %v1740_v44, %v9405_v9  ;;  %v5397_v45 = vld [vmem:[%s9303_s2] sm:$0xff]  }
 0x31e   :  { %6449 = vmatprep.mubr.msk.f32.mxu1 %vm7198_vm0, %v9378_v47  ;;  %v1809_v50 = vsel %vm1798_vm9, %v1795_v25, %v9406_v49  ;;  %v1768_v14 = vsel %vm1756_vm6, %v1754_v24, %v1490_v4  ;;  %v5398_v25 = vunpack.c.l.bf16 %v5397_v45  ;;  %v5399_v49 = vunpack.c.h.bf16 %v5397_v45 }
 0x31f   :  { %v1690_v1 = vpop.permute.xlu1 %1689  ;;  %v1782_v33 = vsel %vm1770_vm7, %v1768_v14, %v1542_v62 }
 0x320   :  { %v1820_v23 = vsel %vm1812_vm10, %v1806_v40, %v1690_v1  ;;  %v1796_v6 = vsel %vm1784_vm8, %v1782_v33, %v9407_v0  ;;  %v9410_v1 = vld [vmem:[#allocation36_spill] sm:$0xff] }
 0x321   :  { %6450 = vmatmul.mubr.msk.f32.gmra.mrb[16].mxu1 %vm1827_vm2, %v1820_v23  ;;  %v1810_v41 = vsel %vm1798_vm9, %v1796_v6, %v8221_v61  ;;  %v1741_v60 = vsel %vm1728_vm4, %v1727_v28, %v9410_v1  ;;  %v5683_v6 = vld [vmem:[%s9303_s2 + $0x18] sm:$0xff]   ;;  %v5684_v28 = vld [vmem:[%s9303_s2 + $0x20] sm:$0xff]   ;;  %v5685_v1 = vld [vmem:[%s9303_s2 + $0x28] sm:$0xff]  }
 0x322   :  { %6452 = vmatprep.mubr.msk.f32.mxu1 %vm7198_vm0, %v9378_v47  ;;  %v1755_v3 = vsel %vm1742_vm5, %v1741_v60, %v9411_v27  ;;  %v5410_v12 = vunpack.c.l.bf16 %v5683_v6  ;;  %v5411_v22 = vunpack.c.h.bf16 %v5683_v6  ;;  %v5418_v60 = vunpack.c.l.bf16 %v5685_v1 }
 0x323   :  { %v1692_v53 = vpop.permute.xlu1 %1691  ;;  %v1769_v31 = vsel %vm1756_vm6, %v1755_v3, %v9412_v55  ;;  %v5687_v55 = vld [vmem:[%s9303_s2 + $0x38] sm:$0xff]  }
 0x324   :  { %v1821_v30 = vsel %vm1812_vm10, %v1807_v35, %v1692_v53  ;;  %v1783_v61 = vsel %vm1770_vm7, %v1769_v31, %v1544_v18  ;;  %v5419_v18 = vunpack.c.h.bf16 %v5685_v1  ;;  %v5426_v31 = vunpack.c.l.bf16 %v5687_v55 }
 0x325   :  { %6453 = vmatmul.mubr.msk.f32.gmra.mrb[18].mxu1 %vm1827_vm2, %v1821_v30 }
 0x326   :  { %6455 = vmatprep.mubr.msk.f32.mxu1 %vm7198_vm0, %v9378_v47 }
 0x327   :  { %v1694_v39 = vpop.permute.xlu1 %1693 }
 0x328   :  { %v1822_v5 = vsel %vm1812_vm10, %v1808_v52, %v1694_v39 }
 0x329   :  { %6456 = vmatmul.mubr.msk.f32.gmra.mrb[20].mxu1 %vm1827_vm2, %v1822_v5 }
 0x32a   :  { %6458 = vmatprep.mubr.msk.f32.mxu1 %vm7198_vm0, %v9378_v47 }
 0x32b   :  { %v1696_v34 = vpop.permute.xlu1 %1695 }
 0x32c   :  { %v1823_v59 = vsel %vm1812_vm10, %v1809_v50, %v1696_v34  ;;  %v5681_v50 = vld [vmem:[%s9303_s2 + $0x8] sm:$0xff]  }
 0x32d   :  { %6459 = vmatmul.mubr.msk.f32.gmra.mrb[22].mxu1 %vm1827_vm2, %v1823_v59  ;;  %v5402_v34 = vunpack.c.l.bf16 %v5681_v50  ;;  %v5403_v14 = vunpack.c.h.bf16 %v5681_v50  ;;  %v5682_v59 = vld [vmem:[%s9303_s2 + $0x10] sm:$0xff]  }
 0x32e   :  { %6461 = vmatprep.mubr.msk.f32.mxu1 %vm7198_vm0, %v9378_v47  ;;  %v5406_v33 = vunpack.c.l.bf16 %v5682_v59  ;;  %v5407_v0 = vunpack.c.h.bf16 %v5682_v59 }
 0x32f   :  { %v1698_v40 = vpop.permute.xlu1 %1697 }
 0x330   :  { %v1824_v23 = vsel %vm1812_vm10, %v1810_v41, %v1698_v40  ;;  %v5414_v41 = vunpack.c.l.bf16 %v5684_v28  ;;  %v5415_v40 = vunpack.c.h.bf16 %v5684_v28 }
 0x331   :  { %6462 = vmatmul.mubr.msk.f32.gmra.mrb[24].mxu1 %vm1827_vm2, %v1824_v23  ;;  %v5686_v23 = vld [vmem:[%s9303_s2 + $0x30] sm:$0xff]  }
 0x332   :  { %6464 = vmatprep.mubr.msk.f32.mxu1 %vm7198_vm0, %v9378_v47  ;;  %v5422_v27 = vunpack.c.l.bf16 %v5686_v23  ;;  %v5423_v3 = vunpack.c.h.bf16 %v5686_v23 }
 0x333   :  { %v1596_v46 = vpop.permute.xlu1 %1595 }
 0x334   :  { %v1797_v54 = vsel %vm1784_vm8, %v1783_v61, %v1596_v46  ;;  %v5427_v61 = vunpack.c.h.bf16 %v5687_v55  ;;  %v5688_v46 = vld [vmem:[%s9303_s2 + $0x40] sm:$0xff]  }
 0x335   :  { %v1811_v8 = vsel %vm1798_vm9, %v1797_v54, %v1648_v36  ;;  %v5430_v54 = vunpack.c.l.bf16 %v5688_v46  ;;  %v5431_v36 = vunpack.c.h.bf16 %v5688_v46 }
 0x337   :  { %v1700_v15 = vpop.permute.xlu1 %1699 }
 0x338   :  { %v1825_v13 = vsel %vm1812_vm10, %v1811_v8, %v1700_v15  ;;  %v5689_v8 = vld [vmem:[%s9303_s2 + $0x48] sm:$0xff]  }
 0x339   :  { %6465 = vmatmul.mubr.msk.f32.gmra.mrb[26].mxu1 %vm1827_vm2, %v1825_v13  ;;  %v5434_v15 = vunpack.c.l.bf16 %v5689_v8  ;;  %v5435_v13 = vunpack.c.h.bf16 %v5689_v8 }
 0x33a   :  { %6493 = vmatprep.mubr.msk.f32.mxu1 %vm7198_vm0, %v9378_v47 }
 0x3d8   :  { %v1936_v51 = vpop.f32.mrb[2].mxu1 }
 0x3d9   :  { %v6430_v26 = vpop.f32.mrb[3].mxu1 }
 0x3dc   :  { %v1941_v35 = vpop.f32.mrb[4].mxu1 }
 0x3dd   :  { %v6868_v53 = vpack.c.bf16 %v1941_v35, %v1936_v51  ;;  %v6433_v16 = vpop.f32.mrb[5].mxu1  ;;  %v5690_v51 = vld [vmem:[%s9303_s2 + $0x50] sm:$0xff]  }
 0x3de   :  { %v5438_v26 = vunpack.c.l.bf16 %v5690_v51  ;;  %v5439_v35 = vunpack.c.h.bf16 %v5690_v51 }
 0x3df   :  { %6869 = vmatpush3.bf16.msra.mxu1 %v6868_v53  ;;  %v5691_v53 = vld [vmem:[%s9303_s2 + $0x58] sm:$0xff]  }
 0x3e0   :  { %v1946_v30 = vpop.f32.mrb[6].mxu1  ;;  %6870 = vmatprep.subr.bf16.mxu1 %v9413_v21  ;;  %v5442_v16 = vunpack.c.l.bf16 %v5691_v53 }
 0x3e1   :  { %v6436_v63 = vpop.f32.mrb[7].mxu1 }
 0x3e2   :  { %v5692_v63 = vld [vmem:[%s9303_s2 + $0x60] sm:$0xff]  }
 0x3e4   :  { %v1951_v58 = vpop.f32.mrb[8].mxu1 }
 0x3e5   :  { %v6871_v32 = vpack.c.bf16 %v1951_v58, %v1946_v30  ;;  %v6439_v2 = vpop.f32.mrb[9].mxu1  ;;  %v5443_v30 = vunpack.c.h.bf16 %v5691_v53  ;;  %v5446_v58 = vunpack.c.l.bf16 %v5692_v63 }
 0x3e6   :  { %v2026_v2 = vld [vmem:[%s9303_s2 + $0x68] sm:$0xf] }
 0x3e7   :  { %6872 = vmatpush3.bf16.msra.mxu1 %v6871_v32  ;;  %v5447_v32 = vunpack.c.h.bf16 %v5692_v63 }
 0x3e8   :  { %v1956_v38 = vpop.f32.mrb[10].mxu1  ;;  %6873 = vmatprep.subr.bf16.mxu1 %v9413_v21 }
 0x3e9   :  { %v6442_v57 = vpop.f32.mrb[11].mxu1 }
 0x3ec   :  { %v1961_v4 = vpop.f32.mrb[12].mxu1 }
 0x3ed   :  { %v6874_v29 = vpack.c.bf16 %v1961_v4, %v1956_v38  ;;  %v6445_v37 = vpop.f32.mrb[13].mxu1  ;;  %v2053_v38 = vunpack.c.l.bf16 %v2026_v2 }
 0x3ef   :  { %6875 = vmatpush3.bf16.msra.mxu1 %v6874_v29 }
 0x3f0   :  { %v1966_v10 = vpop.f32.mrb[14].mxu1  ;;  %6876 = vmatprep.subr.bf16.mxu1 %v9413_v21 }
 0x3f1   :  { %v6448_v7 = vpop.f32.mrb[15].mxu1 }
 0x3f4   :  { %v1971_v56 = vpop.f32.mrb[16].mxu1 }
 0x3f5   :  { %v6877_v52 = vpack.c.bf16 %v1971_v56, %v1966_v10  ;;  %v6451_v39 = vpop.f32.mrb[17].mxu1 }
 0x3f7   :  { %6878 = vmatpush3.bf16.msra.mxu1 %v6877_v52 }
 0x3f8   :  { %v1976_v42 = vpop.f32.mrb[18].mxu1  ;;  %6879 = vmatprep.subr.bf16.mxu1 %v9413_v21 }
 0x3f9   :  { %v6454_v5 = vpop.f32.mrb[19].mxu1 }
 0x3fc   :  { %v1981_v20 = vpop.f32.mrb[20].mxu1 }
 0x3fd   :  { %v6880_v19 = vpack.c.bf16 %v1981_v20, %v1976_v42  ;;  %v6457_v11 = vpop.f32.mrb[21].mxu1  ;;  %v2455_v42 = vld [vmem:[%s9309_s8] sm:$0xff] }
 0x3ff   :  { %6881 = vmatpush3.bf16.msra.mxu1 %v6880_v19 }
 0x400   :  { %v1986_v43 = vpop.f32.mrb[22].mxu1  ;;  %6882 = vmatprep.subr.bf16.mxu1 %v9413_v21 }
 0x401   :  { %v6460_v17 = vpop.f32.mrb[23].mxu1 }
 0x404   :  { %v1991_v48 = vpop.f32.mrb[24].mxu1 }
 0x405   :  { %v6883_v44 = vpack.c.bf16 %v1991_v48, %v1986_v43  ;;  %v6463_v62 = vpop.f32.mrb[25].mxu1 }
 0x407   :  { %6884 = vmatpush3.bf16.msra.mxu1 %v6883_v44 }
 0x408   :  { %6491 = vmatprep.subr.mxu1 %v9378_v47 }
 0x40c   :  { %v1996_v9 = vpop.f32.mrb[26].mxu1 }
 0x40d   :  { %v6466_v24 = vpop.f32.mrb[27].mxu1  ;;  %6492 = vmatpush3.msra.mxu1 %v1996_v9 }
 0x40e   :  { %6494 = vmatmul.mubr.msk.f32.vlgmr.msra.gmra.mrb[28].mxu1 %vm296_vm1, %v5398_v25  ;;  %6574 = vmatprep.subr.mxu1 %v9378_v47 }
 0x40f   :  { %6496 = vmatprep.mubr.msk.f32.mxu1 %vm7198_vm0, %v9378_v47 }
 0x412   :  { %6497 = vmatmul.mubr.msk.f32.gmra.mrb[30].mxu1 %vm296_vm1, %v5399_v49 }
 0x413   :  { %6499 = vmatprep.mubr.msk.f32.mxu1 %vm7198_vm0, %v9378_v47 }
 0x414   :  { %6575 = vmatpush3.xpose.msk.msra.mxu1 %vm1827_vm2, %v2455_v42 }
 0x415   :  { %6885 = vmatprep.subr.bf16.mxu1 %v9413_v21 }
 0x416   :  { %6500 = vmatmul.mubr.msk.f32.gmra.mrb[32].mxu1 %vm296_vm1, %v5402_v34 }
 0x417   :  { %6502 = vmatprep.mubr.msk.f32.mxu1 %vm7198_vm0, %v9378_v47 }
 0x41a   :  { %6503 = vmatmul.mubr.msk.f32.gmra.mrb[34].mxu1 %vm296_vm1, %v5403_v14 }
 0x41b   :  { %6505 = vmatprep.mubr.msk.f32.mxu1 %vm7198_vm0, %v9378_v47 }
 0x41e   :  { %6506 = vmatmul.mubr.msk.f32.gmra.mrb[36].mxu1 %vm296_vm1, %v5406_v33 }
 0x41f   :  { %6508 = vmatprep.mubr.msk.f32.mxu1 %vm7198_vm0, %v9378_v47 }
 0x422   :  { %6509 = vmatmul.mubr.msk.f32.gmra.mrb[38].mxu1 %vm296_vm1, %v5407_v0 }
 0x423   :  { %6511 = vmatprep.mubr.msk.f32.mxu1 %vm7198_vm0, %v9378_v47 }
 0x426   :  { %6512 = vmatmul.mubr.msk.f32.gmra.mrb[40].mxu1 %vm296_vm1, %v5410_v12 }
 0x427   :  { %6514 = vmatprep.mubr.msk.f32.mxu1 %vm7198_vm0, %v9378_v47 }
 0x42a   :  { %6515 = vmatmul.mubr.msk.f32.gmra.mrb[42].mxu1 %vm296_vm1, %v5411_v22 }
 0x42b   :  { %6517 = vmatprep.mubr.msk.f32.mxu1 %vm7198_vm0, %v9378_v47 }
 0x42e   :  { %6518 = vmatmul.mubr.msk.f32.gmra.mrb[44].mxu1 %vm296_vm1, %v5414_v41 }
 0x42f   :  { %6520 = vmatprep.mubr.msk.f32.mxu1 %vm7198_vm0, %v9378_v47 }
 0x432   :  { %6521 = vmatmul.mubr.msk.f32.gmra.mrb[46].mxu1 %vm296_vm1, %v5415_v40 }
 0x433   :  { %6523 = vmatprep.mubr.msk.f32.mxu1 %vm7198_vm0, %v9378_v47 }
 0x436   :  { %6524 = vmatmul.mubr.msk.f32.gmra.mrb[48].mxu1 %vm296_vm1, %v5418_v60 }
 0x437   :  { %6526 = vmatprep.mubr.msk.f32.mxu1 %vm7198_vm0, %v9378_v47 }
 0x43a   :  { %6527 = vmatmul.mubr.msk.f32.gmra.mrb[50].mxu1 %vm296_vm1, %v5419_v18 }
 0x43b   :  { %6529 = vmatprep.mubr.msk.f32.mxu1 %vm7198_vm0, %v9378_v47 }
 0x43e   :  { %6530 = vmatmul.mubr.msk.f32.gmra.mrb[52].mxu1 %vm296_vm1, %v5422_v27 }
 0x43f   :  { %6532 = vmatprep.mubr.msk.f32.mxu1 %vm7198_vm0, %v9378_v47 }
 0x442   :  { %6533 = vmatmul.mubr.msk.f32.gmra.mrb[54].mxu1 %vm296_vm1, %v5423_v3 }
 0x443   :  { %6535 = vmatprep.mubr.msk.f32.mxu1 %vm7198_vm0, %v9378_v47 }
 0x446   :  { %6536 = vmatmul.mubr.msk.f32.gmra.mrb[56].mxu1 %vm296_vm1, %v5426_v31 }
 0x447   :  { %6538 = vmatprep.mubr.msk.f32.mxu1 %vm7198_vm0, %v9378_v47 }
 0x44a   :  { %6539 = vmatmul.mubr.msk.f32.gmra.mrb[58].mxu1 %vm296_vm1, %v5427_v61 }
 0x44b   :  { %6541 = vmatprep.mubr.msk.f32.mxu1 %vm7198_vm0, %v9378_v47 }
 0x44e   :  { %6542 = vmatmul.mubr.msk.f32.gmra.mrb[60].mxu1 %vm296_vm1, %v5430_v54 }
 0x44f   :  { %6544 = vmatprep.mubr.msk.f32.mxu1 %vm7198_vm0, %v9378_v47 }
 0x452   :  { %6545 = vmatmul.mubr.msk.f32.gmra.mrb[62].mxu1 %vm296_vm1, %v5431_v36 }
 0x453   :  { %6547 = vmatprep.mubr.msk.f32.mxu1 %vm7198_vm0, %v9378_v47 }
 0x456   :  { %6548 = vmatmul.mubr.msk.f32.gmra.mrb[64].mxu1 %vm296_vm1, %v5434_v15 }
 0x457   :  { %6550 = vmatprep.mubr.msk.f32.mxu1 %vm7198_vm0, %v9378_v47 }
 0x45a   :  { %6551 = vmatmul.mubr.msk.f32.gmra.mrb[66].mxu1 %vm296_vm1, %v5435_v13 }
 0x45b   :  { %6553 = vmatprep.mubr.msk.f32.mxu1 %vm7198_vm0, %v9378_v47 }
 0x45e   :  { %6554 = vmatmul.mubr.msk.f32.gmra.mrb[68].mxu1 %vm296_vm1, %v5438_v26 }
 0x45f   :  { %6556 = vmatprep.mubr.msk.f32.mxu1 %vm7198_vm0, %v9378_v47 }
 0x462   :  { %6557 = vmatmul.mubr.msk.f32.gmra.mrb[70].mxu1 %vm296_vm1, %v5439_v35 }
 0x463   :  { %6559 = vmatprep.mubr.msk.f32.mxu1 %vm7198_vm0, %v9378_v47 }
 0x466   :  { %6560 = vmatmul.mubr.msk.f32.gmra.mrb[72].mxu1 %vm296_vm1, %v5442_v16 }
 0x467   :  { %6562 = vmatprep.mubr.msk.f32.mxu1 %vm7198_vm0, %v9378_v47 }
 0x46a   :  { %6563 = vmatmul.mubr.msk.f32.gmra.mrb[74].mxu1 %vm296_vm1, %v5443_v30 }
 0x46b   :  { %6565 = vmatprep.mubr.msk.f32.mxu1 %vm7198_vm0, %v9378_v47 }
 0x46e   :  { %6566 = vmatmul.mubr.msk.f32.gmra.mrb[76].mxu1 %vm296_vm1, %v5446_v58 }
 0x46f   :  { %6568 = vmatprep.mubr.msk.f32.mxu1 %vm7198_vm0, %v9378_v47 }
 0x472   :  { %6569 = vmatmul.mubr.msk.f32.gmra.mrb[78].mxu1 %vm296_vm1, %v5447_v32 }
 0x473   :  { %6571 = vmatprep.mubr.msk.f32.mxu1 %vm7198_vm0, %v9378_v47 }
 0x476   :  { %6572 = vmatmul.mubr.msk.f32.gmra.mrb[80].mxu1 %vm296_vm1, %v2053_v38 }
 0x477   :  { %6576 = vmatprep.mubr.msk.f32.mxu1 %vm7198_vm0, %v9378_v47 }
 0x4e1   :  { %v8575_v57 = vpop.f32.mrb[28].mxu1 }
 0x4e2   :  { %v6495_v4 = vpop.f32.mrb[29].mxu1 }
 0x4e5   :  { %v8577_v29 = vpop.f32.mrb[30].mxu1 }
 0x4e6   :  { %v6498_v37 = vpop.f32.mrb[31].mxu1 }
 0x4e9   :  { %v8579_v10 = vpop.f32.mrb[32].mxu1 }
 0x4ea   :  { %v6501_v7 = vpop.f32.mrb[33].mxu1 }
 0x4ed   :  { %v2216_v56 = vpop.f32.mrb[34].mxu1 }
 0x4ee   :  { %2338 = vrot.lane.b32.xlu0 %v2216_v56, %s7200_s27  ;;  %v6504_v52 = vpop.f32.mrb[35].mxu1 }
 0x4f1   :  { %v2221_v39 = vpop.f32.mrb[36].mxu1 }
 0x4f2   :  { %2340 = vrot.lane.b32.xlu0 %v2221_v39, %s7200_s27  ;;  %v6507_v5 = vpop.f32.mrb[37].mxu1 }
 0x4f5   :  { %v2226_v20 = vpop.f32.mrb[38].mxu1 }
 0x4f6   :  { %2342 = vrot.lane.b32.xlu0 %v2226_v20, %s7200_s27  ;;  %v6510_v19 = vpop.f32.mrb[39].mxu1 }
 0x4f9   :  { %v2231_v11 = vpop.f32.mrb[40].mxu1 }
 0x4fa   :  { %2350 = vrot.lane.b32.xlu1 %v2231_v11, %s7201_s26  ;;  %v6513_v43 = vpop.f32.mrb[41].mxu1 }
 0x4fd   :  { %v2236_v17 = vpop.f32.mrb[42].mxu1 }
 0x4fe   :  { %2352 = vrot.lane.b32.xlu0 %v2236_v17, %s7201_s26  ;;  %v6516_v48 = vpop.f32.mrb[43].mxu1 }
 0x501   :  { %v2241_v44 = vpop.f32.mrb[44].mxu1 }
 0x502   :  { %2354 = vrot.lane.b32.xlu1 %v2241_v44, %s7201_s26  ;;  %v6519_v62 = vpop.f32.mrb[45].mxu1 }
 0x505   :  { %v2246_v45 = vpop.f32.mrb[46].mxu1 }
 0x506   :  { %2362 = vrot.lane.b32.xlu0 %v2246_v45, %s7202_s28  ;;  %v6522_v25 = vpop.f32.mrb[47].mxu1 }
 0x509   :  { %v2251_v9 = vpop.f32.mrb[48].mxu1 }
 0x50a   :  { %2364 = vrot.lane.b32.xlu0 %v2251_v9, %s7202_s28  ;;  %v6525_v24 = vpop.f32.mrb[49].mxu1 }
 0x50d   :  { %v2256_v49 = vpop.f32.mrb[50].mxu1 }
 0x50e   :  { %v6528_v50 = vpop.f32.mrb[51].mxu1 }
 0x511   :  { %v2261_v34 = vpop.f32.mrb[52].mxu1 }
 0x512   :  { %2374 = vrot.lane.b32.xlu1 %v2261_v34, %s7203_s30  ;;  %v6531_v14 = vpop.f32.mrb[53].mxu1 }
 0x515   :  { %v2266_v59 = vpop.f32.mrb[54].mxu1 }
 0x516   :  { %2376 = vrot.lane.b32.xlu0 %v2266_v59, %s7203_s30  ;;  %v6534_v33 = vpop.f32.mrb[55].mxu1 }
 0x519   :  { %v2271_v0 = vpop.f32.mrb[56].mxu1 }
 0x51a   :  { %v6537_v6 = vpop.f32.mrb[57].mxu1 }
 0x51d   :  { %v2276_v12 = vpop.f32.mrb[58].mxu1 }
 0x51e   :  { %2386 = vrot.lane.b32.xlu1 %v2276_v12, %s7204_s1  ;;  %v6540_v22 = vpop.f32.mrb[59].mxu1 }
 0x521   :  { %v2281_v28 = vpop.f32.mrb[60].mxu1 }
 0x522   :  { %2388 = vrot.lane.b32.xlu0 %v2281_v28, %s7204_s1  ;;  %v6543_v41 = vpop.f32.mrb[61].mxu1 }
 0x525   :  { %v2286_v40 = vpop.f32.mrb[62].mxu1 }
 0x526   :  { %v6546_v1 = vpop.f32.mrb[63].mxu1 }
 0x529   :  { %v2291_v60 = vpop.f32.mrb[64].mxu1 }
 0x52a   :  { %2398 = vrot.lane.b32.xlu1 %v2291_v60, %s7205_s23  ;;  %v6549_v18 = vpop.f32.mrb[65].mxu1 }
 0x52d   :  { %v2296_v23 = vpop.f32.mrb[66].mxu1 }
 0x52e   :  { %2400 = vrot.lane.b32.xlu1 %v2296_v23, %s7205_s23  ;;  %v6552_v27 = vpop.f32.mrb[67].mxu1 }
 0x531   :  { %v2301_v3 = vpop.f32.mrb[68].mxu1 }
 0x532   :  { %v6555_v55 = vpop.f32.mrb[69].mxu1 }
 0x535   :  { %v2306_v31 = vpop.f32.mrb[70].mxu1 }
 0x536   :  { %2410 = vrot.lane.b32.xlu1 %v2306_v31, %s7206_s24  ;;  %v6558_v61 = vpop.f32.mrb[71].mxu1 }
 0x537   :  { %v8653_v61 = vld [vmem:[%s9314_s13] sm:$0xff] }
 0x539   :  { %v2311_v46 = vpop.f32.mrb[72].mxu1 }
 0x53a   :  { %2412 = vrot.lane.b32.xlu0 %v2311_v46, %s7206_s24  ;;  %v6561_v54 = vpop.f32.mrb[73].mxu1 }
 0x53d   :  { %v2316_v36 = vpop.f32.mrb[74].mxu1 }
 0x53e   :  { %2366 = vrot.lane.b32.xlu0 %v2256_v49, %s7202_s28  ;;  %v6564_v8 = vpop.f32.mrb[75].mxu1 }
 0x541   :  { %v2321_v15 = vpop.f32.mrb[76].mxu1 }
 0x542   :  { %2390 = vrot.lane.b32.xlu0 %v2286_v40, %s7204_s1  ;;  %2422 = vrot.lane.b32.xlu1 %v2321_v15, %s7207_s7  ;;  %v6567_v13 = vpop.f32.mrb[77].mxu1 }
 0x545   :  { %v2326_v51 = vpop.f32.mrb[78].mxu1 }
 0x546   :  { %2414 = vrot.lane.b32.xlu0 %v2316_v36, %s7206_s24  ;;  %2424 = vrot.lane.b32.xlu1 %v2326_v51, %s7207_s7  ;;  %v6570_v26 = vpop.f32.mrb[79].mxu1 }
 0x549   :  { %v2331_v35 = vpop.f32.mrb[80].mxu1 }
 0x54a   :  { %2378 = vrot.lane.b32.xlu1 %v2271_v0, %s7203_s30  ;;  %v6573_v53 = vpop.f32.mrb[81].mxu1 }
 0x54e   :  { %2402 = vrot.lane.b32.xlu1 %v2301_v3, %s7205_s23  ;;  %v2456_v3 = vlaneseq }
 0x550   :  { %v8647_v55 = vshrl.u32 %v2456_v3, 7 }
 0x552   :  { %2426 = vrot.lane.b32.xlu1 %v2331_v35, %s7207_s7  ;;  %v2458_v31 = vsub.s32 0, %v8647_v55 }
 0x554   :  { %v2459_v46 = vrot.slane %v8653_v61, %v2458_v31 }
 0x560   :  { %v2339_v16 = vpop.permute.xlu0 %2338 }
 0x561   :  { %v2431_v5 = vsel %vm1714_vm3, %v8575_v57, %v2339_v16 }
 0x564   :  { %v2341_v30 = vpop.permute.xlu0 %2340 }
 0x565   :  { %v2432_v48 = vsel %vm1714_vm3, %v8577_v29, %v2341_v30 }
 0x568   :  { %v2343_v58 = vpop.permute.xlu0 %2342 }
 0x569   :  { %v2433_v0 = vsel %vm1714_vm3, %v8579_v10, %v2343_v58 }
 0x56c   :  { %v2351_v63 = vpop.permute.xlu1 %2350 }
 0x56d   :  { %v2434_v20 = vsel %vm1728_vm4, %v2431_v5, %v2351_v63 }
 0x570   :  { %v2353_v2 = vpop.permute.xlu0 %2352 }
 0x571   :  { %v2435_v62 = vsel %vm1728_vm4, %v2432_v48, %v2353_v2 }
 0x574   :  { %v2355_v32 = vpop.permute.xlu1 %2354 }
 0x575   :  { %v2436_v6 = vsel %vm1728_vm4, %v2433_v0, %v2355_v32 }
 0x578   :  { %v2363_v4 = vpop.permute.xlu0 %2362 }
 0x579   :  { %v2437_v19 = vsel %vm1742_vm5, %v2434_v20, %v2363_v4 }
 0x57c   :  { %v2365_v7 = vpop.permute.xlu0 %2364 }
 0x57d   :  { %v2438_v25 = vsel %vm1742_vm5, %v2435_v62, %v2365_v7  ;;  %v2608_v62 = vld [vmem:[%s9310_s9 + $0x10] sm:$0xff] }
 0x584   :  { %v2375_v38 = vpop.permute.xlu1 %2374 }
 0x585   :  { %v2440_v43 = vsel %vm1756_vm6, %v2437_v19, %v2375_v38 }
 0x588   :  { %v2377_v52 = vpop.permute.xlu0 %2376 }
 0x589   :  { %v2441_v24 = vsel %vm1756_vm6, %v2438_v25, %v2377_v52 }
 0x590   :  { %v2387_v37 = vpop.permute.xlu1 %2386 }
 0x591   :  { %v2443_v44 = vsel %vm1770_vm7, %v2440_v43, %v2387_v37  ;;  %v2606_v43 = vld [vmem:[%s9310_s9] sm:$0xff] }
 0x594   :  { %v2389_v42 = vpop.permute.xlu0 %2388 }
 0x595   :  { %v2444_v50 = vsel %vm1770_vm7, %v2441_v24, %v2389_v42 }
 0x59c   :  { %v2399_v56 = vpop.permute.xlu1 %2398 }
 0x59d   :  { %v2446_v45 = vsel %vm1784_vm8, %v2443_v44, %v2399_v56 }
 0x5a0   :  { %v2401_v39 = vpop.permute.xlu1 %2400 }
 0x5a1   :  { %v2447_v29 = vsel %vm1784_vm8, %v2444_v50, %v2401_v39  ;;  %v2594_v50 = vsub.s32 1, %v8647_v55 }
 0x5a8   :  { %v2411_v11 = vpop.permute.xlu1 %2410 }
 0x5a9   :  { %v2449_v57 = vsel %vm1798_vm9, %v2446_v45, %v2411_v11 }
 0x5ac   :  { %v2413_v17 = vpop.permute.xlu0 %2412 }
 0x5ad   :  { %v2450_v14 = vsel %vm1798_vm9, %v2447_v29, %v2413_v17  ;;  %v2607_v17 = vld [vmem:[%s9310_s9 + $0x8] sm:$0xff]  ;;  %v2601_v29 = vsub.s32 2, %v8647_v55  ;;  %s7208_s9 = smov 120  }
 0x5ae   :  { %v6886_v48 = vpack.c.bf16 %v2607_v17, %v2606_v43 }
 0x5b0   :  { %v2367_v34 = vpop.permute.xlu0 %2366 }
 0x5b1   :  { %v2439_v12 = vsel %vm1742_vm5, %v2436_v6, %v2367_v34  ;;  %v2595_v34 = vrot.slane %v8653_v61, %v2594_v50 }
 0x5b4   :  { %v2423_v9 = vpop.permute.xlu1 %2422  ;;  %v2391_v28 = vpop.permute.xlu0 %2390 }
 0x5b5   :  { %v2452_v49 = vsel %vm1812_vm10, %v2449_v57, %v2423_v9 }
 0x5b6   :  { %6577 = vmatmul.mubr.msk.f32.vlgmr.msra.gmra.mrb[82].mxu1 %vm1827_vm2, %v2452_v49 }
 0x5b7   :  { %6579 = vmatprep.mubr.msk.f32.mxu1 %vm7198_vm0, %v9378_v47  ;;  %6888 = vmatpush3.bf16.xpose.msk.msra.mxu1 %vm8682_vm11, %v6886_v48 }
 0x5b8   :  { %v2425_v59 = vpop.permute.xlu1 %2424  ;;  %v2415_v18 = vpop.permute.xlu0 %2414  ;;  %6589 = vmatprep.subr.mxu1 %v9378_v47 }
 0x5b9   :  { %v2453_v33 = vsel %vm1812_vm10, %v2450_v14, %v2425_v59  ;;  %v2602_v59 = vrot.slane %v8653_v61, %v2601_v29 }
 0x5ba   :  { %6580 = vmatmul.mubr.msk.f32.gmra.mrb[84].mxu1 %vm1827_vm2, %v2453_v33 }
 0x5bb   :  { %6582 = vmatprep.mubr.msk.f32.mxu1 %vm7198_vm0, %v9378_v47 }
 0x5bc   :  { %v2379_v22 = vpop.permute.xlu1 %2378 }
 0x5bd   :  { %v2442_v41 = vsel %vm1756_vm6, %v2439_v12, %v2379_v22 }
 0x5be   :  { %v2445_v40 = vsel %vm1770_vm7, %v2442_v41, %v2391_v28 }
 0x5bf   :  { %6590 = vmatpush3.xpose.msk.msra.mxu1 %vm1714_vm3, %v2608_v62 }
 0x5c0   :  { %v2403_v1 = vpop.permute.xlu1 %2402  ;;  %6889 = vmatprep.subr.bf16.mxu1 %v9413_v21 }
 0x5c1   :  { %v2448_v60 = vsel %vm1784_vm8, %v2445_v40, %v2403_v1 }
 0x5c2   :  { %v2451_v10 = vsel %vm1798_vm9, %v2448_v60, %v2415_v18 }
 0x5c4   :  { %v2427_v23 = vpop.permute.xlu1 %2426 }
 0x5c5   :  { %v2454_v27 = vsel %vm1812_vm10, %v2451_v10, %v2427_v23 }
 0x5c6   :  { %6583 = vmatmul.mubr.msk.f32.gmra.mrb[86].mxu1 %vm1827_vm2, %v2454_v27 }
 0x5c7   :  { %6591 = vmatprep.mubr.msk.f32.mxu1 %vm7198_vm0, %v9378_v47 }
 0x689   :  { %v2538_v54 = vpop.f32.mrb[82].mxu1 }
 0x68a   :  { %v8656_v36 = vadd.f32 %v2538_v54, %v2459_v46  ;;  %v6578_v8 = vpop.f32.mrb[83].mxu1 }
 0x68c   :  { %v2552_v15 = vsel %vm1714_vm3, %v8656_v36, 0.0 }
 0x68d   :  { %2553 = vadd.xlane.f32.xlu0 %v2552_v15  ;;  %v2543_v13 = vpop.f32.mrb[84].mxu1 }
 0x68e   :  { %v8660_v51 = vadd.f32 %v2543_v13, %v2459_v46  ;;  %v6581_v26 = vpop.f32.mrb[85].mxu1 }
 0x690   :  { %v2555_v35 = vsel %vm1714_vm3, %v8660_v51, 0.0 }
 0x691   :  { %2556 = vadd.xlane.f32.xlu1 %v2555_v35 }
 0x699   :  { %v2548_v53 = vpop.f32.mrb[86].mxu1 }
 0x69a   :  { %v8664_v16 = vadd.f32 %v2548_v53, %v2459_v46  ;;  %v6584_v30 = vpop.f32.mrb[87].mxu1 }
 0x69c   :  { %v2558_v63 = vsel %vm1714_vm3, %v8664_v16, 0.0 }
 0x69d   :  { %2559 = vadd.xlane.f32.xlu0 %v2558_v63 }
 0x71a   :  { %v2554_v58 = vpop.xlane.xlu0 %2553 }
 0x71b   :  { %v2562_v32 = vmul.f32 0.125, %v2554_v58 }
 0x71d   :  { %v2565_v2 = vsub.f32 %v8656_v36, %v2562_v32  ;;  %v7209_v32 = vmov 0  }
 0x71e   :  { %v2557_v38 = vpop.xlane.xlu1 %2556  ;;  %6981 = vset.pattern.permute.xlu1 %v7209_v32 }
 0x71f   :  { %v2563_v4 = vmul.f32 0.125, %v2557_v38  ;;  %v2568_v37 = vmul.f32 %v2565_v2, %v2565_v2 }
 0x721   :  { %v2566_v7 = vsub.f32 %v8660_v51, %v2563_v4  ;;  %v2571_v56 = vsel %vm1714_vm3, %v2568_v37, 0.0  ;;  %v2810_v37 = vadd.s32 8, %v8647_v55 }
 0x722   :  { %2572 = vadd.xlane.f32.xlu0 %v2571_v56 }
 0x723   :  { %v2569_v52 = vmul.f32 %v2566_v7, %v2566_v7  ;;  %vm2815_vm14 = vcmp.ge.s32.totalorder %v2810_v37, 9 }
 0x725   :  { %v2574_v39 = vsel %vm1714_vm3, %v2569_v52, 0.0  ;;  %v2818_v52 = vsel %vm2815_vm14, 1, %v7209_v32 }
 0x726   :  { %2575 = vadd.xlane.f32.xlu1 %v2574_v39 }
 0x72a   :  { %v2560_v42 = vpop.xlane.xlu0 %2559 }
 0x72b   :  { %v2564_v5 = vmul.f32 0.125, %v2560_v42 }
 0x72d   :  { %v2567_v20 = vsub.f32 %v8664_v16, %v2564_v5 }
 0x72f   :  { %v2570_v19 = vmul.f32 %v2567_v20, %v2567_v20 }
 0x731   :  { %v2577_v11 = vsel %vm1714_vm3, %v2570_v19, 0.0 }
 0x732   :  { %2578 = vadd.xlane.f32.xlu0 %v2577_v11 }
 0x7af   :  { %v2573_v45 = vpop.xlane.xlu0 %2572 }
 0x7b0   :  { %v2580_v25 = vmul.f32 0.125, %v2573_v45 }
 0x7b2   :  { %v2583_v57 = vadd.f32 1e-05, %v2580_v25 }
 0x7b3   :  { %v2576_v9 = vpop.xlane.xlu1 %2575 }
 0x7b4   :  { %7085 = vrsqrt.f32 %v2583_v57  ;;  %v2581_v24 = vmul.f32 0.125, %v2576_v9 }
 0x7b6   :  { %v2584_v49 = vadd.f32 1e-05, %v2581_v24 }
 0x7b8   :  { %7087 = vrsqrt.f32 %v2584_v49 }
 0x7be   :  { %v7086_v14 = vpop.eup %7085 }
 0x7bf   :  { %v2589_v33 = vmul.f32 %v7086_v14, %v2565_v2  ;;  %v2579_v0 = vpop.xlane.xlu0 %2578  ;;  %v2813_v2 = vand.u32 127, %v2456_v3 }
 0x7c0   :  { %v2582_v6 = vmul.f32 0.125, %v2579_v0 }
 0x7c1   :  { %v2596_v12 = vmul.f32 %v2595_v34, %v2589_v33  ;;  %vm2820_vm12 = vcmp.ge.s32.totalorder %v2813_v2, 9  ;;  %vm2831_vm13 = vcmp.ge.s32.totalorder %v2813_v2, 18  ;;  %v5449_v2 = vld [vmem:[%s9305_s4] sm:$0xff]  }
 0x7c2   :  { %v7088_v22 = vpop.eup %7087  ;;  %v2585_v28 = vadd.f32 1e-05, %v2582_v6  ;;  %v2821_v38 = vsel %vm2820_vm12, 1, %v7209_v32  ;;  %v2832_v4 = vsel %vm2831_vm13, 1, %v7209_v32 }
 0x7c3   :  { %v2603_v41 = vadd.f32 %v2602_v59, %v2596_v12  ;;  %v2590_v40 = vmul.f32 %v7088_v22, %v2566_v7  ;;  %v2811_v7 = vadd.s32 16, %v8647_v55  ;;  %v2833_v56 = vadd.s32 %v2832_v4, %v2821_v38 }
 0x7c4   :  { %7089 = vrsqrt.f32 %v2585_v28  ;;  %v5450_v38 = vunpack.c.l.bf16 %v5449_v2  ;;  %v2974_v4 = vsub.s32 3, %v8647_v55 }
 0x7c5   :  { %6592 = vmatmul.mubr.msk.f32.vlgmr.msra.gmra.mrb[88].mxu1 %vm1714_vm3, %v2603_v41  ;;  %v2597_v1 = vmul.f32 %v2595_v34, %v2590_v40  ;;  %vm2824_vm15 = vcmp.ge.s32.totalorder %v2811_v7, 18  ;;  %vm5025_vm2 = vcmp.eq.s32.totalorder %v2833_v56, 0  ;;  %vm2835_vm7 = vcmp.eq.s32.totalorder %v2818_v52, %v2833_v56 }
 0x7c6   :  { %6594 = vmatprep.mubr.msk.f32.mxu1 %vm7198_vm0, %v9378_v47  ;;  %v2827_v39 = vsel %vm2824_vm15, 1, %v7209_v32  ;;  %v2975_v37 = vrot.slane %v8653_v61, %v2974_v4  ;;  %v5693_v61 = vld [vmem:[%s9305_s4 + $0x8] sm:$0xff]  }
 0x7c7   :  { %v2604_v60 = vadd.f32 %v2602_v59, %v2597_v1  ;;  %v2830_v3 = vadd.s32 1, %v2827_v39 }
 0x7c9   :  { %6595 = vmatmul.mubr.msk.f32.gmra.mrb[90].mxu1 %vm1714_vm3, %v2604_v60  ;;  %vm2836_vm9 = vcmp.eq.s32.totalorder %v2830_v3, %v2833_v56 }
 0x7ca   :  { %6597 = vmatprep.mubr.msk.f32.mxu1 %vm7198_vm0, %v9378_v47 }
 0x7ce   :  { %v7090_v18 = vpop.eup %7089 }
 0x7cf   :  { %v2591_v10 = vmul.f32 %v7090_v18, %v2567_v20 }
 0x7d1   :  { %v2598_v23 = vmul.f32 %v2595_v34, %v2591_v10 }
 0x7d3   :  { %v2605_v27 = vadd.f32 %v2602_v59, %v2598_v23 }
 0x7d5   :  { %6598 = vmatmul.mubr.msk.f32.gmra.mrb[92].mxu1 %vm1714_vm3, %v2605_v27 }
 0x7d6   :  { %6606 = vmatprep.mubr.msk.f32.mxu1 %vm7198_vm0, %v9378_v47 }
 0x898   :  { %v2693_v31 = vpop.f32.mrb[88].mxu1 }
 0x899   :  { %v6593_v46 = vpop.f32.mrb[89].mxu1 }
 0x89c   :  { %v2698_v54 = vpop.f32.mrb[90].mxu1 }
 0x89d   :  { %v8707_v8 = vpack.i.bf16 %v2698_v54, %v2693_v31  ;;  %v6596_v15 = vpop.f32.mrb[91].mxu1 }
 0x89f   :  { %6972 = vrot.lane.b32.xlu1 %v8707_v8, %s7208_s9 }
 0x8a8   :  { %v8710_v13 = vpop.f32.mrb[92].mxu1 }
 0x8a9   :  { %2714 = vrot.lane.b32.xlu0 %v8710_v13, %s7208_s9  ;;  %v6599_v26 = vpop.f32.mrb[93].mxu1 }
 0x911   :  { %v6973_v35 = vpop.permute.xlu1 %6972 }
 0x912   :  { %v6975_v53 = vunpack.i.h.bf16 %v6973_v35  ;;  %v6974_v30 = vunpack.i.l.bf16 %v6973_v35 }
 0x914   :  { %v6890_v63 = vpack.c.bf16 %v6975_v53, %v6974_v30 }
 0x916   :  { %6892 = vmatpush3.bf16.xpose.msk.msra.mxu1 %vm8682_vm11, %v6890_v63 }
 0x917   :  { %6604 = vmatprep.subr.mxu1 %v9378_v47 }
 0x91b   :  { %v2715_v58 = vpop.permute.xlu0 %2714 }
 0x91e   :  { %6605 = vmatpush3.xpose.msk.msra.mxu1 %vm1714_vm3, %v2715_v58 }
 0x91f   :  { %6893 = vmatprep.subr.bf16.mxu1 %v9413_v21 }
 0x921   :  { %6607 = vmatmul.mubr.msk.f32.vlgmr.msra.gmra.mrb[94].mxu1 %vm1714_vm3, %v2693_v31 }
 0x922   :  { %6609 = vmatprep.mubr.msk.f32.mxu1 %vm7198_vm0, %v9378_v47 }
 0x925   :  { %6610 = vmatmul.mubr.msk.f32.gmra.mrb[96].mxu1 %vm1714_vm3, %v2698_v54 }
 0x926   :  { %6612 = vmatprep.mubr.msk.f32.mxu1 %vm7198_vm0, %v9378_v47 }
 0x929   :  { %6613 = vmatmul.mubr.msk.f32.gmra.mrb[98].mxu1 %vm1714_vm3, %v8710_v13 }
 0x92a   :  { %6621 = vmatprep.mubr.msk.f32.mxu1 %vm7198_vm0, %v9378_v47 }
 0x9f4   :  { %v2794_v42 = vpop.f32.mrb[94].mxu1 }
 0x9f5   :  { %v2837_v5 = vsel %vm5025_vm2, %v2794_v42, -1e+30  ;;  %v6608_v20 = vpop.f32.mrb[95].mxu1 }
 0x9f6   :  { %v2840_v19 = vsel %vm1742_vm5, %v2837_v5, -inf }
 0x9f7   :  { %2841 = vmax.xlane.f32.xlu1 %v2840_v19 }
 0x9f8   :  { %v2799_v11 = vpop.f32.mrb[96].mxu1 }
 0x9f9   :  { %v2838_v43 = vsel %vm2835_vm7, %v2799_v11, -1e+30  ;;  %v6611_v17 = vpop.f32.mrb[97].mxu1 }
 0x9fa   :  { %v2843_v48 = vsel %vm1742_vm5, %v2838_v43, -inf }
 0x9fb   :  { %2844 = vmax.xlane.f32.xlu0 %v2843_v48 }
 0x9fc   :  { %v2804_v44 = vpop.f32.mrb[98].mxu1 }
 0x9fd   :  { %v2839_v62 = vsel %vm2836_vm9, %v2804_v44, -1e+30  ;;  %v6614_v45 = vpop.f32.mrb[99].mxu1  ;;  %v5451_v44 = vunpack.c.h.bf16 %v5449_v2 }
 0x9fe   :  { %v2846_v25 = vsel %vm1742_vm5, %v2839_v62, -inf  ;;  %v5695_v45 = vld [vmem:[%s9305_s4 + $0x18] sm:$0xff]  }
 0x9ff   :  { %2847 = vmax.xlane.f32.xlu1 %v2846_v25 }
 0xa84   :  { %v2842_v57 = vpop.xlane.xlu1 %2841 }
 0xa85   :  { %v2849_v9 = vsub.f32 %v2837_v5, %v2842_v57  ;;  %v5462_v57 = vunpack.c.l.bf16 %v5695_v45 }
 0xa87   :  { %v2852_v24 = vmul.f32 1.442695, %v2849_v9  ;;  %v5696_v9 = vld [vmem:[%s9305_s4 + $0x20] sm:$0xff]  }
 0xa88   :  { %v2845_v49 = vpop.xlane.xlu0 %2844 }
 0xa89   :  { %7091 = vpow2.f32 %v2852_v24  ;;  %v2850_v50 = vsub.f32 %v2838_v43, %v2845_v49  ;;  %v5466_v24 = vunpack.c.l.bf16 %v5696_v9  ;;  %v5697_v49 = vld [vmem:[%s9305_s4 + $0x28] sm:$0xff]  }
 0xa8b   :  { %v2854_v29 = vmul.f32 1.442695, %v2850_v50  ;;  %v5467_v50 = vunpack.c.h.bf16 %v5696_v9  ;;  %v7171_v9 = vld [vmem:[%s9301_s0 + $0x60] sm:$0xff] }
 0xa8c   :  { %v2848_v34 = vpop.xlane.xlu1 %2847 }
 0xa8d   :  { %7093 = vpow2.f32 %v2854_v29  ;;  %v2851_v14 = vsub.f32 %v2839_v62, %v2848_v34  ;;  %v5454_v62 = vunpack.c.l.bf16 %v5693_v61  ;;  %v5470_v29 = vunpack.c.l.bf16 %v5697_v49  ;;  %v5698_v34 = vld [vmem:[%s9305_s4 + $0x30] sm:$0xff]  }
 0xa8f   :  { %v2856_v59 = vmul.f32 1.442695, %v2851_v14  ;;  %v5471_v14 = vunpack.c.h.bf16 %v5697_v49 }
 0xa91   :  { %7095 = vpow2.f32 %v2856_v59  ;;  %v5474_v59 = vunpack.c.l.bf16 %v5698_v34 }
 0xa93   :  { %v7092_v33 = vpop.eup %7091 }
 0xa94   :  { %v2858_v0 = vsel %vm1742_vm5, %v7092_v33, 0.0 }
 0xa95   :  { %2859 = vadd.xlane.f32.xlu0 %v2858_v0  ;;  %v5475_v0 = vunpack.c.h.bf16 %v5698_v34 }
 0xa97   :  { %v7094_v6 = vpop.eup %7093 }
 0xa98   :  { %v2861_v12 = vsel %vm1742_vm5, %v7094_v6, 0.0 }
 0xa99   :  { %2862 = vadd.xlane.f32.xlu1 %v2861_v12  ;;  %v5700_v12 = vld [vmem:[%s9305_s4 + $0x40] sm:$0xff]  }
 0xa9b   :  { %v7096_v22 = vpop.eup %7095 }
 0xa9c   :  { %v2864_v28 = vsel %vm1742_vm5, %v7096_v22, 0.0 }
 0xa9d   :  { %2865 = vadd.xlane.f32.xlu0 %v2864_v28  ;;  %v5482_v28 = vunpack.c.l.bf16 %v5700_v12 }
 0xaaa   :  { %6977 = vrot.lane.b32.xlu1 %v8707_v8, %s7210_s18 }
 0xab3   :  { %2877 = vrot.lane.b32.xlu0 %v8710_v13, %s7210_s18  ;;  %v2971_v13 = vld [vmem:[%s9311_s10] sm:$0xff] }
 0xb22   :  { %v2860_v41 = vpop.xlane.xlu0 %2859 }
 0xb23   :  { %7097 = vrcp.f32 %v2860_v41  ;;  %v5701_v41 = vld [vmem:[%s9305_s4 + $0x48] sm:$0xff]  }
 0xb26   :  { %v2863_v40 = vpop.xlane.xlu1 %2862 }
 0xb27   :  { %7099 = vrcp.f32 %v2863_v40  ;;  %v5483_v40 = vunpack.c.h.bf16 %v5700_v12 }
 0xb2a   :  { %v2866_v1 = vpop.xlane.xlu0 %2865  ;;  %v6978_v60 = vpop.permute.xlu1 %6977 }
 0xb2b   :  { %v6980_v18 = vunpack.i.h.bf16 %v6978_v60  ;;  %v6979_v10 = vunpack.i.l.bf16 %v6978_v60  ;;  %7101 = vrcp.f32 %v2866_v1  ;;  %v5486_v1 = vunpack.c.l.bf16 %v5701_v41  ;;  %v5702_v60 = vld [vmem:[%s9305_s4 + $0x50] sm:$0xff]  }
 0xb2d   :  { %v6894_v23 = vpack.c.bf16 %v6980_v18, %v6979_v10  ;;  %v7098_v27 = vpop.eup %7097  ;;  %v5487_v18 = vunpack.c.h.bf16 %v5701_v41  ;;  %v5490_v10 = vunpack.c.l.bf16 %v5702_v60 }
 0xb2e   :  { %v2868_v31 = vmul.f32 %v7098_v27, %v7092_v33  ;;  %v2878_v46 = vpop.permute.xlu0 %2877  ;;  %v5699_v33 = vld [vmem:[%s9305_s4 + $0x38] sm:$0xff]   ;;  %v5491_v27 = vunpack.c.h.bf16 %v5702_v60 }
 0xb2f   :  { %6895 = vmatpush3.bf16.msra.mxu1 %v6894_v23  ;;  %v5703_v23 = vld [vmem:[%s9305_s4 + $0x58] sm:$0xff]  }
 0xb30   :  { %6619 = vmatprep.subr.mxu1 %v9378_v47 }
 0xb31   :  { %v7100_v54 = vpop.eup %7099 }
 0xb32   :  { %v2870_v8 = vmul.f32 %v7100_v54, %v7094_v6  ;;  %v5478_v6 = vunpack.c.l.bf16 %v5699_v33  ;;  %v7211_v54 = vmov 1  }
 0xb33   :  { %6620 = vmatpush3.msra.mxu1 %v2878_v46  ;;  %v5495_v46 = vunpack.c.h.bf16 %v5703_v23  ;;  %6982 = vset.pattern.permute.xlu0 %v7211_v54 }
 0xb34   :  { %6622 = vmatmul.mubr.msk.f32.vlgmr.msra.gmra.mrb[100].mxu1 %vm1742_vm5, %v2868_v31  ;;  %6630 = vmatprep.subr.mxu1 %v9378_v47  ;;  %v5494_v31 = vunpack.c.l.bf16 %v5703_v23 }
 0xb35   :  { %6624 = vmatprep.mubr.msk.f32.mxu1 %vm7198_vm0, %v9378_v47  ;;  %v7102_v15 = vpop.eup %7101 }
 0xb36   :  { %v2872_v26 = vmul.f32 %v7102_v15, %v7096_v22  ;;  %v5479_v22 = vunpack.c.h.bf16 %v5699_v33 }
 0xb38   :  { %6625 = vmatmul.mubr.msk.f32.gmra.mrb[102].mxu1 %vm1742_vm5, %v2870_v8 }
 0xb39   :  { %6627 = vmatprep.mubr.msk.f32.mxu1 %vm7198_vm0, %v9378_v47 }
 0xb3a   :  { %6631 = vmatpush3.xpose.msk.msra.mxu1 %vm1714_vm3, %v2971_v13 }
 0xb3c   :  { %6628 = vmatmul.mubr.msk.f32.gmra.mrb[104].mxu1 %vm1742_vm5, %v2872_v26 }
 0xb3d   :  { %6632 = vmatprep.mubr.msk.f32.mxu1 %vm7198_vm0, %v9378_v47 }
 0xc07   :  { %v2957_v35 = vpop.f32.mrb[100].mxu1 }
 0xc08   :  { %v6623_v53 = vpop.f32.mrb[101].mxu1  ;;  %6633 = vmatmul.mubr.msk.f32.vlgmr.msra.gmra.mrb[106].mxu1 %vm1714_vm3, %v2957_v35 }
 0xc09   :  { %6635 = vmatprep.mubr.msk.f32.mxu1 %vm7198_vm0, %v9378_v47 }
 0xc0b   :  { %v2962_v30 = vpop.f32.mrb[102].mxu1 }
 0xc0c   :  { %v6626_v63 = vpop.f32.mrb[103].mxu1  ;;  %6636 = vmatmul.mubr.msk.f32.gmra.mrb[108].mxu1 %vm1714_vm3, %v2962_v30 }
 0xc0d   :  { %6638 = vmatprep.mubr.msk.f32.mxu1 %vm7198_vm0, %v9378_v47  ;;  %v7212_v63 = vmov 2  }
 0xc0f   :  { %v2967_v58 = vpop.f32.mrb[104].mxu1 }
 0xc10   :  { %v6629_v32 = vpop.f32.mrb[105].mxu1  ;;  %6639 = vmatmul.mubr.msk.f32.gmra.mrb[110].mxu1 %vm1714_vm3, %v2967_v58 }
 0xc11   :  { %6647 = vmatprep.mubr.msk.f32.mxu1 %vm1742_vm5, %v5450_v38  ;;  %v7213_v38 = vmov 4  }
 0xcdb   :  { %v3054_v7 = vpop.f32.mrb[106].mxu1 }
 0xcdc   :  { %v6634_v56 = vpop.f32.mrb[107].mxu1  ;;  %v3055_v52 = vadd.f32 %v3054_v7, %v2975_v37  ;;  %v7214_v7 = vmov 3  }
 0xcde   :  { %v3068_v20 = vadd.f32 %v3055_v52, %v8656_v36  ;;  %v5694_v36 = vld [vmem:[%s9305_s4 + $0x10] sm:$0xff]  }
 0xcdf   :  { %v3059_v39 = vpop.f32.mrb[108].mxu1  ;;  %v5459_v25 = vunpack.c.h.bf16 %v5694_v36 }
 0xce0   :  { %v3060_v42 = vadd.f32 %v3059_v39, %v2975_v37  ;;  %v6637_v5 = vpop.f32.mrb[109].mxu1 }
 0xce1   :  { %v7215_v5 = vmov 5  }
 0xce2   :  { %v3069_v19 = vadd.f32 %v3060_v42, %v8660_v51  ;;  %v5455_v51 = vunpack.c.h.bf16 %v5693_v61 }
 0xce3   :  { %v3064_v3 = vpop.f32.mrb[110].mxu1 }
 0xce4   :  { %v3065_v11 = vadd.f32 %v3064_v3, %v2975_v37  ;;  %v6640_v43 = vpop.f32.mrb[111].mxu1  ;;  %v6896_v17 = vpack.c.bf16 %v3069_v19, %v3068_v20 }
 0xce5   :  { %v7216_v43 = vmov 7  }
 0xce6   :  { %v3070_v48 = vadd.f32 %v3065_v11, %v8664_v16  ;;  %6897 = vmatprep.subr.bf16.mxu1 %v6896_v17  ;;  %v5458_v16 = vunpack.c.l.bf16 %v5694_v36  ;;  %v9416_v36 = vld [vmem:[#allocation10_spill] sm:$0xff] }
 0xce7   :  { %6899 = vmatpush3.bf16.msra.mxu1 %v6896_v17 }
 0xce8   :  { %6645 = vmatprep.subr.mxu1 %v3070_v48 }
 0xceb   :  { %6646 = vmatpush3.msra.mxu1 %v3070_v48 }
 0xcec   :  { %6648 = vmatmul.mubr.msk.f32.vlgmr.msra.gmra.mrb[112].mxu1 %vm1742_vm5, %v5451_v44  ;;  %6900 = vmatprep.subr.bf16.mxu1 %v9413_v21  ;;  %v5463_v21 = vunpack.c.h.bf16 %v5695_v45  ;;  %v9419_v45 = vld [vmem:[#allocation14_spill] sm:$0xff] }
 0xced   :  { %6650 = vmatprep.mubr.msk.f32.mxu1 %vm1742_vm5, %v5454_v62  ;;  %v7217_v62 = vmov 6  }
 0xcf0   :  { %6651 = vmatmul.mubr.msk.f32.gmra.mrb[114].mxu1 %vm1742_vm5, %v5455_v51  ;;  %v9417_v51 = vld [vmem:[#allocation9_spill] sm:$0xff] }
 0xcf1   :  { %6653 = vmatprep.mubr.msk.f32.mxu1 %vm1742_vm5, %v5458_v16  ;;  %v9418_v16 = vpack.i.bf16 %v9416_v36, %v9417_v51 }
 0xcf4   :  { %6654 = vmatmul.mubr.msk.f32.gmra.mrb[116].mxu1 %vm1742_vm5, %v5459_v25  ;;  %v9420_v25 = vld [vmem:[#allocation13_spill] sm:$0xff] }
 0xcf5   :  { %6656 = vmatprep.mubr.msk.f32.mxu1 %vm1742_vm5, %v5462_v57  ;;  %v9421_v57 = vpack.i.bf16 %v9419_v45, %v9420_v25 }
 0xcf8   :  { %6657 = vmatmul.mubr.msk.f32.gmra.mrb[118].mxu1 %vm1742_vm5, %v5463_v21  ;;  %v9422_v21 = vld [vmem:[#allocation6_spill] sm:$0xff] }
 0xcf9   :  { %6659 = vmatprep.mubr.msk.f32.mxu1 %vm1742_vm5, %v5466_v24  ;;  %v9423_v24 = vld [vmem:[#allocation5_spill] sm:$0xff] }
 0xcfa   :  { %v9424_v49 = vpack.i.bf16 %v9422_v21, %v9423_v24 }
 0xcfc   :  { %6660 = vmatmul.mubr.msk.f32.gmra.mrb[120].mxu1 %vm1742_vm5, %v5467_v50  ;;  %v9425_v50 = vld [vmem:[#allocation8_spill] sm:$0xff] }
 0xcfd   :  { %6662 = vmatprep.mubr.msk.f32.mxu1 %vm1742_vm5, %v5470_v29  ;;  %v9426_v29 = vld [vmem:[#allocation7_spill] sm:$0xff] }
 0xcfe   :  { %v9427_v34 = vpack.i.bf16 %v9425_v50, %v9426_v29 }
 0xd00   :  { %6663 = vmatmul.mubr.msk.f32.gmra.mrb[122].mxu1 %vm1742_vm5, %v5471_v14  ;;  %v9428_v14 = vld [vmem:[#allocation12_spill] sm:$0xff] }
 0xd01   :  { %6665 = vmatprep.mubr.msk.f32.mxu1 %vm1742_vm5, %v5474_v59  ;;  %v9429_v59 = vld [vmem:[#allocation11_spill] sm:$0xff] }
 0xd02   :  { %v9430_v33 = vpack.i.bf16 %v9428_v14, %v9429_v59 }
 0xd04   :  { %6666 = vmatmul.mubr.msk.f32.gmra.mrb[124].mxu1 %vm1742_vm5, %v5475_v0  ;;  %v9431_v0 = vld [vmem:[#allocation16_spill] sm:$0xff] }
 0xd05   :  { %6668 = vmatprep.mubr.msk.f32.mxu1 %vm1742_vm5, %v5478_v6  ;;  %v9432_v6 = vld [vmem:[#allocation15_spill] sm:$0xff] }
 0xd06   :  { %v9433_v12 = vpack.i.bf16 %v9431_v0, %v9432_v6 }
 0xd08   :  { %6669 = vmatmul.mubr.msk.f32.gmra.mrb[126].mxu1 %vm1742_vm5, %v5479_v22 }
 0xd09   :  { %6671 = vmatprep.mubr.msk.f32.mxu1 %vm1742_vm5, %v5482_v28 }
 0xd0c   :  { %6672 = vmatmul.mubr.msk.f32.gmra.mrb[128].mxu1 %vm1742_vm5, %v5483_v40 }
 0xd0d   :  { %6674 = vmatprep.mubr.msk.f32.mxu1 %vm1742_vm5, %v5486_v1 }
 0xd10   :  { %6675 = vmatmul.mubr.msk.f32.gmra.mrb[130].mxu1 %vm1742_vm5, %v5487_v18 }
 0xd11   :  { %6677 = vmatprep.mubr.msk.f32.mxu1 %vm1742_vm5, %v5490_v10 }
 0xd14   :  { %6678 = vmatmul.mubr.msk.f32.gmra.mrb[132].mxu1 %vm1742_vm5, %v5491_v27 }
 0xd15   :  { %6680 = vmatprep.mubr.msk.f32.mxu1 %vm1742_vm5, %v5494_v31 }
 0xd18   :  { %6681 = vmatmul.mubr.msk.f32.gmra.mrb[134].mxu1 %vm1742_vm5, %v5495_v46 }
 0xd19   :  { %6689 = vmatprep.mubr.msk.f32.mxu1 %vm7198_vm0, %v9378_v47 }
 0xdbf   :  { %v6649_v8 = vpop.f32.mrb[112].mxu1 }
 0xdc0   :  { %3389 = vperm.xlu1 %6981, %v6649_v8   ;;  %v3257_v15 = vpop.f32.mrb[113].mxu1 }
 0xdc3   :  { %v6652_v13 = vpop.f32.mrb[114].mxu1 }
 0xdc4   :  { %3384 = vperm.xlu1 %6981, %v3257_v15   ;;  %3409 = vperm.xlu0 %6982, %v6652_v13   ;;  %v3267_v26 = vpop.f32.mrb[115].mxu1 }
 0xdc7   :  { %v6655_v35 = vpop.f32.mrb[116].mxu1 }
 0xdc8   :  { %3394 = vperm.xlu1 %6981, %v3267_v26   ;;  %3419 = vperm.xlu0 %6982, %v6655_v35   ;;  %v3277_v53 = vpop.f32.mrb[117].mxu1  ;;  %v8870_v26 = vld [vmem:[%s9307_s6 + $0x50] sm:$0xff]   ;;  %v8875_v35 = vld [vmem:[%s9307_s6 + $0x20] sm:$0xff]  }
 0xdcb   :  { %v6658_v30 = vpop.f32.mrb[118].mxu1 }
 0xdcc   :  { %6983 = vset.pattern.permute.xlu1 %v7211_v54  ;;  %6984 = vset.pattern.permute.xlu0 %v7212_v63  ;;  %v3287_v58 = vpop.f32.mrb[119].mxu1 }
 0xdcd   :  { %3414 = vperm.xlu1 %6983, %v3277_v53   ;;  %3439 = vperm.xlu0 %6984, %v6658_v30   ;;  %v5497_v53 = vld [vmem:[%s9307_s6] sm:$0xff]   ;;  %v8883_v30 = vld [vmem:[%s9307_s6 + $0x8] sm:$0xff]  }
 0xdcf   :  { %v6661_v32 = vpop.f32.mrb[120].mxu1 }
 0xdd0   :  { %v3297_v2 = vpop.f32.mrb[121].mxu1 }
 0xdd1   :  { %6985 = vset.pattern.permute.xlu1 %v7212_v63  ;;  %6990 = vset.pattern.permute.xlu0 %v7213_v38 }
 0xdd2   :  { %3434 = vperm.xlu1 %6985, %v3287_v58   ;;  %v8891_v58 = vld [vmem:[%s9307_s6 + $0x28] sm:$0xff]  }
 0xdd3   :  { %v6664_v4 = vpop.f32.mrb[122].mxu1 }
 0xdd4   :  { %v3307_v37 = vpop.f32.mrb[123].mxu1 }
 0xdd6   :  { %6986 = vset.pattern.permute.xlu1 %v7214_v7 }
 0xdd7   :  { %3459 = vperm.xlu1 %6986, %v6661_v32   ;;  %v6667_v56 = vpop.f32.mrb[124].mxu1  ;;  %v3554_v32 = vunpack.c.h.bf16 %v8870_v26 }
 0xdd8   :  { %v3317_v52 = vpop.f32.mrb[125].mxu1 }
 0xdd9   :  { %3484 = vperm.xlu0 %6990, %v3317_v52  }
 0xddb   :  { %6987 = vset.pattern.permute.xlu1 %v7212_v63  ;;  %v6670_v39 = vpop.f32.mrb[126].mxu1  ;;  %v5705_v63 = vld [vmem:[%s9307_s6 + $0x18] sm:$0xff]  }
 0xddc   :  { %3444 = vperm.xlu1 %6987, %v3297_v2   ;;  %v3327_v42 = vpop.f32.mrb[127].mxu1  ;;  %v5709_v2 = vld [vmem:[%s9307_s6 + $0x48] sm:$0xff]  }
 0xddd   :  { %6992 = vset.pattern.permute.xlu0 %v7215_v5  ;;  %v5522_v52 = vunpack.c.l.bf16 %v5709_v2  ;;  %v5523_v25 = vunpack.c.h.bf16 %v5709_v2 }
 0xddf   :  { %v6673_v20 = vpop.f32.mrb[128].mxu1 }
 0xde0   :  { %6988 = vset.pattern.permute.xlu1 %v7214_v7  ;;  %v3337_v19 = vpop.f32.mrb[129].mxu1  ;;  %v8904_v7 = vld [vmem:[%s9307_s6 + $0x40] sm:$0xff]  }
 0xde1   :  { %3469 = vperm.xlu1 %6988, %v6664_v4   ;;  %3514 = vperm.xlu0 %6992, %v3337_v19   ;;  %v3454_v4 = vunpack.c.h.bf16 %v8875_v35  ;;  %v3404_v19 = vunpack.c.h.bf16 %v8883_v30 }
 0xde3   :  { %v6676_v3 = vpop.f32.mrb[130].mxu1 }
 0xde4   :  { %v3347_v11 = vpop.f32.mrb[131].mxu1 }
 0xde5   :  { %3464 = vperm.xlu1 %6988, %v3307_v37   ;;  %6994 = vset.pattern.permute.xlu0 %v7216_v43  ;;  %v5707_v37 = vld [vmem:[%s9307_s6 + $0x30] sm:$0xff]  }
 0xde6   :  { %v5515_v36 = vunpack.c.h.bf16 %v5707_v37 }
 0xde7   :  { %v6679_v17 = vpop.f32.mrb[132].mxu1 }
 0xde8   :  { %3559 = vperm.xlu0 %6994, %v6679_v17   ;;  %v3357_v48 = vpop.f32.mrb[133].mxu1 }
 0xde9   :  { %6989 = vset.pattern.permute.xlu1 %v7213_v38 }
 0xdea   :  { %3489 = vperm.xlu1 %6989, %v6667_v56   ;;  %v8909_v56 = vld [vmem:[%s9307_s6 + $0x38] sm:$0xff]  }
 0xdeb   :  { %v6682_v61 = vpop.f32.mrb[134].mxu1 }
 0xdec   :  { %6995 = vset.pattern.permute.xlu0 %v7213_v38  ;;  %v3367_v44 = vpop.f32.mrb[135].mxu1 }
 0xded   :  { %3494 = vperm.xlu0 %6995, %v3327_v42   ;;  %v5704_v42 = vld [vmem:[%s9307_s6 + $0x10] sm:$0xff]  }
 0xdee   :  { %6991 = vset.pattern.permute.xlu1 %v7215_v5 }
 0xdef   :  { %3509 = vperm.xlu1 %6991, %v6670_v39   ;;  %v5498_v39 = vunpack.c.l.bf16 %v5497_v53 }
 0xdf1   :  { %6999 = vset.pattern.permute.xlu0 %v7216_v43 }
 0xdf2   :  { %3569 = vperm.xlu0 %6999, %v6682_v61   ;;  %v5514_v61 = vunpack.c.l.bf16 %v5707_v37 }
 0xdf3   :  { %6993 = vset.pattern.permute.xlu1 %v7217_v62 }
 0xdf4   :  { %3539 = vperm.xlu1 %6993, %v6676_v3   ;;  %v5502_v3 = vunpack.c.l.bf16 %v5704_v42 }
 0xdf6   :  { %7011 = vrot.lane.b32.xlu0 %v9418_v16, %s7200_s27  ;;  %v5499_v16 = vunpack.c.h.bf16 %v5497_v53 }
 0xdf8   :  { %3534 = vperm.xlu1 %6993, %v3347_v11   ;;  %v5507_v11 = vunpack.c.h.bf16 %v5705_v63 }
 0xdfa   :  { %7021 = vrot.lane.b32.xlu0 %v9421_v57, %s7200_s27 }
 0xdfc   :  { %6996 = vset.pattern.permute.xlu1 %v7216_v43  ;;  %v5506_v43 = vunpack.c.l.bf16 %v5705_v63 }
 0xdfd   :  { %3564 = vperm.xlu1 %6996, %v3367_v44   ;;  %v5518_v44 = vunpack.c.l.bf16 %v8904_v7 }
 0xdfe   :  { %4096 = vrot.lane.b32.xlu0 %v7171_v9, %s7200_s27 }
 0xe01   :  { %6997 = vset.pattern.permute.xlu1 %v7215_v5  ;;  %v5510_v5 = vunpack.c.l.bf16 %v8891_v58 }
 0xe02   :  { %3519 = vperm.xlu1 %6997, %v6673_v20   ;;  %v3504_v20 = vunpack.c.h.bf16 %v8909_v56 }
 0xe06   :  { %6998 = vset.pattern.permute.xlu1 %v7217_v62 }
 0xe07   :  { %3544 = vperm.xlu1 %6998, %v3357_v48   ;;  %v5710_v48 = vld [vmem:[%s9307_s6 + $0x58] sm:$0xff]  }
 0xe0b   :  { %7001 = vrot.lane.b32.xlu1 %v9424_v49, %s7200_s27  ;;  %v5526_v49 = vunpack.c.l.bf16 %v5710_v48 }
 0xe0f   :  { %7006 = vrot.lane.b32.xlu1 %v9427_v34, %s7200_s27 }
 0xe13   :  { %7016 = vrot.lane.b32.xlu1 %v9430_v33, %s7200_s27 }
 0xe17   :  { %7026 = vrot.lane.b32.xlu1 %v9433_v12, %s7200_s27 }
 0xe3f   :  { %v3390_v22 = vpop.permute.xlu1 %3389 }
 0xe40   :  { %v3398_v12 = vmul.f32 %v5499_v16, %v3390_v22 }
 0xe43   :  { %v3385_v28 = vpop.permute.xlu1 %3384  ;;  %v3410_v10 = vpop.permute.xlu0 %3409 }
 0xe44   :  { %v3397_v9 = vmul.f32 %v5498_v39, %v3385_v28  ;;  %v3422_v50 = vmul.f32 %v3410_v10, %v3404_v19  ;;  %v5511_v28 = vunpack.c.h.bf16 %v8891_v58  ;;  %v5519_v39 = vunpack.c.h.bf16 %v8904_v7 }
 0xe47   :  { %v8859_v41 = vpop.permute.xlu1 %3394  ;;  %v8865_v27 = vpop.permute.xlu0 %3419 }
 0xe4c   :  { %v3415_v40 = vpop.permute.xlu1 %3414  ;;  %v3440_v46 = vpop.permute.xlu0 %3439 }
 0xe4d   :  { %v3423_v29 = vmul.f32 %v5502_v3, %v3415_v40  ;;  %v3448_v34 = vmul.f32 %v5507_v11, %v3440_v46  ;;  %v5503_v46 = vunpack.c.h.bf16 %v5704_v42  ;;  %v3531_v11 = vunpack.c.l.bf16 %v8870_v26 }
 0xe51   :  { %v3435_v1 = vpop.permute.xlu1 %3434 }
 0xe52   :  { %v3447_v14 = vmul.f32 %v5506_v43, %v3435_v1  ;;  %v3381_v1 = vunpack.c.l.bf16 %v8883_v30 }
 0xe54   :  { %v3399_v30 = vmul.f32 %v8859_v41, %v3381_v1  ;;  %v5529_v41 = vld [vmem:[%s9306_s5] sm:$0xff]  }
 0xe56   :  { %v3460_v60 = vpop.permute.xlu1 %3459 }
 0xe57   :  { %v3472_v45 = vmul.f32 %v3460_v60, %v3454_v4  ;;  %v3575_v4 = vadd.f32 %v3422_v50, %v3397_v9 }
 0xe58   :  { %v3485_v8 = vpop.permute.xlu0 %3484 }
 0xe59   :  { %v3497_v59 = vmul.f32 %v5514_v61, %v3485_v8  ;;  %v3578_v63 = vadd.f32 %v3472_v45, %v3447_v14  ;;  %v5531_v45 = vunpack.c.h.bf16 %v5529_v41 }
 0xe5b   :  { %v8861_v18 = vpop.permute.xlu1 %3444  ;;  %v3587_v22 = vadd.f32 %v3578_v63, %v3575_v4 }
 0xe60   :  { %v8863_v23 = vpop.permute.xlu1 %3469  ;;  %v3515_v13 = vpop.permute.xlu0 %3514 }
 0xe61   :  { %v3523_v33 = vmul.f32 %v5518_v44, %v3515_v13  ;;  %v3474_v58 = vmul.f32 %v5511_v28, %v8863_v23 }
 0xe64   :  { %v3465_v31 = vpop.permute.xlu1 %3464 }
 0xe65   :  { %v3473_v21 = vmul.f32 %v5510_v5, %v3465_v31  ;;  %v3576_v31 = vadd.f32 %v3423_v29, %v3398_v12  ;;  %v3481_v5 = vunpack.c.l.bf16 %v8909_v56  ;;  %v5713_v29 = vld [vmem:[%s9306_s5 + $0x18] sm:$0xff]  }
 0xe66   :  { %v5543_v14 = vunpack.c.h.bf16 %v5713_v29 }
 0xe67   :  { %v3560_v17 = vpop.permute.xlu0 %3559  ;;  %v3579_v37 = vadd.f32 %v3473_v21, %v3448_v34  ;;  %v5542_v34 = vunpack.c.l.bf16 %v5713_v29 }
 0xe68   :  { %v3572_v62 = vmul.f32 %v3560_v17, %v3554_v32 }
 0xe69   :  { %v3490_v54 = vpop.permute.xlu1 %3489  ;;  %v3588_v13 = vadd.f32 %v3579_v37, %v3576_v31 }
 0xe6a   :  { %v3498_v0 = vmul.f32 %v5515_v36, %v3490_v54  ;;  %v3431_v54 = vunpack.c.l.bf16 %v8875_v35  ;;  %v3424_v35 = vmul.f32 %v5503_v46, %v8865_v27 }
 0xe6c   :  { %v3495_v8 = vpop.permute.xlu0 %3494  ;;  %v3449_v43 = vmul.f32 %v8861_v18, %v3431_v54  ;;  %v3577_v23 = vadd.f32 %v3424_v35, %v3399_v30  ;;  %v5530_v18 = vunpack.c.l.bf16 %v5529_v41  ;;  %v9037_v35 = vld [vmem:[%s9304_s3] sm:$0xff]  }
 0xe6e   :  { %v3510_v15 = vpop.permute.xlu1 %3509  ;;  %v3580_v44 = vadd.f32 %v3474_v58, %v3449_v43  ;;  %v5554_v43 = vunpack.c.l.bf16 %v9037_v35 }
 0xe6f   :  { %v3522_v24 = vmul.f32 %v3510_v15, %v3504_v20  ;;  %v3582_v15 = vadd.f32 %v3523_v33, %v3498_v0  ;;  %v5527_v20 = vunpack.c.h.bf16 %v5710_v48 }
 0xe70   :  { %v3589_v27 = vadd.f32 %v3580_v44, %v3577_v23 }
 0xe71   :  { %v3581_v53 = vadd.f32 %v3522_v24, %v3497_v59  ;;  %v3570_v42 = vpop.permute.xlu0 %3569  ;;  %v5712_v24 = vld [vmem:[%s9306_s5 + $0x10] sm:$0xff]   ;;  %v5714_v59 = vld [vmem:[%s9306_s5 + $0x20] sm:$0xff]  }
 0xe72   :  { %v3574_v56 = vmul.f32 %v5527_v20, %v3570_v42  ;;  %v5539_v50 = vunpack.c.h.bf16 %v5712_v24  ;;  %v5546_v33 = vunpack.c.l.bf16 %v5714_v59  ;;  %v5547_v0 = vunpack.c.h.bf16 %v5714_v59 }
 0xe73   :  { %v3540_v38 = vpop.permute.xlu1 %3539 }
 0xe74   :  { %v3548_v60 = vmul.f32 %v5523_v25, %v3540_v38  ;;  %v5711_v25 = vld [vmem:[%s9306_s5 + $0x8] sm:$0xff]  }
 0xe75   :  { %v5534_v9 = vunpack.c.l.bf16 %v5711_v25  ;;  %v5535_v21 = vunpack.c.h.bf16 %v5711_v25 }
 0xe77   :  { %v3535_v51 = vpop.permute.xlu1 %3534 }
 0xe78   :  { %v3547_v57 = vmul.f32 %v5522_v52, %v3535_v51 }
 0xe7a   :  { %v3584_v6 = vadd.f32 %v3572_v62, %v3547_v57  ;;  %v3499_v62 = vmul.f32 %v3495_v8, %v3481_v5  ;;  %v3791_v57 = vld [vmem:[%s9312_s11] sm:$0xff] }
 0xe7c   :  { %v3565_v32 = vpop.permute.xlu1 %3564  ;;  %v3590_v10 = vadd.f32 %v3584_v6, %v3581_v53  ;;  %v5715_v6 = vld [vmem:[%s9306_s5 + $0x28] sm:$0xff]  }
 0xe7d   :  { %v3573_v2 = vmul.f32 %v5526_v49, %v3565_v32  ;;  %v5538_v49 = vunpack.c.l.bf16 %v5712_v24  ;;  %v5550_v12 = vunpack.c.l.bf16 %v5715_v6  ;;  %v5551_v63 = vunpack.c.h.bf16 %v5715_v6  ;;  %v3608_v32 = vld [vmem:[%s9306_s5 + $0x30] sm:$0xf] }
 0xe7e   :  { %v3593_v19 = vadd.f32 %v3590_v10, %v3587_v22  ;;  %v3621_v37 = vunpack.c.l.bf16 %v3608_v32 }
 0xe7f   :  { %v3585_v40 = vadd.f32 %v3573_v2, %v3548_v60 }
 0xe81   :  { %v3591_v52 = vadd.f32 %v3585_v40, %v3582_v15  ;;  %v3520_v38 = vpop.permute.xlu1 %3519 }
 0xe82   :  { %v3524_v17 = vmul.f32 %v5519_v39, %v3520_v38 }
 0xe83   :  { %v3594_v3 = vadd.f32 %v3591_v52, %v3588_v13 }
 0xe84   :  { %v3583_v36 = vadd.f32 %v3524_v17, %v3499_v62  ;;  %v3794_v17 = vsub.s32 4, %v8647_v55 }
 0xe85   :  { %v6901_v61 = vpack.c.bf16 %v3594_v3, %v3593_v19 }
 0xe86   :  { %v3545_v7 = vpop.permute.xlu1 %3544 }
 0xe87   :  { %v3549_v48 = vmul.f32 %v3545_v7, %v3531_v11  ;;  %6902 = vmatpush3.bf16.msra.mxu1 %v6901_v61  ;;  %v9045_v61 = vld [vmem:[%s9314_s13] sm:$0xff] }
 0xe88   :  { %6687 = vmatprep.subr.mxu1 %v9378_v47 }
 0xe89   :  { %v3586_v26 = vadd.f32 %v3574_v56, %v3549_v48 }
 0xe8b   :  { %v3592_v51 = vadd.f32 %v3586_v26, %v3583_v36 }
 0xe8d   :  { %v3595_v16 = vadd.f32 %v3592_v51, %v3589_v27 }
 0xe8f   :  { %6688 = vmatpush3.msra.mxu1 %v3595_v16 }
 0xe90   :  { %6690 = vmatmul.mubr.msk.f32.vlgmr.msra.gmra.mrb[136].mxu1 %vm1742_vm5, %v5530_v18  ;;  %6728 = vmatprep.subr.mxu1 %v9378_v47 }
 0xe91   :  { %6692 = vmatprep.mubr.msk.f32.mxu1 %vm7198_vm0, %v9378_v47 }
 0xe94   :  { %6693 = vmatmul.mubr.msk.f32.gmra.mrb[138].mxu1 %vm1742_vm5, %v5531_v45 }
 0xe95   :  { %6695 = vmatprep.mubr.msk.f32.mxu1 %vm7198_vm0, %v9378_v47 }
 0xe96   :  { %6729 = vmatpush3.xpose.msk.msra.mxu1 %vm1714_vm3, %v3791_v57 }
 0xe98   :  { %6696 = vmatmul.mubr.msk.f32.gmra.mrb[140].mxu1 %vm1742_vm5, %v5534_v9 }
 0xe99   :  { %6698 = vmatprep.mubr.msk.f32.mxu1 %vm7198_vm0, %v9378_v47 }
 0xe9c   :  { %6699 = vmatmul.mubr.msk.f32.gmra.mrb[142].mxu1 %vm1742_vm5, %v5535_v21 }
 0xe9d   :  { %6701 = vmatprep.mubr.msk.f32.mxu1 %vm7198_vm0, %v9378_v47 }
 0xea0   :  { %6702 = vmatmul.mubr.msk.f32.gmra.mrb[144].mxu1 %vm1742_vm5, %v5538_v49 }
 0xea1   :  { %6704 = vmatprep.mubr.msk.f32.mxu1 %vm7198_vm0, %v9378_v47 }
 0xea4   :  { %6705 = vmatmul.mubr.msk.f32.gmra.mrb[146].mxu1 %vm1742_vm5, %v5539_v50 }
 0xea5   :  { %6707 = vmatprep.mubr.msk.f32.mxu1 %vm7198_vm0, %v9378_v47 }
 0xea8   :  { %6708 = vmatmul.mubr.msk.f32.gmra.mrb[148].mxu1 %vm1742_vm5, %v5542_v34 }
 0xea9   :  { %6710 = vmatprep.mubr.msk.f32.mxu1 %vm7198_vm0, %v9378_v47 }
 0xeac   :  { %6711 = vmatmul.mubr.msk.f32.gmra.mrb[150].mxu1 %vm1742_vm5, %v5543_v14 }
 0xead   :  { %6713 = vmatprep.mubr.msk.f32.mxu1 %vm7198_vm0, %v9378_v47 }
 0xeb0   :  { %6714 = vmatmul.mubr.msk.f32.gmra.mrb[152].mxu1 %vm1742_vm5, %v5546_v33 }
 0xeb1   :  { %6716 = vmatprep.mubr.msk.f32.mxu1 %vm7198_vm0, %v9378_v47 }
 0xeb4   :  { %6717 = vmatmul.mubr.msk.f32.gmra.mrb[154].mxu1 %vm1742_vm5, %v5547_v0 }
 0xeb5   :  { %6719 = vmatprep.mubr.msk.f32.mxu1 %vm7198_vm0, %v9378_v47 }
 0xeb8   :  { %6720 = vmatmul.mubr.msk.f32.gmra.mrb[156].mxu1 %vm1742_vm5, %v5550_v12 }
 0xeb9   :  { %6722 = vmatprep.mubr.msk.f32.mxu1 %vm7198_vm0, %v9378_v47 }
 0xebc   :  { %6723 = vmatmul.mubr.msk.f32.gmra.mrb[158].mxu1 %vm1742_vm5, %v5551_v63 }
 0xebd   :  { %6725 = vmatprep.mubr.msk.f32.mxu1 %vm7198_vm0, %v9378_v47 }
 0xec0   :  { %6726 = vmatmul.mubr.msk.f32.gmra.mrb[160].mxu1 %vm1742_vm5, %v3621_v37  ;;  %vm4687_vm5 = vcmask 916480  }
 0xec1   :  { %6730 = vmatprep.mubr.msk.f32.mxu1 %vm7198_vm0, %v9378_v47 }
 0xf63   :  { %v3727_v53 = vpop.f32.mrb[136].mxu1 }
 0xf64   :  { %6731 = vmatmul.mubr.msk.f32.vlgmr.msra.gmra.mrb[162].mxu1 %vm1714_vm3, %v3727_v53  ;;  %v6691_v60 = vpop.f32.mrb[137].mxu1 }
 0xf65   :  { %6733 = vmatprep.mubr.msk.f32.mxu1 %vm7198_vm0, %v9378_v47 }
 0xf67   :  { %v3732_v2 = vpop.f32.mrb[138].mxu1 }
 0xf68   :  { %6734 = vmatmul.mubr.msk.f32.gmra.mrb[164].mxu1 %vm1714_vm3, %v3732_v2  ;;  %v6694_v4 = vpop.f32.mrb[139].mxu1 }
 0xf69   :  { %6736 = vmatprep.mubr.msk.f32.mxu1 %vm7198_vm0, %v9378_v47 }
 0xf6b   :  { %v3737_v28 = vpop.f32.mrb[140].mxu1 }
 0xf6c   :  { %6737 = vmatmul.mubr.msk.f32.gmra.mrb[166].mxu1 %vm1714_vm3, %v3737_v28  ;;  %v6697_v31 = vpop.f32.mrb[141].mxu1 }
 0xf6d   :  { %6739 = vmatprep.mubr.msk.f32.mxu1 %vm7198_vm0, %v9378_v47 }
 0xf6f   :  { %v3742_v15 = vpop.f32.mrb[142].mxu1 }
 0xf70   :  { %6740 = vmatmul.mubr.msk.f32.gmra.mrb[168].mxu1 %vm1714_vm3, %v3742_v15  ;;  %v6700_v10 = vpop.f32.mrb[143].mxu1  ;;  %v7002_v15 = vpop.permute.xlu1 %7001 }
 0xf71   :  { %6742 = vmatprep.mubr.msk.f32.mxu1 %vm7198_vm0, %v9378_v47 }
 0xf73   :  { %v3747_v40 = vpop.f32.mrb[144].mxu1 }
 0xf74   :  { %6743 = vmatmul.mubr.msk.f32.gmra.mrb[170].mxu1 %vm1714_vm3, %v3747_v40  ;;  %v6703_v1 = vpop.f32.mrb[145].mxu1 }
 0xf75   :  { %6745 = vmatprep.mubr.msk.f32.mxu1 %vm7198_vm0, %v9378_v47 }
 0xf77   :  { %v3752_v46 = vpop.f32.mrb[146].mxu1 }
 0xf78   :  { %6746 = vmatmul.mubr.msk.f32.gmra.mrb[172].mxu1 %vm1714_vm3, %v3752_v46  ;;  %v6706_v54 = vpop.f32.mrb[147].mxu1 }
 0xf79   :  { %6748 = vmatprep.mubr.msk.f32.mxu1 %vm7198_vm0, %v9378_v47 }
 0xf7b   :  { %v3757_v8 = vpop.f32.mrb[148].mxu1 }
 0xf7c   :  { %6749 = vmatmul.mubr.msk.f32.gmra.mrb[174].mxu1 %vm1714_vm3, %v3757_v8  ;;  %v6709_v22 = vpop.f32.mrb[149].mxu1  ;;  %v7004_v8 = vunpack.i.h.bf16 %v7002_v15 }
 0xf7d   :  { %6751 = vmatprep.mubr.msk.f32.mxu1 %vm7198_vm0, %v9378_v47  ;;  %v7003_v22 = vunpack.i.l.bf16 %v7002_v15 }
 0xf7f   :  { %v3762_v13 = vpop.f32.mrb[150].mxu1 }
 0xf80   :  { %6752 = vmatmul.mubr.msk.f32.gmra.mrb[176].mxu1 %vm1714_vm3, %v3762_v13  ;;  %v6712_v52 = vpop.f32.mrb[151].mxu1 }
 0xf81   :  { %6754 = vmatprep.mubr.msk.f32.mxu1 %vm7198_vm0, %v9378_v47 }
 0xf83   :  { %v3767_v39 = vpop.f32.mrb[152].mxu1 }
 0xf84   :  { %6755 = vmatmul.mubr.msk.f32.gmra.mrb[178].mxu1 %vm1714_vm3, %v3767_v39  ;;  %v6715_v38 = vpop.f32.mrb[153].mxu1 }
 0xf85   :  { %6757 = vmatprep.mubr.msk.f32.mxu1 %vm7198_vm0, %v9378_v47 }
 0xf87   :  { %v3772_v5 = vpop.f32.mrb[154].mxu1 }
 0xf88   :  { %6758 = vmatmul.mubr.msk.f32.gmra.mrb[180].mxu1 %vm1714_vm3, %v3772_v5  ;;  %v6718_v20 = vpop.f32.mrb[155].mxu1 }
 0xf89   :  { %6760 = vmatprep.mubr.msk.f32.mxu1 %vm7198_vm0, %v9378_v47 }
 0xf8b   :  { %v3777_v58 = vpop.f32.mrb[156].mxu1 }
 0xf8c   :  { %6761 = vmatmul.mubr.msk.f32.gmra.mrb[182].mxu1 %vm1714_vm3, %v3777_v58  ;;  %v6721_v19 = vpop.f32.mrb[157].mxu1 }
 0xf8d   :  { %6763 = vmatprep.mubr.msk.f32.mxu1 %vm7198_vm0, %v9378_v47 }
 0xf8f   :  { %v3782_v3 = vpop.f32.mrb[158].mxu1 }
 0xf90   :  { %6764 = vmatmul.mubr.msk.f32.gmra.mrb[184].mxu1 %vm1714_vm3, %v3782_v3  ;;  %v6724_v11 = vpop.f32.mrb[159].mxu1 }
 0xf91   :  { %6766 = vmatprep.mubr.msk.f32.mxu1 %vm7198_vm0, %v9378_v47  ;;  %v9048_v47 = vrot.slane %v9045_v61, %v3794_v17  ;;  %vm6928_vm0 = vmpackc.low %vm1728_vm4, %vm1728_vm4 }
 0xf93   :  { %v3787_v30 = vpop.f32.mrb[160].mxu1 }
 0xf94   :  { %6767 = vmatmul.mubr.msk.f32.gmra.mrb[186].mxu1 %vm1714_vm3, %v3787_v30  ;;  %v6727_v42 = vpop.f32.mrb[161].mxu1 }
 0xf95   :  { %6795 = vmatprep.mubr.msk.f32.mxu1 %vm296_vm1, %v5554_v43 }
0x1037   :  { %v3904_v7 = vpop.f32.mrb[162].mxu1 }
0x1038   :  { %v3905_v44 = vadd.f32 %v3904_v7, %v9048_v47  ;;  %v6732_v62 = vpop.f32.mrb[163].mxu1  ;;  %v7007_v7 = vpop.permute.xlu1 %7006 }
0x103a   :  { %v5105_v56 = vmul.f32 -1.442695, %v3905_v44 }
0x103b   :  { %v3909_v48 = vpop.f32.mrb[164].mxu1 }
0x103c   :  { %7103 = vpow2.f32 %v5105_v56  ;;  %v3910_v23 = vadd.f32 %v3909_v48, %v9048_v47  ;;  %v6735_v36 = vpop.f32.mrb[165].mxu1 }
0x103d   :  { %v7009_v36 = vunpack.i.h.bf16 %v7007_v7 }
0x103e   :  { %v5106_v26 = vmul.f32 -1.442695, %v3910_v23 }
0x103f   :  { %v3914_v41 = vpop.f32.mrb[166].mxu1 }
0x1040   :  { %7105 = vpow2.f32 %v5106_v26  ;;  %v9053_v27 = vadd.f32 %v3914_v41, %v9048_v47  ;;  %v6738_v51 = vpop.f32.mrb[167].mxu1  ;;  %v7008_v26 = vunpack.i.l.bf16 %v7007_v7 }
0x1042   :  { %v5107_v18 = vmul.f32 -1.442695, %v9053_v27 }
0x1043   :  { %v3919_v16 = vpop.f32.mrb[168].mxu1 }
0x1044   :  { %7107 = vpow2.f32 %v5107_v18  ;;  %v9057_v45 = vadd.f32 %v3919_v16, %v9048_v47  ;;  %v6741_v25 = vpop.f32.mrb[169].mxu1 }
0x1046   :  { %v7104_v57 = vpop.eup %7103  ;;  %v5108_v9 = vmul.f32 -1.442695, %v9057_v45 }
0x1047   :  { %v4007_v21 = vadd.f32 1.0, %v7104_v57  ;;  %v3924_v24 = vpop.f32.mrb[170].mxu1 }
0x1048   :  { %7109 = vpow2.f32 %v5108_v9  ;;  %v9061_v49 = vadd.f32 %v3924_v24, %v9048_v47  ;;  %v6744_v50 = vpop.f32.mrb[171].mxu1 }
0x1049   :  { %7111 = vrcp.f32 %v4007_v21 }
0x104a   :  { %v7106_v29 = vpop.eup %7105  ;;  %v5109_v34 = vmul.f32 -1.442695, %v9061_v49 }
0x104b   :  { %v4008_v14 = vadd.f32 1.0, %v7106_v29  ;;  %v3929_v59 = vpop.f32.mrb[172].mxu1 }
0x104c   :  { %7113 = vpow2.f32 %v5109_v34  ;;  %v9065_v33 = vadd.f32 %v3929_v59, %v9048_v47  ;;  %v6747_v0 = vpop.f32.mrb[173].mxu1  ;;  %v7012_v59 = vpop.permute.xlu0 %7011 }
0x104d   :  { %7115 = vrcp.f32 %v4008_v14 }
0x104e   :  { %v7108_v6 = vpop.eup %7107  ;;  %v5110_v12 = vmul.f32 -1.442695, %v9065_v33 }
0x104f   :  { %v4009_v63 = vadd.f32 1.0, %v7108_v6  ;;  %v3934_v32 = vpop.f32.mrb[174].mxu1 }
0x1050   :  { %7117 = vpow2.f32 %v5110_v12  ;;  %v9069_v37 = vadd.f32 %v3934_v32, %v9048_v47  ;;  %v6750_v53 = vpop.f32.mrb[175].mxu1  ;;  %v7014_v32 = vunpack.i.h.bf16 %v7012_v59 }
0x1051   :  { %7119 = vrcp.f32 %v4009_v63  ;;  %v7013_v53 = vunpack.i.l.bf16 %v7012_v59  ;;  %v5555_v59 = vunpack.c.h.bf16 %v9037_v35 }
0x1052   :  { %v7110_v60 = vpop.eup %7109  ;;  %v5111_v2 = vmul.f32 -1.442695, %v9069_v37 }
0x1053   :  { %v7112_v4 = vpop.eup %7111  ;;  %v4010_v28 = vadd.f32 1.0, %v7110_v60  ;;  %v3939_v31 = vpop.f32.mrb[176].mxu1 }
0x1054   :  { %7121 = vpow2.f32 %v5111_v2  ;;  %v9073_v10 = vadd.f32 %v3939_v31, %v9048_v47  ;;  %v6753_v40 = vpop.f32.mrb[177].mxu1  ;;  %v4046_v46 = vmul.f32 %v7112_v4, %v3905_v44 }
0x1055   :  { %7123 = vrcp.f32 %v4010_v28 }
0x1056   :  { %v7114_v1 = vpop.eup %7113  ;;  %v5112_v54 = vmul.f32 -1.442695, %v9073_v10  ;;  %v4111_v3 = vsel %vm1714_vm3, %v4046_v46, %v7003_v22 }
0x1057   :  { %v7116_v13 = vpop.eup %7115  ;;  %v4011_v52 = vadd.f32 1.0, %v7114_v1  ;;  %v3944_v39 = vpop.f32.mrb[178].mxu1 }
0x1058   :  { %v4047_v38 = vmul.f32 %v7116_v13, %v3910_v23  ;;  %7125 = vpow2.f32 %v5112_v54  ;;  %v9077_v5 = vadd.f32 %v3944_v39, %v9048_v47  ;;  %v6756_v20 = vpop.f32.mrb[179].mxu1  ;;  %v7017_v13 = vpop.permute.xlu1 %7016 }
0x1059   :  { %7127 = vrcp.f32 %v4011_v52  ;;  %v7018_v39 = vunpack.i.l.bf16 %v7017_v13 }
0x105a   :  { %v7118_v58 = vpop.eup %7117  ;;  %v5113_v19 = vmul.f32 -1.442695, %v9077_v5  ;;  %v4112_v11 = vsel %vm1714_vm3, %v4047_v38, %v7004_v8 }
0x105b   :  { %v7120_v30 = vpop.eup %7119  ;;  %v4012_v42 = vadd.f32 1.0, %v7118_v58  ;;  %v3949_v43 = vpop.f32.mrb[180].mxu1  ;;  %v6903_v17 = vpack.c.bf16 %v4112_v11, %v4111_v3 }
0x105c   :  { %7129 = vpow2.f32 %v5113_v19  ;;  %v9083_v44 = vadd.f32 %v3949_v43, %v9048_v47  ;;  %v6759_v62 = vpop.f32.mrb[181].mxu1  ;;  %v4048_v48 = vmul.f32 %v7120_v30, %v9053_v27 }
0x105d   :  { %7131 = vrcp.f32 %v4012_v42  ;;  %6904 = vmatprep.subr.bf16.mxu1 %v6903_v17 }
0x105e   :  { %v7122_v56 = vpop.eup %7121  ;;  %v5114_v23 = vmul.f32 -1.442695, %v9083_v44  ;;  %6906 = vmatpush3.bf16.msra.mxu1 %v6903_v17  ;;  %v4113_v27 = vsel %vm1714_vm3, %v4048_v48, %v7008_v26  ;;  %v7022_v17 = vpop.permute.xlu0 %7021 }
0x105f   :  { %v7124_v41 = vpop.eup %7123  ;;  %v4013_v51 = vadd.f32 1.0, %v7122_v56  ;;  %v3954_v18 = vpop.f32.mrb[182].mxu1  ;;  %v7024_v62 = vunpack.i.h.bf16 %v7022_v17  ;;  %v7023_v56 = vunpack.i.l.bf16 %v7022_v17 }
0x1060   :  { %v4049_v16 = vmul.f32 %v7124_v41, %v9057_v45  ;;  %7133 = vpow2.f32 %v5114_v23  ;;  %v9089_v25 = vadd.f32 %v3954_v18, %v9048_v47  ;;  %v6762_v57 = vpop.f32.mrb[183].mxu1  ;;  %v7027_v18 = vpop.permute.xlu1 %7026 }
0x1061   :  { %7135 = vrcp.f32 %v4013_v51  ;;  %v7028_v57 = vunpack.i.l.bf16 %v7027_v18 }
0x1062   :  { %v7126_v9 = vpop.eup %7125  ;;  %v5115_v21 = vmul.f32 -1.442695, %v9089_v25  ;;  %v4114_v24 = vsel %vm1714_vm3, %v4049_v16, %v7009_v36 }
0x1063   :  { %v7128_v50 = vpop.eup %7127  ;;  %v4014_v29 = vadd.f32 1.0, %v7126_v9  ;;  %v3959_v34 = vpop.f32.mrb[184].mxu1  ;;  %v6907_v14 = vpack.c.bf16 %v4114_v24, %v4113_v27 }
0x1064   :  { %7137 = vpow2.f32 %v5115_v21  ;;  %v9095_v45 = vadd.f32 %v3959_v34, %v9048_v47  ;;  %v6765_v0 = vpop.f32.mrb[185].mxu1  ;;  %v4050_v12 = vmul.f32 %v7128_v50, %v9061_v49 }
0x1065   :  { %7139 = vrcp.f32 %v4014_v29  ;;  %6908 = vmatprep.subr.bf16.mxu1 %v6907_v14  ;;  %v4097_v29 = vpop.permute.xlu0 %4096  ;;  %v5717_v0 = vld [vmem:[%s9304_s3 + $0x10] sm:$0xff]  }
0x1066   :  { %v7130_v6 = vpop.eup %7129  ;;  %v5116_v63 = vmul.f32 -1.442695, %v9095_v45  ;;  %6910 = vmatpush3.bf16.msra.mxu1 %v6907_v14  ;;  %v4115_v46 = vsel %vm1714_vm3, %v4050_v12, %v7013_v53  ;;  %v5716_v14 = vld [vmem:[%s9304_s3 + $0x8] sm:$0xff]   ;;  %v5562_v12 = vunpack.c.l.bf16 %v5717_v0  ;;  %v5719_v53 = vld [vmem:[%s9304_s3 + $0x20] sm:$0xff]  }
0x1067   :  { %v7132_v60 = vpop.eup %7131  ;;  %v4015_v2 = vadd.f32 1.0, %v7130_v6  ;;  %v3964_v4 = vpop.f32.mrb[186].mxu1  ;;  %v5559_v6 = vunpack.c.h.bf16 %v5716_v14 }
0x1068   :  { %v4051_v28 = vmul.f32 %v7132_v60, %v9065_v33  ;;  %7141 = vpow2.f32 %v5116_v63  ;;  %v3965_v31 = vadd.f32 %v3964_v4, %v9048_v47  ;;  %v6768_v15 = vpop.f32.mrb[187].mxu1  ;;  %v7019_v47 = vunpack.i.h.bf16 %v7017_v13  ;;  %v5718_v63 = vld [vmem:[%s9304_s3 + $0x18] sm:$0xff]   ;;  %v5720_v4 = vld [vmem:[%s9304_s3 + $0x28] sm:$0xff]  }
0x1069   :  { %7143 = vrcp.f32 %v4015_v2  ;;  %v5566_v35 = vunpack.c.l.bf16 %v5718_v63  ;;  %v5567_v60 = vunpack.c.h.bf16 %v5718_v63  ;;  %v5570_v2 = vunpack.c.l.bf16 %v5719_v53  ;;  %v5721_v15 = vld [vmem:[%s9304_s3 + $0x30] sm:$0xff]   ;;  %v4692_v63 = vld [vmem:[%s9313_s12] sm:$0xff] }
0x106a   :  { %v7134_v40 = vpop.eup %7133  ;;  %v5117_v1 = vmul.f32 -1.442695, %v3965_v31  ;;  %v4116_v49 = vsel %vm1714_vm3, %v4051_v28, %v7014_v32  ;;  %v5563_v32 = vunpack.c.h.bf16 %v5717_v0  ;;  %v5571_v28 = vunpack.c.h.bf16 %v5719_v53  ;;  %v4695_v0 = vld [vmem:[%s9313_s12 + $0x18] sm:$0xff] }
0x106b   :  { %v7136_v54 = vpop.eup %7135  ;;  %v4016_v8 = vadd.f32 1.0, %v7134_v40  ;;  %v6911_v22 = vpack.c.bf16 %v4116_v49, %v4115_v46  ;;  %v5575_v40 = vunpack.c.h.bf16 %v5720_v4  ;;  %v5722_v46 = vld [vmem:[%s9304_s3 + $0x38] sm:$0xff]   ;;  %v5579_v49 = vunpack.c.h.bf16 %v5721_v15 }
0x106c   :  { %7145 = vpow2.f32 %v5117_v1  ;;  %v4052_v33 = vmul.f32 %v7136_v54, %v9069_v37  ;;  %v5578_v1 = vunpack.c.l.bf16 %v5721_v15  ;;  %v5582_v54 = vunpack.c.l.bf16 %v5722_v46 }
0x106d   :  { %7147 = vrcp.f32 %v4016_v8  ;;  %6912 = vmatprep.subr.bf16.mxu1 %v6911_v22  ;;  %v5723_v8 = vld [vmem:[%s9304_s3 + $0x40] sm:$0xff]  }
0x106e   :  { %v7138_v52 = vpop.eup %7137  ;;  %6914 = vmatpush3.bf16.msra.mxu1 %v6911_v22  ;;  %v4117_v3 = vsel %vm1714_vm3, %v4052_v33, %v7018_v39  ;;  %v5583_v22 = vunpack.c.h.bf16 %v5722_v46  ;;  %v5586_v13 = vunpack.c.l.bf16 %v5723_v8  ;;  %v5587_v33 = vunpack.c.h.bf16 %v5723_v8  ;;  %v5725_v39 = vld [vmem:[%s9304_s3 + $0x50] sm:$0xff]  }
0x106f   :  { %v7140_v38 = vpop.eup %7139  ;;  %v4017_v20 = vadd.f32 1.0, %v7138_v52  ;;  %v5724_v52 = vld [vmem:[%s9304_s3 + $0x48] sm:$0xff]  }
0x1070   :  { %v4053_v58 = vmul.f32 %v7140_v38, %v9073_v10  ;;  %v5591_v38 = vunpack.c.h.bf16 %v5724_v52 }
0x1071   :  { %7149 = vrcp.f32 %v4017_v20  ;;  %v5594_v20 = vunpack.c.l.bf16 %v5725_v39 }
0x1072   :  { %v7142_v19 = vpop.eup %7141  ;;  %v4118_v11 = vsel %vm1714_vm3, %v4053_v58, %v7019_v47  ;;  %v5590_v47 = vunpack.c.l.bf16 %v5724_v52  ;;  %v5726_v58 = vld [vmem:[%s9304_s3 + $0x58] sm:$0xff]  }
0x1073   :  { %v7144_v30 = vpop.eup %7143  ;;  %v4018_v42 = vadd.f32 1.0, %v7142_v19  ;;  %v6915_v43 = vpack.c.bf16 %v4118_v11, %v4117_v3  ;;  %v5595_v19 = vunpack.c.h.bf16 %v5725_v39  ;;  %v5598_v3 = vunpack.c.l.bf16 %v5726_v58  ;;  %v5727_v11 = vld [vmem:[%s9304_s3 + $0x60] sm:$0xff]  }
0x1074   :  { %v4054_v7 = vmul.f32 %v7144_v30, %v9077_v5  ;;  %v7029_v5 = vunpack.i.h.bf16 %v7027_v18  ;;  %v5599_v30 = vunpack.c.h.bf16 %v5726_v58  ;;  %v5603_v17 = vunpack.c.h.bf16 %v5727_v11 }
0x1075   :  { %7151 = vrcp.f32 %v4018_v42  ;;  %6916 = vmatprep.subr.bf16.mxu1 %v6915_v43  ;;  %v5602_v42 = vunpack.c.l.bf16 %v5727_v11 }
0x1076   :  { %v7146_v37 = vpop.eup %7145  ;;  %6918 = vmatpush3.bf16.msra.mxu1 %v6915_v43  ;;  %v4119_v36 = vsel %vm1714_vm3, %v4054_v7, %v7023_v56  ;;  %v5728_v43 = vld [vmem:[%s9304_s3 + $0x68] sm:$0xff]   ;;  %v5729_v7 = vld [vmem:[%s9304_s3 + $0x70] sm:$0xff]  }
0x1077   :  { %v7148_v48 = vpop.eup %7147  ;;  %v4019_v10 = vadd.f32 1.0, %v7146_v37  ;;  %v5606_v37 = vunpack.c.l.bf16 %v5728_v43  ;;  %v5610_v56 = vunpack.c.l.bf16 %v5729_v7 }
0x1078   :  { %v4055_v23 = vmul.f32 %v7148_v48, %v9083_v44  ;;  %v5730_v48 = vld [vmem:[%s9304_s3 + $0x78] sm:$0xff]  }
0x1079   :  { %7153 = vrcp.f32 %v4019_v10  ;;  %v5611_v10 = vunpack.c.h.bf16 %v5729_v7 }
0x107a   :  { %v4120_v26 = vsel %vm1714_vm3, %v4055_v23, %v7024_v62  ;;  %v5607_v62 = vunpack.c.h.bf16 %v5728_v43  ;;  %v5614_v23 = vunpack.c.l.bf16 %v5730_v48 }
0x107b   :  { %v7150_v41 = vpop.eup %7149  ;;  %v6919_v51 = vpack.c.bf16 %v4120_v26, %v4119_v36  ;;  %v5731_v36 = vld [vmem:[%s9304_s3 + $0x80] sm:$0xff]   ;;  %v5615_v26 = vunpack.c.h.bf16 %v5730_v48 }
0x107c   :  { %v4056_v16 = vmul.f32 %v7150_v41, %v9089_v25  ;;  %v5618_v41 = vunpack.c.l.bf16 %v5731_v36  ;;  %v5619_v18 = vunpack.c.h.bf16 %v5731_v36 }
0x107d   :  { %6920 = vmatprep.subr.bf16.mxu1 %v6919_v51 }
0x107e   :  { %6922 = vmatpush3.bf16.msra.mxu1 %v6919_v51  ;;  %v4121_v27 = vsel %vm1714_vm3, %v4056_v16, %v7028_v57  ;;  %v5732_v51 = vld [vmem:[%s9304_s3 + $0x88] sm:$0xff]  }
0x107f   :  { %v7152_v9 = vpop.eup %7151  ;;  %v5622_v16 = vunpack.c.l.bf16 %v5732_v51 }
0x1080   :  { %v4057_v21 = vmul.f32 %v7152_v9, %v9095_v45  ;;  %v5558_v45 = vunpack.c.l.bf16 %v5716_v14 }
0x1082   :  { %v4122_v44 = vsel %vm1714_vm3, %v4057_v21, %v7029_v5  ;;  %v5623_v5 = vunpack.c.h.bf16 %v5732_v51 }
0x1083   :  { %v7154_v24 = vpop.eup %7153  ;;  %v6923_v50 = vpack.c.bf16 %v4122_v44, %v4121_v27 }
0x1084   :  { %v4058_v34 = vmul.f32 %v7154_v24, %v3965_v31  ;;  %v5574_v31 = vunpack.c.l.bf16 %v5720_v4 }
0x1085   :  { %6924 = vmatprep.subr.bf16.mxu1 %v6923_v50 }
0x1086   :  { %6926 = vmatpush3.bf16.msra.mxu1 %v6923_v50  ;;  %v4123_v25 = vsel %vm1714_vm3, %v4058_v34, %v4097_v29  ;;  %vm4682_vm3 = vcmask 785408  }
0x1087   :  { %6793 = vmatprep.subr.mxu1 %v4123_v25 }
0x108a   :  { %6794 = vmatpush3.msra.mxu1 %v4123_v25 }
0x108b   :  { %6796 = vmatmul.mubr.msk.f32.vlgmr.msra.gmra.mrb[188].mxu1 %vm296_vm1, %v5555_v59 }
0x108c   :  { %6798 = vmatprep.mubr.msk.f32.mxu1 %vm296_vm1, %v5558_v45  ;;  %v4693_v45 = vld [vmem:[%s9313_s12 + $0x8] sm:$0xff] }
0x108f   :  { %6799 = vmatmul.mubr.msk.f32.gmra.mrb[190].mxu1 %vm296_vm1, %v5559_v6 }
0x1090   :  { %6801 = vmatprep.mubr.msk.f32.mxu1 %vm296_vm1, %v5562_v12  ;;  %v6927_v12 = vpack.c.bf16 %v4695_v0, %v4693_v45 }
0x1092   :  { %6929 = vmatprep.subr.msk.bf16.mxu1 %vm6928_vm0, %v6927_v12 }
0x1093   :  { %6802 = vmatmul.mubr.msk.f32.gmra.mrb[192].mxu1 %vm296_vm1, %v5563_v32  ;;  %v4694_v32 = vld [vmem:[%s9313_s12 + $0x10] sm:$0xff]  ;;  %s7218_s12 = smov 80  }
0x1094   :  { %6804 = vmatprep.mubr.msk.f32.mxu1 %vm296_vm1, %v5566_v35  ;;  %v6930_v35 = vpack.c.bf16 %v4694_v32, %v4692_v63 }
0x1096   :  { %6931 = vmatpush1.bf16.xpose.msra.mxu1 %v6930_v35 }
0x1097   :  { %6805 = vmatmul.mubr.msk.f32.gmra.mrb[194].mxu1 %vm296_vm1, %v5567_v60 }
0x1098   :  { %6807 = vmatprep.mubr.msk.f32.mxu1 %vm296_vm1, %v5570_v2 }
0x109b   :  { %6808 = vmatmul.mubr.msk.f32.gmra.mrb[196].mxu1 %vm296_vm1, %v5571_v28 }
0x109c   :  { %6810 = vmatprep.mubr.msk.f32.mxu1 %vm296_vm1, %v5574_v31 }
0x109f   :  { %6811 = vmatmul.mubr.msk.f32.gmra.mrb[198].mxu1 %vm296_vm1, %v5575_v40 }
0x10a0   :  { %6813 = vmatprep.mubr.msk.f32.mxu1 %vm296_vm1, %v5578_v1 }
0x10a3   :  { %6814 = vmatmul.mubr.msk.f32.gmra.mrb[200].mxu1 %vm296_vm1, %v5579_v49 }
0x10a4   :  { %6816 = vmatprep.mubr.msk.f32.mxu1 %vm296_vm1, %v5582_v54 }
0x10a7   :  { %6817 = vmatmul.mubr.msk.f32.gmra.mrb[202].mxu1 %vm296_vm1, %v5583_v22 }
0x10a8   :  { %6819 = vmatprep.mubr.msk.f32.mxu1 %vm296_vm1, %v5586_v13 }
0x10ab   :  { %6820 = vmatmul.mubr.msk.f32.gmra.mrb[204].mxu1 %vm296_vm1, %v5587_v33 }
0x10ac   :  { %6822 = vmatprep.mubr.msk.f32.mxu1 %vm296_vm1, %v5590_v47 }
0x10af   :  { %6823 = vmatmul.mubr.msk.f32.gmra.mrb[206].mxu1 %vm296_vm1, %v5591_v38 }
0x10b0   :  { %6825 = vmatprep.mubr.msk.f32.mxu1 %vm296_vm1, %v5594_v20 }
0x10b3   :  { %6826 = vmatmul.mubr.msk.f32.gmra.mrb[208].mxu1 %vm296_vm1, %v5595_v19 }
0x10b4   :  { %6828 = vmatprep.mubr.msk.f32.mxu1 %vm296_vm1, %v5598_v3 }
0x10b7   :  { %6829 = vmatmul.mubr.msk.f32.gmra.mrb[210].mxu1 %vm296_vm1, %v5599_v30 }
0x10b8   :  { %6831 = vmatprep.mubr.msk.f32.mxu1 %vm296_vm1, %v5602_v42 }
0x10bb   :  { %6832 = vmatmul.mubr.msk.f32.gmra.mrb[212].mxu1 %vm296_vm1, %v5603_v17 }
0x10bc   :  { %6834 = vmatprep.mubr.msk.f32.mxu1 %vm296_vm1, %v5606_v37 }
0x10bf   :  { %6835 = vmatmul.mubr.msk.f32.gmra.mrb[214].mxu1 %vm296_vm1, %v5607_v62 }
0x10c0   :  { %6837 = vmatprep.mubr.msk.f32.mxu1 %vm296_vm1, %v5610_v56 }
0x10c3   :  { %6838 = vmatmul.mubr.msk.f32.gmra.mrb[216].mxu1 %vm296_vm1, %v5611_v10 }
0x10c4   :  { %6840 = vmatprep.mubr.msk.f32.mxu1 %vm296_vm1, %v5614_v23 }
0x10c7   :  { %6841 = vmatmul.mubr.msk.f32.gmra.mrb[218].mxu1 %vm296_vm1, %v5615_v26 }
0x10c8   :  { %6843 = vmatprep.mubr.msk.f32.mxu1 %vm296_vm1, %v5618_v41 }
0x10cb   :  { %6844 = vmatmul.mubr.msk.f32.gmra.mrb[220].mxu1 %vm296_vm1, %v5619_v18 }
0x10cc   :  { %6846 = vmatprep.mubr.msk.f32.mxu1 %vm296_vm1, %v5622_v16 }
0x10cf   :  { %6847 = vmatmul.mubr.msk.f32.gmra.mrb[222].mxu1 %vm296_vm1, %v5623_v5  ;;  %vm4677_vm1 = vcmask 654336  }
0x115e   :  { %v9203_v57 = vpop.f32.mrb[188].mxu1 }
0x115f   :  { %v9205_v9 = vpop.f32.mrb[189].mxu1 }
0x1162   :  { %v9207_v21 = vpop.f32.mrb[190].mxu1 }
0x1163   :  { %v9209_v27 = vpop.f32.mrb[191].mxu1 }
0x1166   :  { %v6803_v44 = vpop.f32.mrb[192].mxu1 }
0x1167   :  { %v4390_v24 = vpop.f32.mrb[193].mxu1 }
0x1168   :  { %v7030_v50 = vpack.i.bf16 %v6803_v44, %v4390_v24 }
0x116a   :  { %7031 = vrot.lane.b32.xlu1 %v7030_v50, %s7201_s26  ;;  %v6806_v29 = vpop.f32.mrb[194].mxu1 }
0x116b   :  { %v4400_v34 = vpop.f32.mrb[195].mxu1 }
0x116c   :  { %v7035_v14 = vpack.i.bf16 %v6806_v29, %v4400_v34 }
0x116e   :  { %7036 = vrot.lane.b32.xlu0 %v7035_v14, %s7201_s26  ;;  %v6809_v25 = vpop.f32.mrb[196].mxu1 }
0x116f   :  { %v4410_v59 = vpop.f32.mrb[197].mxu1 }
0x1170   :  { %v7040_v6 = vpack.i.bf16 %v6809_v25, %v4410_v59 }
0x1172   :  { %7041 = vrot.lane.b32.xlu0 %v7040_v6, %s7203_s30  ;;  %v6812_v53 = vpop.f32.mrb[198].mxu1 }
0x1173   :  { %v4420_v60 = vpop.f32.mrb[199].mxu1 }
0x1174   :  { %v7045_v2 = vpack.i.bf16 %v6812_v53, %v4420_v60 }
0x1176   :  { %7046 = vrot.lane.b32.xlu1 %v7045_v2, %s7203_s30  ;;  %v6815_v4 = vpop.f32.mrb[200].mxu1  ;;  %s7219_s30 = smov 96  }
0x1177   :  { %v4430_v28 = vpop.f32.mrb[201].mxu1 }
0x1178   :  { %v7050_v31 = vpack.i.bf16 %v6815_v4, %v4430_v28 }
0x117a   :  { %7051 = vrot.lane.b32.xlu1 %v7050_v31, %s7205_s23  ;;  %v6818_v15 = vpop.f32.mrb[202].mxu1 }
0x117b   :  { %v4440_v40 = vpop.f32.mrb[203].mxu1 }
0x117c   :  { %v7055_v1 = vpack.i.bf16 %v6818_v15, %v4440_v40 }
0x117e   :  { %7056 = vrot.lane.b32.xlu0 %v7055_v1, %s7205_s23  ;;  %v6821_v46 = vpop.f32.mrb[204].mxu1  ;;  %s7220_s23 = smov [#allocation2]  }
0x117f   :  { %v4450_v49 = vpop.f32.mrb[205].mxu1 }
0x1180   :  { %v7060_v54 = vpack.i.bf16 %v6821_v46, %v4450_v49 }
0x1182   :  { %7061 = vrot.lane.b32.xlu0 %v7060_v54, %s7207_s7  ;;  %v6824_v8 = vpop.f32.mrb[206].mxu1 }
0x1183   :  { %v4460_v22 = vpop.f32.mrb[207].mxu1 }
0x1184   :  { %v7065_v13 = vpack.i.bf16 %v6824_v8, %v4460_v22 }
0x1186   :  { %7066 = vrot.lane.b32.xlu1 %v7065_v13, %s7207_s7  ;;  %v6827_v52 = vpop.f32.mrb[208].mxu1  ;;  %s4840_s7 = sshll.u32 %s7220_s23, 4  ;;  %s4841_s7 = int_to_ptr.vmem [resolvable:$true] %s4840_s7 }
0x1187   :  { %v4470_v33 = vpop.f32.mrb[209].mxu1  ;;  %p7178_p1 = scmp.lt.s32.totalorder %s4841_s7, %s4841_s7 }
0x1188   :  { %v7070_v47 = vpack.i.bf16 %v6827_v52, %v4470_v33 }
0x118a   :  { %7071 = vrot.lane.b32.xlu1 %v7070_v47, %s7218_s12  ;;  %v6830_v39 = vpop.f32.mrb[210].mxu1 }
0x118b   :  { %v4480_v38 = vpop.f32.mrb[211].mxu1 }
0x118e   :  { %v6833_v20 = vpop.f32.mrb[212].mxu1 }
0x118f   :  { %v4490_v58 = vpop.f32.mrb[213].mxu1 }
0x1190   :  { %v7075_v19 = vpack.i.bf16 %v6833_v20, %v4490_v58 }
0x1192   :  { %7076 = vrot.lane.b32.xlu0 %v7075_v19, %s7219_s30  ;;  %v6836_v3 = vpop.f32.mrb[214].mxu1 }
0x1193   :  { %v4500_v11 = vpop.f32.mrb[215].mxu1 }
0x1196   :  { %4621 = vrot.lane.b32.xlu0 %v4480_v38, %s7218_s12  ;;  %v6839_v30 = vpop.f32.mrb[216].mxu1 }
0x1197   :  { %v4510_v42 = vpop.f32.mrb[217].mxu1 }
0x1198   :  { %v7080_v43 = vpack.i.bf16 %v6839_v30, %v4510_v42 }
0x119a   :  { %7081 = vrot.lane.b32.xlu1 %v7080_v43, %s7210_s18  ;;  %v6842_v17 = vpop.f32.mrb[218].mxu1 }
0x119b   :  { %v4520_v37 = vpop.f32.mrb[219].mxu1 }
0x119c   :  { %4653 = vrot.lane.b32.xlu0 %v4520_v37, %s7210_s18 }
0x119e   :  { %4637 = vrot.lane.b32.xlu1 %v4500_v11, %s7219_s30  ;;  %v6845_v7 = vpop.f32.mrb[220].mxu1 }
0x119f   :  { %v4530_v62 = vpop.f32.mrb[221].mxu1 }
0x11a0   :  { %4639 = vrot.lane.b32.xlu0 %v6836_v3, %s7219_s30  ;;  %5156 = vmatprep.mubr.msk.f32.mxu1 %vm1728_vm4, %v4530_v62 }
0x11a2   :  { %4623 = vrot.lane.b32.xlu1 %v6830_v39, %s7218_s12  ;;  %v9236_v56 = vpop.f32.mrb[222].mxu1 }
0x11a3   :  { %v9238_v48 = vpop.f32.mrb[223].mxu1 }
0x11a6   :  { %4655 = vrot.lane.b32.xlu1 %v6842_v17, %s7210_s18  ;;  %s7173_s18 = scalar_lea.vmem %s4841_s7, 512 }
0x11a7   :  { %p7174_p0 = scmp.ne.s32.totalorder %s4841_s7, %s7173_s18  ;;  %p7179_p2 = scmp.lt.s32.totalorder %s7173_s18, %s7173_s18 }
0x11a9   :  { %p7180_p3 = por %p7179_p2, %p7178_p1 }
0x11ab   :  { %p7181_p4 = pnand %p7180_p3, %p7174_p0 }
0x11dc   :  { %v7032_v10 = vpop.permute.xlu1 %7031 }
0x11dd   :  { %v7033_v5 = vunpack.i.l.bf16 %v7032_v10  ;;  %v7034_v50 = vunpack.i.h.bf16 %v7032_v10 }
0x11df   :  { %v4661_v25 = vsel %vm1728_vm4, %v9205_v9, %v7033_v5  ;;  %v4662_v12 = vsel %vm1728_vm4, %v9203_v57, %v7034_v50 }
0x11e0   :  { %v7037_v23 = vpop.permute.xlu0 %7036 }
0x11e1   :  { %v7038_v63 = vunpack.i.l.bf16 %v7037_v23  ;;  %v7039_v53 = vunpack.i.h.bf16 %v7037_v23 }
0x11e3   :  { %v4663_v54 = vsel %vm1728_vm4, %v9209_v27, %v7038_v63  ;;  %v4664_v30 = vsel %vm1728_vm4, %v9207_v21, %v7039_v53 }
0x11e4   :  { %v7042_v26 = vpop.permute.xlu0 %7041 }
0x11e5   :  { %v7043_v44 = vunpack.i.l.bf16 %v7042_v26  ;;  %v7044_v45 = vunpack.i.h.bf16 %v7042_v26 }
0x11e7   :  { %v4665_v0 = vsel %vm1756_vm6, %v4661_v25, %v7043_v44  ;;  %v4666_v1 = vsel %vm1756_vm6, %v4662_v12, %v7044_v45 }
0x11e8   :  { %v7047_v36 = vpop.permute.xlu1 %7046 }
0x11e9   :  { %v7048_v60 = vunpack.i.l.bf16 %v7047_v36  ;;  %v7049_v33 = vunpack.i.h.bf16 %v7047_v36 }
0x11eb   :  { %v4667_v47 = vsel %vm1756_vm6, %v4663_v54, %v7048_v60  ;;  %v4668_v37 = vsel %vm1756_vm6, %v4664_v30, %v7049_v33 }
0x11ec   :  { %v7052_v41 = vpop.permute.xlu1 %7051 }
0x11ed   :  { %v7053_v29 = vunpack.i.l.bf16 %v7052_v41  ;;  %v7054_v32 = vunpack.i.h.bf16 %v7052_v41 }
0x11ef   :  { %v4669_v35 = vsel %vm1784_vm8, %v4665_v0, %v7053_v29  ;;  %v4670_v8 = vsel %vm1784_vm8, %v4666_v1, %v7054_v32 }
0x11f0   :  { %v7057_v51 = vpop.permute.xlu0 %7056 }
0x11f1   :  { %v7058_v28 = vunpack.i.l.bf16 %v7057_v51  ;;  %v7059_v20 = vunpack.i.h.bf16 %v7057_v51 }
0x11f3   :  { %v4671_v58 = vsel %vm1784_vm8, %v4667_v47, %v7058_v28  ;;  %v4672_v10 = vsel %vm1784_vm8, %v4668_v37, %v7059_v20 }
0x11f4   :  { %v7062_v16 = vpop.permute.xlu0 %7061 }
0x11f5   :  { %v7063_v14 = vunpack.i.l.bf16 %v7062_v16  ;;  %v7064_v2 = vunpack.i.h.bf16 %v7062_v16  ;;  %v4698_v16 = vsub.s32 5, %v8647_v55 }
0x11f7   :  { %v4673_v9 = vsel %vm1812_vm10, %v4669_v35, %v7063_v14  ;;  %v4674_v39 = vsel %vm1812_vm10, %v4670_v8, %v7064_v2 }
0x11f8   :  { %v9241_v18 = vpop.permute.xlu1 %7066 }
0x11f9   :  { %v7068_v46 = vunpack.i.l.bf16 %v9241_v18  ;;  %v7069_v19 = vunpack.i.h.bf16 %v9241_v18 }
0x11fb   :  { %v4675_v3 = vsel %vm1812_vm10, %v4671_v58, %v7068_v46  ;;  %v4676_v23 = vsel %vm1812_vm10, %v4672_v10, %v7069_v19 }
0x11fc   :  { %v7072_v24 = vpop.permute.xlu1 %7071 }
0x11fd   :  { %v7073_v59 = vunpack.i.l.bf16 %v7072_v24  ;;  %v7074_v31 = vunpack.i.h.bf16 %v7072_v24 }
0x11ff   :  { %v4678_v15 = vsel %vm4677_vm1, %v4673_v9, %v7073_v59  ;;  %v4679_v27 = vsel %vm4677_vm1, %v4674_v39, %v7074_v31 }
0x1204   :  { %v7077_v34 = vpop.permute.xlu0 %7076 }
0x1205   :  { %v7078_v6 = vunpack.i.l.bf16 %v7077_v34  ;;  %v7079_v57 = vunpack.i.h.bf16 %v7077_v34 }
0x1207   :  { %v4683_v49 = vsel %vm4682_vm3, %v4678_v15, %v7078_v6  ;;  %v4684_v11 = vsel %vm4682_vm3, %v4679_v27, %v7079_v57 }
0x1208   :  { %v4622_v22 = vpop.permute.xlu0 %4621 }
0x1209   :  { %v4680_v42 = vsel %vm4677_vm1, %v4675_v3, %v4622_v22 }
0x120c   :  { %v7082_v4 = vpop.permute.xlu1 %7081 }
0x120d   :  { %v7083_v40 = vunpack.i.l.bf16 %v7082_v4  ;;  %v7084_v13 = vunpack.i.h.bf16 %v7082_v4 }
0x120e   :  { %v4654_v43 = vpop.permute.xlu0 %4653 }
0x120f   :  { %v4688_v52 = vsel %vm4687_vm5, %v4683_v49, %v7083_v40  ;;  %v4689_v17 = vsel %vm4687_vm5, %v4684_v11, %v7084_v13 }
0x1210   :  { %v4638_v38 = vpop.permute.xlu1 %4637  ;;  %4783 = vmatmul.mubr.f32.vlgmr.msra.gmra.mrb[224].mxu1 %v4688_v52 }
0x1211   :  { %5157 = vmatprep.mubr.msk.f32.mxu1 %vm1728_vm4, %v6845_v7  ;;  %v4685_v7 = vsel %vm4682_vm3, %v4680_v42, %v4638_v38 }
0x1212   :  { %v4690_v36 = vsel %vm4687_vm5, %v4685_v7, %v4654_v43  ;;  %v4640_v41 = vpop.permute.xlu0 %4639 }
0x1214   :  { %v4624_v62 = vpop.permute.xlu1 %4623  ;;  %4788 = vmatmul.mubr.f32.gmra.mrb[226].mxu1 %v4689_v17 }
0x1215   :  { %5158 = vmatprep.mubr.msk.f32.mxu1 %vm1728_vm4, %v9238_v48  ;;  %v4681_v21 = vsel %vm4677_vm1, %v4676_v23, %v4624_v62  ;;  %v4699_v48 = vrot.slane %v9045_v61, %v4698_v16 }
0x1216   :  { %v4686_v51 = vsel %vm4682_vm3, %v4681_v21, %v4640_v41 }
0x1218   :  { %v4656_v26 = vpop.permute.xlu1 %4655  ;;  %4793 = vmatmul.mubr.f32.gmra.mrb[228].mxu1 %v4690_v36 }
0x1219   :  { %5159 = vmatprep.mubr.msk.f32.mxu1 %vm1728_vm4, %v9236_v56  ;;  %v4691_v18 = vsel %vm4687_vm5, %v4686_v51, %v4656_v26 }
0x121c   :  { %4798 = vmatmul.mubr.f32.gmra.mrb[230].mxu1 %v4691_v18 }
0x12e3   :  { %v4784_v5 = vpop.f32.mrb[224].mxu1 }
0x12e4   :  { %v4785_v44 = vadd.f32 %v4784_v5, %v4699_v48  ;;  %v4786_v24 = vpop.f32.mrb[225].mxu1 }
0x12e6   :  { %v5160_v50 = vmul.f32 -1.442695, %v4785_v44 }
0x12e7   :  { %v4789_v29 = vpop.f32.mrb[226].mxu1 }
0x12e8   :  { %7155 = vpow2.f32 %v5160_v50  ;;  %v4790_v34 = vadd.f32 %v4789_v29, %v4699_v48  ;;  %v4791_v14 = vpop.f32.mrb[227].mxu1 }
0x12ea   :  { %v5161_v25 = vmul.f32 -1.442695, %v4790_v34 }
0x12eb   :  { %v4794_v59 = vpop.f32.mrb[228].mxu1 }
0x12ec   :  { %7157 = vpow2.f32 %v5161_v25  ;;  %v4795_v56 = vadd.f32 %v4794_v59, %v4699_v48  ;;  %v4796_v45 = vpop.f32.mrb[229].mxu1 }
0x12ee   :  { %v5162_v0 = vmul.f32 -1.442695, %v4795_v56 }
0x12ef   :  { %v4799_v6 = vpop.f32.mrb[230].mxu1 }
0x12f0   :  { %7159 = vpow2.f32 %v5162_v0  ;;  %v4800_v12 = vadd.f32 %v4799_v6, %v4699_v48  ;;  %v4801_v55 = vpop.f32.mrb[231].mxu1 }
0x12f2   :  { %v7156_v63 = vpop.eup %7155  ;;  %v5163_v61 = vmul.f32 -1.442695, %v4800_v12 }
0x12f3   :  { %v4815_v32 = vadd.f32 1.0, %v7156_v63 }
0x12f4   :  { %7161 = vpow2.f32 %v5163_v61 }
0x12f5   :  { %7163 = vrcp.f32 %v4815_v32 }
0x12f6   :  { %v7158_v35 = vpop.eup %7157 }
0x12f7   :  { %v4816_v53 = vadd.f32 1.0, %v7158_v35 }
0x12f9   :  { %7165 = vrcp.f32 %v4816_v53 }
0x12fa   :  { %v7160_v60 = vpop.eup %7159 }
0x12fb   :  { %v4817_v2 = vadd.f32 1.0, %v7160_v60 }
0x12fd   :  { %7167 = vrcp.f32 %v4817_v2 }
0x12fe   :  { %v7162_v9 = vpop.eup %7161 }
0x12ff   :  { %v7164_v4 = vpop.eup %7163  ;;  %v4818_v28 = vadd.f32 1.0, %v7162_v9 }
0x1300   :  { %v4827_v31 = vmul.f32 %v7164_v4, %v4785_v44 }
0x1301   :  { %7169 = vrcp.f32 %v4818_v28 }
0x1302   :  { %4831 = vst.msk [vmem:[#allocation2] sm:$0xff] %vm1728_vm4, %v4827_v31 }
0x1303   :  { %v7166_v15 = vpop.eup %7165 }
0x1304   :  { %v4828_v40 = vmul.f32 %v7166_v15, %v4790_v34 }
0x1306   :  { %4832 = vst.msk [vmem:[#allocation2 + $0x8] sm:$0xff] %vm1728_vm4, %v4828_v40 }
0x1307   :  { %v7168_v1 = vpop.eup %7167 }
0x1308   :  { %v4829_v46 = vmul.f32 %v7168_v1, %v4795_v56 }
0x130a   :  { %4833 = vst.msk [vmem:[#allocation2 + $0x10] sm:$0xff] %vm1728_vm4, %v4829_v46 }
0x130b   :  { %v7170_v57 = vpop.eup %7169 }
0x130c   :  { %v4830_v49 = vmul.f32 %v7170_v57, %v4800_v12 }
0x130e   :  { %4834 = vst.msk [vmem:[#allocation2 + $0x18] sm:$0xff] %vm1728_vm4, %v4830_v49 }
0x130f   :  { %7184 = shalt.err (!%p7181_p4)
}
0x1310   :  { %s7185_s16 = scalar_lea.hbm %s9315_s14, 512 }
0x1311   :  { %p7186_p5 = scmp.ne.s32.totalorder %s9315_s14, %s7185_s16  ;;  %p7189_p6 = scmp.lt.u32.totalorder %s7185_s16, %s9315_s14 }
0x1313   :  { %p7191_p7 = pnand %p7189_p6, %p7186_p5 }
0x1315   :  { %7194 = shalt.err (!%p7191_p7)
}
0x1316   :  { %s7221_s19 = smov 128  }
0x1317   :  { %4846 = dma.vmem_to_hbm [thread:$0]  %s4841_s7, 512, %s9315_s14, [#allocation3], %s7221_s19, %s7221_s19, %s7200_s27  }
0x1318   :  { %7195 = dma.done.wait [#allocation3], 512  }
0x1319   :  { %7196 = vsyncadd [#allocation3], 4294966784 }
0x131a   :  { %4850 = vsyncpa [#allocation3], 1 }

</bundles_post_ra>
